<compile_context>
chip_gen: v7x
topology: tpu7x:2x2x1
jax: 0.10.0
libtpu: 0.0.40
codegen_flags: <defaults>
</compile_context>

<pallas_src>
import functools

import numpy as np
import jax
import jax.numpy as jnp
from jax.experimental import pallas as pl
from jax.experimental.pallas import tpu as pltpu

LAST_LAYER = 256                 # nn.LSTMCell(hidden_size=256)
PADMIN = -1e30                   # f32/bf16-safe "-inf" for max-pool padding
_NB = 14                         # packed arrays per ImpalaBlock
_VMEM = pl.BlockSpec(memory_space=pltpu.MemorySpace.VMEM)


def _pool_out(s):
    """Output spatial size of max_pool2d(kernel=3, stride=2, padding=1)."""
    return (s - 1) // 2 + 1


# ---------------------------------------------------------------------------
# In-kernel helpers (operate on register values; batch is stacked along rows)
# ---------------------------------------------------------------------------
def _conv_slab(slab, w_ref, b_ref):
    """3x3 'same' conv as ONE matmul.

    slab : (R, W*Cin) f32 batched row-padded activations (zero pad rows).
    w_ref: (3*W*Cin, W*Cout) bf16 weights (kh shift, kw shift and column
           zero-padding folded in at pack time).
    Returns (R-2, W*Cout) f32; row i is the conv output centred at slab row i+1
    (rows centred on inter-image pad rows are garbage and masked by callers).
    """
    R = slab.shape[0]
    lhs = jnp.concatenate([slab[0:R - 2], slab[1:R - 1], slab[2:R]],
                          axis=-1).astype(jnp.bfloat16)
    return jnp.dot(lhs, w_ref[...],
                   preferred_element_type=jnp.float32) + b_ref[...]


def _impala_block(slab, refs, *, N, H, W, Co):
    """conv3x3 -> maxpool3x3/s2 -> 2x ResidualBlock, whole batch at once.

    slab: (N*(H+2), W*Cin) f32, zero rows at each image's top/bottom.
    Returns (N*(Ho+2), Wo*Co) f32 slab in the same row-padded layout.
    """
    (w0, b0, w1a, b1a, w1b, b1b, w2a, b2a, w2b, b2b,
     s_col, s_row, m0, m1) = refs
    Ho, Wo = _pool_out(H), _pool_out(W)
    R = N * (H + 2)
    R1 = N * (Ho + 2)

    # ---- first conv of the block (no preceding ReLU) ----------------------
    c0 = _conv_slab(slab, w0, b0)                       # (R-2, W*Co)
    mask0 = m0[...]                                     # (R-2, 1): 1 real row
    cm = c0 * mask0 + PADMIN * (1.0 - mask0)            # garbage rows -> -inf

    # ---- max-pool 3x3, stride 2, padding 1 (vectorised over the batch) ----
    pad_col = jnp.full((R - 2, Co), PADMIN, jnp.float32)
    pad_row = jnp.full((1, (W + 2) * Co), PADMIN, jnp.float32)
    pp = jnp.concatenate(
        [pad_row, jnp.concatenate([pad_col, cm, pad_col], axis=-1), pad_row],
        axis=0)                                         # (R, (W+2)*Co)
    rmax = jnp.maximum(jnp.maximum(pp[0:R - 2], pp[1:R - 1]), pp[2:R])
    cmax = jnp.maximum(jnp.maximum(rmax[:, 0:W * Co],
                                   rmax[:, Co:(W + 1) * Co]),
                       rmax[:, 2 * Co:(W + 2) * Co])    # (R-2, W*Co)
    # stride-2 column + row subsampling as two tiny 0/1 selection matmuls;
    # s_row also re-inserts the zero pad rows for the next conv.
    t = jnp.dot(cmax.astype(jnp.bfloat16), s_col[...],
                preferred_element_type=jnp.float32)      # (R-2, Wo*Co)
    pooled = jnp.dot(s_row[...], t.astype(jnp.bfloat16),
                     preferred_element_type=jnp.float32)  # (R1, Wo*Co)

    zrow = jnp.zeros((1, Wo * Co), jnp.float32)
    mask1 = m1[...]                                      # (R1-2, 1)

    # ---- residual block: x + conv2(relu(conv1(relu(x)))) -------------------
    def residual(x_slab, wa, ba, wb, bb):
        y = _conv_slab(jnp.maximum(x_slab, 0.0), wa, ba)     # (R1-2, Wo*Co)
        y = jnp.maximum(y, 0.0) * mask1                      # zero garbage rows
        y_slab = jnp.concatenate([zrow, y, zrow], axis=0)    # re-pad -> (R1, .)
        y = _conv_slab(y_slab, wb, bb)
        r = (y + x_slab[1:R1 - 1, :]) * mask1
        return jnp.concatenate([zrow, r, zrow], axis=0)      # (R1, Wo*Co)

    out = residual(pooled, w1a, b1a, w1b, b1b)
    out = residual(out, w2a, b2a, w2b, b2b)
    return out


# ---------------------------------------------------------------------------
# Fully fused forward kernel: block1 -> block2 -> block3 -> relu -> LSTMCell
# ---------------------------------------------------------------------------
def _fused_forward_kernel(*refs, N, geom, hidden):
    idx = 0
    x_ref = refs[idx]; idx += 1
    block_refs = []
    for _ in range(3):
        block_refs.append(refs[idx:idx + _NB]); idx += _NB
    h0_ref, c0_ref, wlstm_hbm, blstm_ref = refs[idx:idx + 4]; idx += 4
    h_out, c_out = refs[idx:idx + 2]; idx += 2
    wlstm_vmem, lstm_sem = refs[idx:idx + 2]

    # Overlap the (large) LSTM weight HBM->VMEM DMA with the conv compute.
    lstm_cp = pltpu.make_async_copy(wlstm_hbm, wlstm_vmem, lstm_sem)
    lstm_cp.start()

    slab = x_ref[...]
    for b in range(3):
        H, W, _, Co = geom[b]
        slab = _impala_block(slab, block_refs[b], N=N, H=H, W=W, Co=Co)

    # ---- trailing ReLU + flatten in native (h, w, c) order -----------------
    # (the torch (c, h, w) flatten permutation is folded into wih at pack time)
    H3, C3 = _pool_out(geom[2][0]), geom[2][3]
    per_image = []
    for n in range(N):
        base = n * (H3 + 2) + 1
        rows = [jnp.maximum(slab[base + r:base + r + 1, :], 0.0)
                for r in range(H3)]
        per_image.append(jnp.concatenate(rows, axis=-1))     # (1, H3*W3*C3)
    x_lstm = jnp.concatenate(per_image, axis=0)              # (N, H3*W3*C3)

    # ---- LSTMCell (torch gate order i, f, g, o), single MXU dot ------------
    lstm_cp.wait()
    zh = jnp.concatenate([x_lstm, h0_ref[...]], axis=-1).astype(jnp.bfloat16)
    gates = jnp.dot(zh, wlstm_vmem[...],
                    preferred_element_type=jnp.float32) + blstm_ref[...]
    Hs = hidden
    i = jax.nn.sigmoid(gates[:, 0:Hs])
    f = jax.nn.sigmoid(gates[:, Hs:2 * Hs])
    g = jnp.tanh(gates[:, 2 * Hs:3 * Hs])
    o = jax.nn.sigmoid(gates[:, 3 * Hs:4 * Hs])
    c_new = f * c0_ref[...] + i * g
    h_out[...] = o * jnp.tanh(c_new)
    c_out[...] = c_new


def build_forward(batch, in_channels, obs_size):
    """Build the jitted forward (mirrors Model.forward with history=None)."""
    geom = []
    s = obs_size
    for (ci, co) in ((in_channels, 16), (16, 32), (32, 32)):
        geom.append((s, s, ci, co))
        s = _pool_out(s)
    out_feats = s * s * 32

    kernel = functools.partial(_fused_forward_kernel, N=batch,
                               geom=tuple(geom), hidden=LAST_LAYER)

    n_in = 1 + 3 * _NB + 4
    in_specs = [_VMEM] * n_in
    in_specs[1 + 3 * _NB + 2] = pl.BlockSpec(memory_space=pl.ANY)  # LSTM W in HBM

    call = pl.pallas_call(
        kernel,
        out_shape=(jax.ShapeDtypeStruct((batch, LAST_LAYER), jnp.float32),
                   jax.ShapeDtypeStruct((batch, LAST_LAYER), jnp.float32)),
        in_specs=in_specs,
        out_specs=(_VMEM, _VMEM),
        scratch_shapes=[
            pltpu.VMEM((out_feats + LAST_LAYER, 4 * LAST_LAYER), jnp.bfloat16),
            pltpu.SemaphoreType.DMA,
        ],
    )
    # TODO(synk): for larger batches on v7x, add a grid axis over N with
    # dimension_semantics=("parallel",) to use both TensorCores; at N=2 the
    # per-step overhead outweighs the gain, so the kernel stays gridless.

    @jax.jit
    def forward(x_nchw, packed):
        N, Cin, H, W = x_nchw.shape
        xs = jnp.transpose(x_nchw, (0, 2, 3, 1)).reshape(N, H, W * Cin)
        xs = jnp.pad(xs, ((0, 0), (1, 1), (0, 0))).reshape(N * (H + 2), W * Cin)
        h0 = jnp.zeros((N, LAST_LAYER), jnp.float32)   # history=None path
        c0 = jnp.zeros((N, LAST_LAYER), jnp.float32)
        args = [xs]
        for name in ("block1", "block2", "block3"):
            args.extend(packed[name])
        args.extend([h0, c0, packed["lstm_w"], packed["lstm_b"]])
        h, c = call(*args)
        return h, (h, c)

    return forward


# ---------------------------------------------------------------------------
# Parameter init (deterministic) + host-side packing into the kernel layout
# ---------------------------------------------------------------------------
def init_raw_params(key, in_channels, obs_size):
    def conv_p(k, cin, cout):
        kw_, kb_ = jax.random.split(k)
        w = jax.random.normal(kw_, (3, 3, cin, cout), jnp.float32) / np.sqrt(9.0 * cin)
        b = jax.random.normal(kb_, (cout,), jnp.float32) * 0.01
        return w, b

    def res_p(k, c):
        k1, k2 = jax.random.split(k)
        w1, b1 = conv_p(k1, c, c)
        w2, b2 = conv_p(k2, c, c)
        return {"w1": w1, "b1": b1, "w2": w2, "b2": b2}

    def block_p(k, cin, cout):
        k1, k2, k3 = jax.random.split(k, 3)
        w, b = conv_p(k1, cin, cout)
        return {"w": w, "b": b, "res1": res_p(k2, cout), "res2": res_p(k3, cout)}

    s = obs_size
    for _ in range(3):
        s = _pool_out(s)
    output_size = int(s * s * 32)                      # matches the module

    k1, k2, k3, k4 = jax.random.split(key, 4)
    ki, kh, kb = jax.random.split(k4, 3)
    lstm = (
        # wih rows are in torch (C,H,W)-flatten feature order
        jax.random.normal(ki, (output_size, 4 * LAST_LAYER), jnp.float32)
        / np.sqrt(float(output_size)),
        jax.random.normal(kh, (LAST_LAYER, 4 * LAST_LAYER), jnp.float32)
        / np.sqrt(float(LAST_LAYER)),
        # single fused bias (= bias_ih + bias_hh when porting torch weights)
        jax.random.normal(kb, (1, 4 * LAST_LAYER), jnp.float32) * 0.01,
    )
    return {"block1": block_p(k1, in_channels, 16),
            "block2": block_p(k2, 16, 32),
            "block3": block_p(k3, 32, 32),
            "lstm": lstm}


def _pack_conv(w, b, W):
    """Fold kh row shift, kw column shift and 'same' column zero padding into
    one (3*W*Cin, W*Cout) bf16 matrix + a (1, W*Cout) tiled f32 bias."""
    w = np.asarray(w, np.float32)
    b = np.asarray(b, np.float32)
    Cin, Cout = w.shape[2], w.shape[3]
    big = np.zeros((3, W * Cin, W * Cout), np.float32)
    for kh in range(3):
        for kw in range(3):
            for wo in range(W):
                wi = wo + kw - 1
                if 0 <= wi < W:
                    big[kh, wi * Cin:(wi + 1) * Cin,
                        wo * Cout:(wo + 1) * Cout] = w[kh, kw]
    big = big.reshape(3 * W * Cin, W * Cout)
    return (jnp.asarray(big, jnp.bfloat16),
            jnp.asarray(np.tile(b, W)[None, :], jnp.float32))


def _make_col_select(W, Wo, Co):
    """0/1 matrix selecting every other Co-wide column block (stride-2 pool)."""
    s = np.zeros((W * Co, Wo * Co), np.float32)
    for wo in range(Wo):
        for c in range(Co):
            s[2 * wo * Co + c, wo * Co + c] = 1.0
    return jnp.asarray(s, jnp.bfloat16)


def _make_row_select(N, H, Ho):
    """0/1 matrix: stride-2 row subsample + re-insert zero pad rows per image."""
    s = np.zeros((N * (Ho + 2), N * (H + 2) - 2), np.float32)
    for n in range(N):
        for ho in range(Ho):
            s[n * (Ho + 2) + 1 + ho, n * (H + 2) + 2 * ho] = 1.0
    return jnp.asarray(s, jnp.bfloat16)


def _make_row_mask(N, H):
    """(R-2, 1) mask: 1.0 for real conv-output rows, 0.0 for inter-image rows."""
    m = np.zeros((N * (H + 2) - 2, 1), np.float32)
    for i in range(N * (H + 2) - 2):
        if (i % (H + 2)) < H:
            m[i, 0] = 1.0
    return jnp.asarray(m)


def pack_params(raw, obs_size, batch):
    packed = {}
    s = obs_size
    for name in ("block1", "block2", "block3"):
        rb = raw[name]
        so = _pool_out(s)
        cout = int(rb["w"].shape[-1])
        w0, b0 = _pack_conv(rb["w"], rb["b"], s)
        w1a, b1a = _pack_conv(rb["res1"]["w1"], rb["res1"]["b1"], so)
        w1b, b1b = _pack_conv(rb["res1"]["w2"], rb["res1"]["b2"], so)
        w2a, b2a = _pack_conv(rb["res2"]["w1"], rb["res2"]["b1"], so)
        w2b, b2b = _pack_conv(rb["res2"]["w2"], rb["res2"]["b2"], so)
        packed[name] = (w0, b0, w1a, b1a, w1b, b1b, w2a, b2a, w2b, b2b,
                        _make_col_select(s, so, cout),
                        _make_row_select(batch, s, so),
                        _make_row_mask(batch, s),
                        _make_row_mask(batch, so))
        s = so

    # LSTM: permute wih rows from torch (c, h, w) flatten order to the
    # kernel's native (h, w, c) order, stack [wih; whh], cast to bf16.
    wih, whh, bias = raw["lstm"]
    H3 = W3 = s
    C3 = 32
    perm = np.zeros(H3 * W3 * C3, np.int64)
    for h in range(H3):
        for w in range(W3):
            for c in range(C3):
                perm[(h * W3 + w) * C3 + c] = c * H3 * W3 + h * W3 + w
    wih_perm = np.asarray(wih, np.float32)[perm, :]
    w_comb = np.concatenate([wih_perm, np.asarray(whh, np.float32)], axis=0)
    packed["lstm_w"] = jnp.asarray(w_comb, jnp.bfloat16)
    packed["lstm_b"] = jnp.asarray(bias, jnp.float32)
    return packed


if __name__ == "__main__":
    # obs_space = (16, 16, 4), batch = 2 (actor/value heads are not in forward)
    BATCH, IN_CH, OBS = 2, 4, 16
    key = jax.random.PRNGKey(0)
    pkey, xkey = jax.random.split(key)

    raw = init_raw_params(pkey, in_channels=IN_CH, obs_size=OBS)
    packed = pack_params(raw, obs_size=OBS, batch=BATCH)
    forward = build_forward(BATCH, IN_CH, OBS)

    x = jax.random.normal(xkey, (BATCH, IN_CH, OBS, OBS), jnp.float32)  # NCHW
    h, (h2, c) = forward(x, packed)
    jax.block_until_ready((h, h2, c))

    assert h.shape == (BATCH, LAST_LAYER)
    assert c.shape == (BATCH, LAST_LAYER)
    assert bool(jnp.all(jnp.isfinite(h))) and bool(jnp.all(jnp.isfinite(c)))
    print("KERNEL_OK")
</pallas_src>

<mosaic_0001>
module attributes {stable_mosaic.version = 11 : i64} {
  func.func @_fused_forward_kernel(%arg0: memref<36x64xf32, #tpu.memory_space<vmem>>, %arg1: memref<192x256xbf16, #tpu.memory_space<vmem>>, %arg2: memref<1x256xf32, #tpu.memory_space<vmem>>, %arg3: memref<384x128xbf16, #tpu.memory_space<vmem>>, %arg4: memref<1x128xf32, #tpu.memory_space<vmem>>, %arg5: memref<384x128xbf16, #tpu.memory_space<vmem>>, %arg6: memref<1x128xf32, #tpu.memory_space<vmem>>, %arg7: memref<384x128xbf16, #tpu.memory_space<vmem>>, %arg8: memref<1x128xf32, #tpu.memory_space<vmem>>, %arg9: memref<384x128xbf16, #tpu.memory_space<vmem>>, %arg10: memref<1x128xf32, #tpu.memory_space<vmem>>, %arg11: memref<256x128xbf16, #tpu.memory_space<vmem>>, %arg12: memref<20x34xbf16, #tpu.memory_space<vmem>>, %arg13: memref<34x1xf32, #tpu.memory_space<vmem>>, %arg14: memref<18x1xf32, #tpu.memory_space<vmem>>, %arg15: memref<384x256xbf16, #tpu.memory_space<vmem>>, %arg16: memref<1x256xf32, #tpu.memory_space<vmem>>, %arg17: memref<384x128xbf16, #tpu.memory_space<vmem>>, %arg18: memref<1x128xf32, #tpu.memory_space<vmem>>, %arg19: memref<384x128xbf16, #tpu.memory_space<vmem>>, %arg20: memref<1x128xf32, #tpu.memory_space<vmem>>, %arg21: memref<384x128xbf16, #tpu.memory_space<vmem>>, %arg22: memref<1x128xf32, #tpu.memory_space<vmem>>, %arg23: memref<384x128xbf16, #tpu.memory_space<vmem>>, %arg24: memref<1x128xf32, #tpu.memory_space<vmem>>, %arg25: memref<256x128xbf16, #tpu.memory_space<vmem>>, %arg26: memref<12x18xbf16, #tpu.memory_space<vmem>>, %arg27: memref<18x1xf32, #tpu.memory_space<vmem>>, %arg28: memref<10x1xf32, #tpu.memory_space<vmem>>, %arg29: memref<384x128xbf16, #tpu.memory_space<vmem>>, %arg30: memref<1x128xf32, #tpu.memory_space<vmem>>, %arg31: memref<192x64xbf16, #tpu.memory_space<vmem>>, %arg32: memref<1x64xf32, #tpu.memory_space<vmem>>, %arg33: memref<192x64xbf16, #tpu.memory_space<vmem>>, %arg34: memref<1x64xf32, #tpu.memory_space<vmem>>, %arg35: memref<192x64xbf16, #tpu.memory_space<vmem>>, %arg36: memref<1x64xf32, #tpu.memory_space<vmem>>, %arg37: memref<192x64xbf16, #tpu.memory_space<vmem>>, %arg38: memref<1x64xf32, #tpu.memory_space<vmem>>, %arg39: memref<128x64xbf16, #tpu.memory_space<vmem>>, %arg40: memref<8x10xbf16, #tpu.memory_space<vmem>>, %arg41: memref<10x1xf32, #tpu.memory_space<vmem>>, %arg42: memref<6x1xf32, #tpu.memory_space<vmem>>, %arg43: memref<2x256xf32, #tpu.memory_space<vmem>>, %arg44: memref<2x256xf32, #tpu.memory_space<vmem>>, %arg45: memref<384x1024xbf16, #tpu.memory_space<any>>, %arg46: memref<1x1024xf32, #tpu.memory_space<vmem>>, %arg47: memref<2x256xf32, #tpu.memory_space<vmem>>, %arg48: memref<2x256xf32, #tpu.memory_space<vmem>>, %arg49: memref<384x1024xbf16, #tpu.memory_space<vmem>>, %arg50: memref<!tpu.dma_semaphore, #tpu.memory_space<semaphore_mem>>) attributes {dimension_semantics = [], scalar_prefetch = 0 : i64, scratch_operands = 2 : i64, tpu.core_type = #tpu.core_type<tc>} {
    tpu.enqueue_dma source(%arg45 : memref<384x1024xbf16, #tpu.memory_space<any>>) target(%arg49 : memref<384x1024xbf16, #tpu.memory_space<vmem>>) target_semaphore(%arg50 : memref<!tpu.dma_semaphore, #tpu.memory_space<semaphore_mem>>)
    %c0 = arith.constant 0 : index
    %c0_0 = arith.constant 0 : index
    %0 = vector.load %arg0[%c0, %c0_0] : memref<36x64xf32, #tpu.memory_space<vmem>>, vector<36x64xf32>
    %1 = vector.extract_strided_slice %0 {offsets = [0, 0], sizes = [34, 64], strides = [1, 1]} : vector<36x64xf32> to vector<34x64xf32>
    %2 = vector.extract_strided_slice %0 {offsets = [1, 0], sizes = [34, 64], strides = [1, 1]} : vector<36x64xf32> to vector<34x64xf32>
    %3 = vector.extract_strided_slice %0 {offsets = [2, 0], sizes = [34, 64], strides = [1, 1]} : vector<36x64xf32> to vector<34x64xf32>
    %4 = tpu.concatenate %1, %2, %3 in 1 : vector<34x64xf32>, vector<34x64xf32>, vector<34x64xf32> -> vector<34x192xf32>
    %5 = arith.truncf %4 : vector<34x192xf32> to vector<34x192xbf16>
    %c0_1 = arith.constant 0 : index
    %c0_2 = arith.constant 0 : index
    %6 = vector.load %arg1[%c0_1, %c0_2] : memref<192x256xbf16, #tpu.memory_space<vmem>>, vector<192x256xbf16>
    %cst = arith.constant dense<0.000000e+00> : vector<34x256xf32>
    %7 = tpu.matmul %5, %6, %cst {dimension_numbers = #tpu.dot_dimension_numbers<[1], [0], [0], [1], [0, 0, 1, 1], [], []>} : vector<34x192xbf16>, vector<192x256xbf16>, vector<34x256xf32> -> vector<34x256xf32>
    %c0_3 = arith.constant 0 : index
    %c0_4 = arith.constant 0 : index
    %8 = vector.load %arg2[%c0_3, %c0_4] : memref<1x256xf32, #tpu.memory_space<vmem>>, vector<1x256xf32>
    %9 = vector.broadcast %8 : vector<1x256xf32> to vector<34x256xf32>
    %10 = arith.addf %7, %9 : vector<34x256xf32>
    %c0_5 = arith.constant 0 : index
    %c0_6 = arith.constant 0 : index
    %11 = vector.load %arg13[%c0_5, %c0_6] : memref<34x1xf32, #tpu.memory_space<vmem>>, vector<34x1xf32>
    %12 = vector.broadcast %11 : vector<34x1xf32> to vector<34x256xf32>
    %13 = arith.mulf %10, %12 : vector<34x256xf32>
    %cst_7 = arith.constant 1.000000e+00 : f32
    %14 = vector.broadcast %cst_7 : f32 to vector<34x1xf32>
    %15 = arith.subf %14, %11 : vector<34x1xf32>
    %cst_8 = arith.constant -1.000000e+30 : f32
    %16 = vector.broadcast %cst_8 : f32 to vector<34x1xf32>
    %17 = arith.mulf %16, %15 : vector<34x1xf32>
    %18 = vector.broadcast %17 : vector<34x1xf32> to vector<34x256xf32>
    %19 = arith.addf %13, %18 : vector<34x256xf32>
    %cst_9 = arith.constant -1.000000e+30 : f32
    %20 = vector.broadcast %cst_9 : f32 to vector<34x16xf32>
    %cst_10 = arith.constant -1.000000e+30 : f32
    %21 = vector.broadcast %cst_10 : f32 to vector<1x288xf32>
    %22 = tpu.concatenate %20, %19, %20 in 1 : vector<34x16xf32>, vector<34x256xf32>, vector<34x16xf32> -> vector<34x288xf32>
    %23 = tpu.concatenate %21, %22, %21 in 0 : vector<1x288xf32>, vector<34x288xf32>, vector<1x288xf32> -> vector<36x288xf32>
    %24 = vector.extract_strided_slice %23 {offsets = [0, 0], sizes = [34, 288], strides = [1, 1]} : vector<36x288xf32> to vector<34x288xf32>
    %25 = vector.extract_strided_slice %23 {offsets = [1, 0], sizes = [34, 288], strides = [1, 1]} : vector<36x288xf32> to vector<34x288xf32>
    %26 = arith.maximumf %24, %25 : vector<34x288xf32>
    %27 = vector.extract_strided_slice %23 {offsets = [2, 0], sizes = [34, 288], strides = [1, 1]} : vector<36x288xf32> to vector<34x288xf32>
    %28 = arith.maximumf %26, %27 : vector<34x288xf32>
    %29 = vector.extract_strided_slice %28 {offsets = [0, 0], sizes = [34, 256], strides = [1, 1]} : vector<34x288xf32> to vector<34x256xf32>
    %30 = vector.extract_strided_slice %28 {offsets = [0, 16], sizes = [34, 256], strides = [1, 1]} : vector<34x288xf32> to vector<34x256xf32>
    %31 = arith.maximumf %29, %30 : vector<34x256xf32>
    %32 = vector.extract_strided_slice %28 {offsets = [0, 32], sizes = [34, 256], strides = [1, 1]} : vector<34x288xf32> to vector<34x256xf32>
    %33 = arith.maximumf %31, %32 : vector<34x256xf32>
    %34 = arith.truncf %33 : vector<34x256xf32> to vector<34x256xbf16>
    %c0_11 = arith.constant 0 : index
    %c0_12 = arith.constant 0 : index
    %35 = vector.load %arg11[%c0_11, %c0_12] : memref<256x128xbf16, #tpu.memory_space<vmem>>, vector<256x128xbf16>
    %cst_13 = arith.constant dense<0.000000e+00> : vector<34x128xf32>
    %36 = tpu.matmul %34, %35, %cst_13 {dimension_numbers = #tpu.dot_dimension_numbers<[1], [0], [0], [1], [0, 0, 1, 1], [], []>} : vector<34x256xbf16>, vector<256x128xbf16>, vector<34x128xf32> -> vector<34x128xf32>
    %c0_14 = arith.constant 0 : index
    %c0_15 = arith.constant 0 : index
    %37 = vector.load %arg12[%c0_14, %c0_15] : memref<20x34xbf16, #tpu.memory_space<vmem>>, vector<20x34xbf16>
    %38 = arith.truncf %36 : vector<34x128xf32> to vector<34x128xbf16>
    %cst_16 = arith.constant dense<0.000000e+00> : vector<20x128xf32>
    %39 = tpu.matmul %37, %38, %cst_16 {dimension_numbers = #tpu.dot_dimension_numbers<[1], [0], [0], [1], [0, 0, 1, 1], [], []>} : vector<20x34xbf16>, vector<34x128xbf16>, vector<20x128xf32> -> vector<20x128xf32>
    %cst_17 = arith.constant 0.000000e+00 : f32
    %40 = vector.broadcast %cst_17 : f32 to vector<1x128xf32>
    %c0_18 = arith.constant 0 : index
    %c0_19 = arith.constant 0 : index
    %41 = vector.load %arg14[%c0_18, %c0_19] : memref<18x1xf32, #tpu.memory_space<vmem>>, vector<18x1xf32>
    %cst_20 = arith.constant 0.000000e+00 : f32
    %42 = vector.broadcast %cst_20 : f32 to vector<20x128xf32>
    %43 = arith.maximumf %39, %42 : vector<20x128xf32>
    %44 = vector.extract_strided_slice %43 {offsets = [0, 0], sizes = [18, 128], strides = [1, 1]} : vector<20x128xf32> to vector<18x128xf32>
    %45 = vector.extract_strided_slice %43 {offsets = [1, 0], sizes = [18, 128], strides = [1, 1]} : vector<20x128xf32> to vector<18x128xf32>
    %46 = vector.extract_strided_slice %43 {offsets = [2, 0], sizes = [18, 128], strides = [1, 1]} : vector<20x128xf32> to vector<18x128xf32>
    %47 = tpu.concatenate %44, %45, %46 in 1 : vector<18x128xf32>, vector<18x128xf32>, vector<18x128xf32> -> vector<18x384xf32>
    %48 = arith.truncf %47 : vector<18x384xf32> to vector<18x384xbf16>
    %c0_21 = arith.constant 0 : index
    %c0_22 = arith.constant 0 : index
    %49 = vector.load %arg3[%c0_21, %c0_22] : memref<384x128xbf16, #tpu.memory_space<vmem>>, vector<384x128xbf16>
    %cst_23 = arith.constant dense<0.000000e+00> : vector<18x128xf32>
    %50 = tpu.matmul %48, %49, %cst_23 {dimension_numbers = #tpu.dot_dimension_numbers<[1], [0], [0], [1], [0, 0, 1, 1], [], []>} : vector<18x384xbf16>, vector<384x128xbf16>, vector<18x128xf32> -> vector<18x128xf32>
    %c0_24 = arith.constant 0 : index
    %c0_25 = arith.constant 0 : index
    %51 = vector.load %arg4[%c0_24, %c0_25] : memref<1x128xf32, #tpu.memory_space<vmem>>, vector<1x128xf32>
    %52 = vector.broadcast %51 : vector<1x128xf32> to vector<18x128xf32>
    %53 = arith.addf %50, %52 : vector<18x128xf32>
    %cst_26 = arith.constant 0.000000e+00 : f32
    %54 = vector.broadcast %cst_26 : f32 to vector<18x128xf32>
    %55 = arith.maximumf %53, %54 : vector<18x128xf32>
    %56 = vector.broadcast %41 : vector<18x1xf32> to vector<18x128xf32>
    %57 = arith.mulf %55, %56 : vector<18x128xf32>
    %58 = tpu.concatenate %40, %57, %40 in 0 : vector<1x128xf32>, vector<18x128xf32>, vector<1x128xf32> -> vector<20x128xf32>
    %59 = vector.extract_strided_slice %58 {offsets = [0, 0], sizes = [18, 128], strides = [1, 1]} : vector<20x128xf32> to vector<18x128xf32>
    %60 = vector.extract_strided_slice %58 {offsets = [1, 0], sizes = [18, 128], strides = [1, 1]} : vector<20x128xf32> to vector<18x128xf32>
    %61 = vector.extract_strided_slice %58 {offsets = [2, 0], sizes = [18, 128], strides = [1, 1]} : vector<20x128xf32> to vector<18x128xf32>
    %62 = tpu.concatenate %59, %60, %61 in 1 : vector<18x128xf32>, vector<18x128xf32>, vector<18x128xf32> -> vector<18x384xf32>
    %63 = arith.truncf %62 : vector<18x384xf32> to vector<18x384xbf16>
    %c0_27 = arith.constant 0 : index
    %c0_28 = arith.constant 0 : index
    %64 = vector.load %arg5[%c0_27, %c0_28] : memref<384x128xbf16, #tpu.memory_space<vmem>>, vector<384x128xbf16>
    %cst_29 = arith.constant dense<0.000000e+00> : vector<18x128xf32>
    %65 = tpu.matmul %63, %64, %cst_29 {dimension_numbers = #tpu.dot_dimension_numbers<[1], [0], [0], [1], [0, 0, 1, 1], [], []>} : vector<18x384xbf16>, vector<384x128xbf16>, vector<18x128xf32> -> vector<18x128xf32>
    %c0_30 = arith.constant 0 : index
    %c0_31 = arith.constant 0 : index
    %66 = vector.load %arg6[%c0_30, %c0_31] : memref<1x128xf32, #tpu.memory_space<vmem>>, vector<1x128xf32>
    %67 = vector.broadcast %66 : vector<1x128xf32> to vector<18x128xf32>
    %68 = arith.addf %65, %67 : vector<18x128xf32>
    %69 = vector.extract_strided_slice %39 {offsets = [1, 0], sizes = [18, 128], strides = [1, 1]} : vector<20x128xf32> to vector<18x128xf32>
    %70 = arith.addf %68, %69 : vector<18x128xf32>
    %71 = vector.broadcast %41 : vector<18x1xf32> to vector<18x128xf32>
    %72 = arith.mulf %70, %71 : vector<18x128xf32>
    %73 = tpu.concatenate %40, %72, %40 in 0 : vector<1x128xf32>, vector<18x128xf32>, vector<1x128xf32> -> vector<20x128xf32>
    %cst_32 = arith.constant 0.000000e+00 : f32
    %74 = vector.broadcast %cst_32 : f32 to vector<20x128xf32>
    %75 = arith.maximumf %73, %74 : vector<20x128xf32>
    %76 = vector.extract_strided_slice %75 {offsets = [0, 0], sizes = [18, 128], strides = [1, 1]} : vector<20x128xf32> to vector<18x128xf32>
    %77 = vector.extract_strided_slice %75 {offsets = [1, 0], sizes = [18, 128], strides = [1, 1]} : vector<20x128xf32> to vector<18x128xf32>
    %78 = vector.extract_strided_slice %75 {offsets = [2, 0], sizes = [18, 128], strides = [1, 1]} : vector<20x128xf32> to vector<18x128xf32>
    %79 = tpu.concatenate %76, %77, %78 in 1 : vector<18x128xf32>, vector<18x128xf32>, vector<18x128xf32> -> vector<18x384xf32>
    %80 = arith.truncf %79 : vector<18x384xf32> to vector<18x384xbf16>
    %c0_33 = arith.constant 0 : index
    %c0_34 = arith.constant 0 : index
    %81 = vector.load %arg7[%c0_33, %c0_34] : memref<384x128xbf16, #tpu.memory_space<vmem>>, vector<384x128xbf16>
    %cst_35 = arith.constant dense<0.000000e+00> : vector<18x128xf32>
    %82 = tpu.matmul %80, %81, %cst_35 {dimension_numbers = #tpu.dot_dimension_numbers<[1], [0], [0], [1], [0, 0, 1, 1], [], []>} : vector<18x384xbf16>, vector<384x128xbf16>, vector<18x128xf32> -> vector<18x128xf32>
    %c0_36 = arith.constant 0 : index
    %c0_37 = arith.constant 0 : index
    %83 = vector.load %arg8[%c0_36, %c0_37] : memref<1x128xf32, #tpu.memory_space<vmem>>, vector<1x128xf32>
    %84 = vector.broadcast %83 : vector<1x128xf32> to vector<18x128xf32>
    %85 = arith.addf %82, %84 : vector<18x128xf32>
    %cst_38 = arith.constant 0.000000e+00 : f32
    %86 = vector.broadcast %cst_38 : f32 to vector<18x128xf32>
    %87 = arith.maximumf %85, %86 : vector<18x128xf32>
    %88 = vector.broadcast %41 : vector<18x1xf32> to vector<18x128xf32>
    %89 = arith.mulf %87, %88 : vector<18x128xf32>
    %90 = tpu.concatenate %40, %89, %40 in 0 : vector<1x128xf32>, vector<18x128xf32>, vector<1x128xf32> -> vector<20x128xf32>
    %91 = vector.extract_strided_slice %90 {offsets = [0, 0], sizes = [18, 128], strides = [1, 1]} : vector<20x128xf32> to vector<18x128xf32>
    %92 = vector.extract_strided_slice %90 {offsets = [1, 0], sizes = [18, 128], strides = [1, 1]} : vector<20x128xf32> to vector<18x128xf32>
    %93 = vector.extract_strided_slice %90 {offsets = [2, 0], sizes = [18, 128], strides = [1, 1]} : vector<20x128xf32> to vector<18x128xf32>
    %94 = tpu.concatenate %91, %92, %93 in 1 : vector<18x128xf32>, vector<18x128xf32>, vector<18x128xf32> -> vector<18x384xf32>
    %95 = arith.truncf %94 : vector<18x384xf32> to vector<18x384xbf16>
    %c0_39 = arith.constant 0 : index
    %c0_40 = arith.constant 0 : index
    %96 = vector.load %arg9[%c0_39, %c0_40] : memref<384x128xbf16, #tpu.memory_space<vmem>>, vector<384x128xbf16>
    %cst_41 = arith.constant dense<0.000000e+00> : vector<18x128xf32>
    %97 = tpu.matmul %95, %96, %cst_41 {dimension_numbers = #tpu.dot_dimension_numbers<[1], [0], [0], [1], [0, 0, 1, 1], [], []>} : vector<18x384xbf16>, vector<384x128xbf16>, vector<18x128xf32> -> vector<18x128xf32>
    %c0_42 = arith.constant 0 : index
    %c0_43 = arith.constant 0 : index
    %98 = vector.load %arg10[%c0_42, %c0_43] : memref<1x128xf32, #tpu.memory_space<vmem>>, vector<1x128xf32>
    %99 = vector.broadcast %98 : vector<1x128xf32> to vector<18x128xf32>
    %100 = arith.addf %97, %99 : vector<18x128xf32>
    %101 = vector.extract_strided_slice %73 {offsets = [1, 0], sizes = [18, 128], strides = [1, 1]} : vector<20x128xf32> to vector<18x128xf32>
    %102 = arith.addf %100, %101 : vector<18x128xf32>
    %103 = vector.broadcast %41 : vector<18x1xf32> to vector<18x128xf32>
    %104 = arith.mulf %102, %103 : vector<18x128xf32>
    %105 = tpu.concatenate %40, %104, %40 in 0 : vector<1x128xf32>, vector<18x128xf32>, vector<1x128xf32> -> vector<20x128xf32>
    %106 = vector.extract_strided_slice %105 {offsets = [0, 0], sizes = [18, 128], strides = [1, 1]} : vector<20x128xf32> to vector<18x128xf32>
    %107 = vector.extract_strided_slice %105 {offsets = [1, 0], sizes = [18, 128], strides = [1, 1]} : vector<20x128xf32> to vector<18x128xf32>
    %108 = vector.extract_strided_slice %105 {offsets = [2, 0], sizes = [18, 128], strides = [1, 1]} : vector<20x128xf32> to vector<18x128xf32>
    %109 = tpu.concatenate %106, %107, %108 in 1 : vector<18x128xf32>, vector<18x128xf32>, vector<18x128xf32> -> vector<18x384xf32>
    %110 = arith.truncf %109 : vector<18x384xf32> to vector<18x384xbf16>
    %c0_44 = arith.constant 0 : index
    %c0_45 = arith.constant 0 : index
    %111 = vector.load %arg15[%c0_44, %c0_45] : memref<384x256xbf16, #tpu.memory_space<vmem>>, vector<384x256xbf16>
    %cst_46 = arith.constant dense<0.000000e+00> : vector<18x256xf32>
    %112 = tpu.matmul %110, %111, %cst_46 {dimension_numbers = #tpu.dot_dimension_numbers<[1], [0], [0], [1], [0, 0, 1, 1], [], []>} : vector<18x384xbf16>, vector<384x256xbf16>, vector<18x256xf32> -> vector<18x256xf32>
    %c0_47 = arith.constant 0 : index
    %c0_48 = arith.constant 0 : index
    %113 = vector.load %arg16[%c0_47, %c0_48] : memref<1x256xf32, #tpu.memory_space<vmem>>, vector<1x256xf32>
    %114 = vector.broadcast %113 : vector<1x256xf32> to vector<18x256xf32>
    %115 = arith.addf %112, %114 : vector<18x256xf32>
    %c0_49 = arith.constant 0 : index
    %c0_50 = arith.constant 0 : index
    %116 = vector.load %arg27[%c0_49, %c0_50] : memref<18x1xf32, #tpu.memory_space<vmem>>, vector<18x1xf32>
    %117 = vector.broadcast %116 : vector<18x1xf32> to vector<18x256xf32>
    %118 = arith.mulf %115, %117 : vector<18x256xf32>
    %cst_51 = arith.constant 1.000000e+00 : f32
    %119 = vector.broadcast %cst_51 : f32 to vector<18x1xf32>
    %120 = arith.subf %119, %116 : vector<18x1xf32>
    %cst_52 = arith.constant -1.000000e+30 : f32
    %121 = vector.broadcast %cst_52 : f32 to vector<18x1xf32>
    %122 = arith.mulf %121, %120 : vector<18x1xf32>
    %123 = vector.broadcast %122 : vector<18x1xf32> to vector<18x256xf32>
    %124 = arith.addf %118, %123 : vector<18x256xf32>
    %cst_53 = arith.constant -1.000000e+30 : f32
    %125 = vector.broadcast %cst_53 : f32 to vector<18x32xf32>
    %cst_54 = arith.constant -1.000000e+30 : f32
    %126 = vector.broadcast %cst_54 : f32 to vector<1x320xf32>
    %127 = tpu.concatenate %125, %124, %125 in 1 : vector<18x32xf32>, vector<18x256xf32>, vector<18x32xf32> -> vector<18x320xf32>
    %128 = tpu.concatenate %126, %127, %126 in 0 : vector<1x320xf32>, vector<18x320xf32>, vector<1x320xf32> -> vector<20x320xf32>
    %129 = vector.extract_strided_slice %128 {offsets = [0, 0], sizes = [18, 320], strides = [1, 1]} : vector<20x320xf32> to vector<18x320xf32>
    %130 = vector.extract_strided_slice %128 {offsets = [1, 0], sizes = [18, 320], strides = [1, 1]} : vector<20x320xf32> to vector<18x320xf32>
    %131 = arith.maximumf %129, %130 : vector<18x320xf32>
    %132 = vector.extract_strided_slice %128 {offsets = [2, 0], sizes = [18, 320], strides = [1, 1]} : vector<20x320xf32> to vector<18x320xf32>
    %133 = arith.maximumf %131, %132 : vector<18x320xf32>
    %134 = vector.extract_strided_slice %133 {offsets = [0, 0], sizes = [18, 256], strides = [1, 1]} : vector<18x320xf32> to vector<18x256xf32>
    %135 = vector.extract_strided_slice %133 {offsets = [0, 32], sizes = [18, 256], strides = [1, 1]} : vector<18x320xf32> to vector<18x256xf32>
    %136 = arith.maximumf %134, %135 : vector<18x256xf32>
    %137 = vector.extract_strided_slice %133 {offsets = [0, 64], sizes = [18, 256], strides = [1, 1]} : vector<18x320xf32> to vector<18x256xf32>
    %138 = arith.maximumf %136, %137 : vector<18x256xf32>
    %139 = arith.truncf %138 : vector<18x256xf32> to vector<18x256xbf16>
    %c0_55 = arith.constant 0 : index
    %c0_56 = arith.constant 0 : index
    %140 = vector.load %arg25[%c0_55, %c0_56] : memref<256x128xbf16, #tpu.memory_space<vmem>>, vector<256x128xbf16>
    %cst_57 = arith.constant dense<0.000000e+00> : vector<18x128xf32>
    %141 = tpu.matmul %139, %140, %cst_57 {dimension_numbers = #tpu.dot_dimension_numbers<[1], [0], [0], [1], [0, 0, 1, 1], [], []>} : vector<18x256xbf16>, vector<256x128xbf16>, vector<18x128xf32> -> vector<18x128xf32>
    %c0_58 = arith.constant 0 : index
    %c0_59 = arith.constant 0 : index
    %142 = vector.load %arg26[%c0_58, %c0_59] : memref<12x18xbf16, #tpu.memory_space<vmem>>, vector<12x18xbf16>
    %143 = arith.truncf %141 : vector<18x128xf32> to vector<18x128xbf16>
    %cst_60 = arith.constant dense<0.000000e+00> : vector<12x128xf32>
    %144 = tpu.matmul %142, %143, %cst_60 {dimension_numbers = #tpu.dot_dimension_numbers<[1], [0], [0], [1], [0, 0, 1, 1], [], []>} : vector<12x18xbf16>, vector<18x128xbf16>, vector<12x128xf32> -> vector<12x128xf32>
    %cst_61 = arith.constant 0.000000e+00 : f32
    %145 = vector.broadcast %cst_61 : f32 to vector<1x128xf32>
    %c0_62 = arith.constant 0 : index
    %c0_63 = arith.constant 0 : index
    %146 = vector.load %arg28[%c0_62, %c0_63] : memref<10x1xf32, #tpu.memory_space<vmem>>, vector<10x1xf32>
    %cst_64 = arith.constant 0.000000e+00 : f32
    %147 = vector.broadcast %cst_64 : f32 to vector<12x128xf32>
    %148 = arith.maximumf %144, %147 : vector<12x128xf32>
    %149 = vector.extract_strided_slice %148 {offsets = [0, 0], sizes = [10, 128], strides = [1, 1]} : vector<12x128xf32> to vector<10x128xf32>
    %150 = vector.extract_strided_slice %148 {offsets = [1, 0], sizes = [10, 128], strides = [1, 1]} : vector<12x128xf32> to vector<10x128xf32>
    %151 = vector.extract_strided_slice %148 {offsets = [2, 0], sizes = [10, 128], strides = [1, 1]} : vector<12x128xf32> to vector<10x128xf32>
    %152 = tpu.concatenate %149, %150, %151 in 1 : vector<10x128xf32>, vector<10x128xf32>, vector<10x128xf32> -> vector<10x384xf32>
    %153 = arith.truncf %152 : vector<10x384xf32> to vector<10x384xbf16>
    %c0_65 = arith.constant 0 : index
    %c0_66 = arith.constant 0 : index
    %154 = vector.load %arg17[%c0_65, %c0_66] : memref<384x128xbf16, #tpu.memory_space<vmem>>, vector<384x128xbf16>
    %cst_67 = arith.constant dense<0.000000e+00> : vector<10x128xf32>
    %155 = tpu.matmul %153, %154, %cst_67 {dimension_numbers = #tpu.dot_dimension_numbers<[1], [0], [0], [1], [0, 0, 1, 1], [], []>} : vector<10x384xbf16>, vector<384x128xbf16>, vector<10x128xf32> -> vector<10x128xf32>
    %c0_68 = arith.constant 0 : index
    %c0_69 = arith.constant 0 : index
    %156 = vector.load %arg18[%c0_68, %c0_69] : memref<1x128xf32, #tpu.memory_space<vmem>>, vector<1x128xf32>
    %157 = vector.broadcast %156 : vector<1x128xf32> to vector<10x128xf32>
    %158 = arith.addf %155, %157 : vector<10x128xf32>
    %cst_70 = arith.constant 0.000000e+00 : f32
    %159 = vector.broadcast %cst_70 : f32 to vector<10x128xf32>
    %160 = arith.maximumf %158, %159 : vector<10x128xf32>
    %161 = vector.broadcast %146 : vector<10x1xf32> to vector<10x128xf32>
    %162 = arith.mulf %160, %161 : vector<10x128xf32>
    %163 = tpu.concatenate %145, %162, %145 in 0 : vector<1x128xf32>, vector<10x128xf32>, vector<1x128xf32> -> vector<12x128xf32>
    %164 = vector.extract_strided_slice %163 {offsets = [0, 0], sizes = [10, 128], strides = [1, 1]} : vector<12x128xf32> to vector<10x128xf32>
    %165 = vector.extract_strided_slice %163 {offsets = [1, 0], sizes = [10, 128], strides = [1, 1]} : vector<12x128xf32> to vector<10x128xf32>
    %166 = vector.extract_strided_slice %163 {offsets = [2, 0], sizes = [10, 128], strides = [1, 1]} : vector<12x128xf32> to vector<10x128xf32>
    %167 = tpu.concatenate %164, %165, %166 in 1 : vector<10x128xf32>, vector<10x128xf32>, vector<10x128xf32> -> vector<10x384xf32>
    %168 = arith.truncf %167 : vector<10x384xf32> to vector<10x384xbf16>
    %c0_71 = arith.constant 0 : index
    %c0_72 = arith.constant 0 : index
    %169 = vector.load %arg19[%c0_71, %c0_72] : memref<384x128xbf16, #tpu.memory_space<vmem>>, vector<384x128xbf16>
    %cst_73 = arith.constant dense<0.000000e+00> : vector<10x128xf32>
    %170 = tpu.matmul %168, %169, %cst_73 {dimension_numbers = #tpu.dot_dimension_numbers<[1], [0], [0], [1], [0, 0, 1, 1], [], []>} : vector<10x384xbf16>, vector<384x128xbf16>, vector<10x128xf32> -> vector<10x128xf32>
    %c0_74 = arith.constant 0 : index
    %c0_75 = arith.constant 0 : index
    %171 = vector.load %arg20[%c0_74, %c0_75] : memref<1x128xf32, #tpu.memory_space<vmem>>, vector<1x128xf32>
    %172 = vector.broadcast %171 : vector<1x128xf32> to vector<10x128xf32>
    %173 = arith.addf %170, %172 : vector<10x128xf32>
    %174 = vector.extract_strided_slice %144 {offsets = [1, 0], sizes = [10, 128], strides = [1, 1]} : vector<12x128xf32> to vector<10x128xf32>
    %175 = arith.addf %173, %174 : vector<10x128xf32>
    %176 = vector.broadcast %146 : vector<10x1xf32> to vector<10x128xf32>
    %177 = arith.mulf %175, %176 : vector<10x128xf32>
    %178 = tpu.concatenate %145, %177, %145 in 0 : vector<1x128xf32>, vector<10x128xf32>, vector<1x128xf32> -> vector<12x128xf32>
    %cst_76 = arith.constant 0.000000e+00 : f32
    %179 = vector.broadcast %cst_76 : f32 to vector<12x128xf32>
    %180 = arith.maximumf %178, %179 : vector<12x128xf32>
    %181 = vector.extract_strided_slice %180 {offsets = [0, 0], sizes = [10, 128], strides = [1, 1]} : vector<12x128xf32> to vector<10x128xf32>
    %182 = vector.extract_strided_slice %180 {offsets = [1, 0], sizes = [10, 128], strides = [1, 1]} : vector<12x128xf32> to vector<10x128xf32>
    %183 = vector.extract_strided_slice %180 {offsets = [2, 0], sizes = [10, 128], strides = [1, 1]} : vector<12x128xf32> to vector<10x128xf32>
    %184 = tpu.concatenate %181, %182, %183 in 1 : vector<10x128xf32>, vector<10x128xf32>, vector<10x128xf32> -> vector<10x384xf32>
    %185 = arith.truncf %184 : vector<10x384xf32> to vector<10x384xbf16>
    %c0_77 = arith.constant 0 : index
    %c0_78 = arith.constant 0 : index
    %186 = vector.load %arg21[%c0_77, %c0_78] : memref<384x128xbf16, #tpu.memory_space<vmem>>, vector<384x128xbf16>
    %cst_79 = arith.constant dense<0.000000e+00> : vector<10x128xf32>
    %187 = tpu.matmul %185, %186, %cst_79 {dimension_numbers = #tpu.dot_dimension_numbers<[1], [0], [0], [1], [0, 0, 1, 1], [], []>} : vector<10x384xbf16>, vector<384x128xbf16>, vector<10x128xf32> -> vector<10x128xf32>
    %c0_80 = arith.constant 0 : index
    %c0_81 = arith.constant 0 : index
    %188 = vector.load %arg22[%c0_80, %c0_81] : memref<1x128xf32, #tpu.memory_space<vmem>>, vector<1x128xf32>
    %189 = vector.broadcast %188 : vector<1x128xf32> to vector<10x128xf32>
    %190 = arith.addf %187, %189 : vector<10x128xf32>
    %cst_82 = arith.constant 0.000000e+00 : f32
    %191 = vector.broadcast %cst_82 : f32 to vector<10x128xf32>
    %192 = arith.maximumf %190, %191 : vector<10x128xf32>
    %193 = vector.broadcast %146 : vector<10x1xf32> to vector<10x128xf32>
    %194 = arith.mulf %192, %193 : vector<10x128xf32>
    %195 = tpu.concatenate %145, %194, %145 in 0 : vector<1x128xf32>, vector<10x128xf32>, vector<1x128xf32> -> vector<12x128xf32>
    %196 = vector.extract_strided_slice %195 {offsets = [0, 0], sizes = [10, 128], strides = [1, 1]} : vector<12x128xf32> to vector<10x128xf32>
    %197 = vector.extract_strided_slice %195 {offsets = [1, 0], sizes = [10, 128], strides = [1, 1]} : vector<12x128xf32> to vector<10x128xf32>
    %198 = vector.extract_strided_slice %195 {offsets = [2, 0], sizes = [10, 128], strides = [1, 1]} : vector<12x128xf32> to vector<10x128xf32>
    %199 = tpu.concatenate %196, %197, %198 in 1 : vector<10x128xf32>, vector<10x128xf32>, vector<10x128xf32> -> vector<10x384xf32>
    %200 = arith.truncf %199 : vector<10x384xf32> to vector<10x384xbf16>
    %c0_83 = arith.constant 0 : index
    %c0_84 = arith.constant 0 : index
    %201 = vector.load %arg23[%c0_83, %c0_84] : memref<384x128xbf16, #tpu.memory_space<vmem>>, vector<384x128xbf16>
    %cst_85 = arith.constant dense<0.000000e+00> : vector<10x128xf32>
    %202 = tpu.matmul %200, %201, %cst_85 {dimension_numbers = #tpu.dot_dimension_numbers<[1], [0], [0], [1], [0, 0, 1, 1], [], []>} : vector<10x384xbf16>, vector<384x128xbf16>, vector<10x128xf32> -> vector<10x128xf32>
    %c0_86 = arith.constant 0 : index
    %c0_87 = arith.constant 0 : index
    %203 = vector.load %arg24[%c0_86, %c0_87] : memref<1x128xf32, #tpu.memory_space<vmem>>, vector<1x128xf32>
    %204 = vector.broadcast %203 : vector<1x128xf32> to vector<10x128xf32>
    %205 = arith.addf %202, %204 : vector<10x128xf32>
    %206 = vector.extract_strided_slice %178 {offsets = [1, 0], sizes = [10, 128], strides = [1, 1]} : vector<12x128xf32> to vector<10x128xf32>
    %207 = arith.addf %205, %206 : vector<10x128xf32>
    %208 = vector.broadcast %146 : vector<10x1xf32> to vector<10x128xf32>
    %209 = arith.mulf %207, %208 : vector<10x128xf32>
    %210 = tpu.concatenate %145, %209, %145 in 0 : vector<1x128xf32>, vector<10x128xf32>, vector<1x128xf32> -> vector<12x128xf32>
    %211 = vector.extract_strided_slice %210 {offsets = [0, 0], sizes = [10, 128], strides = [1, 1]} : vector<12x128xf32> to vector<10x128xf32>
    %212 = vector.extract_strided_slice %210 {offsets = [1, 0], sizes = [10, 128], strides = [1, 1]} : vector<12x128xf32> to vector<10x128xf32>
    %213 = vector.extract_strided_slice %210 {offsets = [2, 0], sizes = [10, 128], strides = [1, 1]} : vector<12x128xf32> to vector<10x128xf32>
    %214 = tpu.concatenate %211, %212, %213 in 1 : vector<10x128xf32>, vector<10x128xf32>, vector<10x128xf32> -> vector<10x384xf32>
    %215 = arith.truncf %214 : vector<10x384xf32> to vector<10x384xbf16>
    %c0_88 = arith.constant 0 : index
    %c0_89 = arith.constant 0 : index
    %216 = vector.load %arg29[%c0_88, %c0_89] : memref<384x128xbf16, #tpu.memory_space<vmem>>, vector<384x128xbf16>
    %cst_90 = arith.constant dense<0.000000e+00> : vector<10x128xf32>
    %217 = tpu.matmul %215, %216, %cst_90 {dimension_numbers = #tpu.dot_dimension_numbers<[1], [0], [0], [1], [0, 0, 1, 1], [], []>} : vector<10x384xbf16>, vector<384x128xbf16>, vector<10x128xf32> -> vector<10x128xf32>
    %c0_91 = arith.constant 0 : index
    %c0_92 = arith.constant 0 : index
    %218 = vector.load %arg30[%c0_91, %c0_92] : memref<1x128xf32, #tpu.memory_space<vmem>>, vector<1x128xf32>
    %219 = vector.broadcast %218 : vector<1x128xf32> to vector<10x128xf32>
    %220 = arith.addf %217, %219 : vector<10x128xf32>
    %c0_93 = arith.constant 0 : index
    %c0_94 = arith.constant 0 : index
    %221 = vector.load %arg41[%c0_93, %c0_94] : memref<10x1xf32, #tpu.memory_space<vmem>>, vector<10x1xf32>
    %222 = vector.broadcast %221 : vector<10x1xf32> to vector<10x128xf32>
    %223 = arith.mulf %220, %222 : vector<10x128xf32>
    %cst_95 = arith.constant 1.000000e+00 : f32
    %224 = vector.broadcast %cst_95 : f32 to vector<10x1xf32>
    %225 = arith.subf %224, %221 : vector<10x1xf32>
    %cst_96 = arith.constant -1.000000e+30 : f32
    %226 = vector.broadcast %cst_96 : f32 to vector<10x1xf32>
    %227 = arith.mulf %226, %225 : vector<10x1xf32>
    %228 = vector.broadcast %227 : vector<10x1xf32> to vector<10x128xf32>
    %229 = arith.addf %223, %228 : vector<10x128xf32>
    %cst_97 = arith.constant -1.000000e+30 : f32
    %230 = vector.broadcast %cst_97 : f32 to vector<10x32xf32>
    %cst_98 = arith.constant -1.000000e+30 : f32
    %231 = vector.broadcast %cst_98 : f32 to vector<1x192xf32>
    %232 = tpu.concatenate %230, %229, %230 in 1 : vector<10x32xf32>, vector<10x128xf32>, vector<10x32xf32> -> vector<10x192xf32>
    %233 = tpu.concatenate %231, %232, %231 in 0 : vector<1x192xf32>, vector<10x192xf32>, vector<1x192xf32> -> vector<12x192xf32>
    %234 = vector.extract_strided_slice %233 {offsets = [0, 0], sizes = [10, 192], strides = [1, 1]} : vector<12x192xf32> to vector<10x192xf32>
    %235 = vector.extract_strided_slice %233 {offsets = [1, 0], sizes = [10, 192], strides = [1, 1]} : vector<12x192xf32> to vector<10x192xf32>
    %236 = arith.maximumf %234, %235 : vector<10x192xf32>
    %237 = vector.extract_strided_slice %233 {offsets = [2, 0], sizes = [10, 192], strides = [1, 1]} : vector<12x192xf32> to vector<10x192xf32>
    %238 = arith.maximumf %236, %237 : vector<10x192xf32>
    %239 = vector.extract_strided_slice %238 {offsets = [0, 0], sizes = [10, 128], strides = [1, 1]} : vector<10x192xf32> to vector<10x128xf32>
    %240 = vector.extract_strided_slice %238 {offsets = [0, 32], sizes = [10, 128], strides = [1, 1]} : vector<10x192xf32> to vector<10x128xf32>
    %241 = arith.maximumf %239, %240 : vector<10x128xf32>
    %242 = vector.extract_strided_slice %238 {offsets = [0, 64], sizes = [10, 128], strides = [1, 1]} : vector<10x192xf32> to vector<10x128xf32>
    %243 = arith.maximumf %241, %242 : vector<10x128xf32>
    %244 = arith.truncf %243 : vector<10x128xf32> to vector<10x128xbf16>
    %c0_99 = arith.constant 0 : index
    %c0_100 = arith.constant 0 : index
    %245 = vector.load %arg39[%c0_99, %c0_100] : memref<128x64xbf16, #tpu.memory_space<vmem>>, vector<128x64xbf16>
    %cst_101 = arith.constant dense<0.000000e+00> : vector<10x64xf32>
    %246 = tpu.matmul %244, %245, %cst_101 {dimension_numbers = #tpu.dot_dimension_numbers<[1], [0], [0], [1], [0, 0, 1, 1], [], []>} : vector<10x128xbf16>, vector<128x64xbf16>, vector<10x64xf32> -> vector<10x64xf32>
    %c0_102 = arith.constant 0 : index
    %c0_103 = arith.constant 0 : index
    %247 = vector.load %arg40[%c0_102, %c0_103] : memref<8x10xbf16, #tpu.memory_space<vmem>>, vector<8x10xbf16>
    %248 = arith.truncf %246 : vector<10x64xf32> to vector<10x64xbf16>
    %cst_104 = arith.constant dense<0.000000e+00> : vector<8x64xf32>
    %249 = tpu.matmul %247, %248, %cst_104 {dimension_numbers = #tpu.dot_dimension_numbers<[1], [0], [0], [1], [0, 0, 1, 1], [], []>} : vector<8x10xbf16>, vector<10x64xbf16>, vector<8x64xf32> -> vector<8x64xf32>
    %cst_105 = arith.constant 0.000000e+00 : f32
    %250 = vector.broadcast %cst_105 : f32 to vector<1x64xf32>
    %c0_106 = arith.constant 0 : index
    %c0_107 = arith.constant 0 : index
    %251 = vector.load %arg42[%c0_106, %c0_107] : memref<6x1xf32, #tpu.memory_space<vmem>>, vector<6x1xf32>
    %cst_108 = arith.constant 0.000000e+00 : f32
    %252 = vector.broadcast %cst_108 : f32 to vector<8x64xf32>
    %253 = arith.maximumf %249, %252 : vector<8x64xf32>
    %254 = vector.extract_strided_slice %253 {offsets = [0, 0], sizes = [6, 64], strides = [1, 1]} : vector<8x64xf32> to vector<6x64xf32>
    %255 = vector.extract_strided_slice %253 {offsets = [1, 0], sizes = [6, 64], strides = [1, 1]} : vector<8x64xf32> to vector<6x64xf32>
    %256 = vector.extract_strided_slice %253 {offsets = [2, 0], sizes = [6, 64], strides = [1, 1]} : vector<8x64xf32> to vector<6x64xf32>
    %257 = tpu.concatenate %254, %255, %256 in 1 : vector<6x64xf32>, vector<6x64xf32>, vector<6x64xf32> -> vector<6x192xf32>
    %258 = arith.truncf %257 : vector<6x192xf32> to vector<6x192xbf16>
    %c0_109 = arith.constant 0 : index
    %c0_110 = arith.constant 0 : index
    %259 = vector.load %arg31[%c0_109, %c0_110] : memref<192x64xbf16, #tpu.memory_space<vmem>>, vector<192x64xbf16>
    %cst_111 = arith.constant dense<0.000000e+00> : vector<6x64xf32>
    %260 = tpu.matmul %258, %259, %cst_111 {dimension_numbers = #tpu.dot_dimension_numbers<[1], [0], [0], [1], [0, 0, 1, 1], [], []>} : vector<6x192xbf16>, vector<192x64xbf16>, vector<6x64xf32> -> vector<6x64xf32>
    %c0_112 = arith.constant 0 : index
    %c0_113 = arith.constant 0 : index
    %261 = vector.load %arg32[%c0_112, %c0_113] : memref<1x64xf32, #tpu.memory_space<vmem>>, vector<1x64xf32>
    %262 = vector.broadcast %261 : vector<1x64xf32> to vector<6x64xf32>
    %263 = arith.addf %260, %262 : vector<6x64xf32>
    %cst_114 = arith.constant 0.000000e+00 : f32
    %264 = vector.broadcast %cst_114 : f32 to vector<6x64xf32>
    %265 = arith.maximumf %263, %264 : vector<6x64xf32>
    %266 = vector.broadcast %251 : vector<6x1xf32> to vector<6x64xf32>
    %267 = arith.mulf %265, %266 : vector<6x64xf32>
    %268 = tpu.concatenate %250, %267, %250 in 0 : vector<1x64xf32>, vector<6x64xf32>, vector<1x64xf32> -> vector<8x64xf32>
    %269 = vector.extract_strided_slice %268 {offsets = [0, 0], sizes = [6, 64], strides = [1, 1]} : vector<8x64xf32> to vector<6x64xf32>
    %270 = vector.extract_strided_slice %268 {offsets = [1, 0], sizes = [6, 64], strides = [1, 1]} : vector<8x64xf32> to vector<6x64xf32>
    %271 = vector.extract_strided_slice %268 {offsets = [2, 0], sizes = [6, 64], strides = [1, 1]} : vector<8x64xf32> to vector<6x64xf32>
    %272 = tpu.concatenate %269, %270, %271 in 1 : vector<6x64xf32>, vector<6x64xf32>, vector<6x64xf32> -> vector<6x192xf32>
    %273 = arith.truncf %272 : vector<6x192xf32> to vector<6x192xbf16>
    %c0_115 = arith.constant 0 : index
    %c0_116 = arith.constant 0 : index
    %274 = vector.load %arg33[%c0_115, %c0_116] : memref<192x64xbf16, #tpu.memory_space<vmem>>, vector<192x64xbf16>
    %cst_117 = arith.constant dense<0.000000e+00> : vector<6x64xf32>
    %275 = tpu.matmul %273, %274, %cst_117 {dimension_numbers = #tpu.dot_dimension_numbers<[1], [0], [0], [1], [0, 0, 1, 1], [], []>} : vector<6x192xbf16>, vector<192x64xbf16>, vector<6x64xf32> -> vector<6x64xf32>
    %c0_118 = arith.constant 0 : index
    %c0_119 = arith.constant 0 : index
    %276 = vector.load %arg34[%c0_118, %c0_119] : memref<1x64xf32, #tpu.memory_space<vmem>>, vector<1x64xf32>
    %277 = vector.broadcast %276 : vector<1x64xf32> to vector<6x64xf32>
    %278 = arith.addf %275, %277 : vector<6x64xf32>
    %279 = vector.extract_strided_slice %249 {offsets = [1, 0], sizes = [6, 64], strides = [1, 1]} : vector<8x64xf32> to vector<6x64xf32>
    %280 = arith.addf %278, %279 : vector<6x64xf32>
    %281 = vector.broadcast %251 : vector<6x1xf32> to vector<6x64xf32>
    %282 = arith.mulf %280, %281 : vector<6x64xf32>
    %283 = tpu.concatenate %250, %282, %250 in 0 : vector<1x64xf32>, vector<6x64xf32>, vector<1x64xf32> -> vector<8x64xf32>
    %cst_120 = arith.constant 0.000000e+00 : f32
    %284 = vector.broadcast %cst_120 : f32 to vector<8x64xf32>
    %285 = arith.maximumf %283, %284 : vector<8x64xf32>
    %286 = vector.extract_strided_slice %285 {offsets = [0, 0], sizes = [6, 64], strides = [1, 1]} : vector<8x64xf32> to vector<6x64xf32>
    %287 = vector.extract_strided_slice %285 {offsets = [1, 0], sizes = [6, 64], strides = [1, 1]} : vector<8x64xf32> to vector<6x64xf32>
    %288 = vector.extract_strided_slice %285 {offsets = [2, 0], sizes = [6, 64], strides = [1, 1]} : vector<8x64xf32> to vector<6x64xf32>
    %289 = tpu.concatenate %286, %287, %288 in 1 : vector<6x64xf32>, vector<6x64xf32>, vector<6x64xf32> -> vector<6x192xf32>
    %290 = arith.truncf %289 : vector<6x192xf32> to vector<6x192xbf16>
    %c0_121 = arith.constant 0 : index
    %c0_122 = arith.constant 0 : index
    %291 = vector.load %arg35[%c0_121, %c0_122] : memref<192x64xbf16, #tpu.memory_space<vmem>>, vector<192x64xbf16>
    %cst_123 = arith.constant dense<0.000000e+00> : vector<6x64xf32>
    %292 = tpu.matmul %290, %291, %cst_123 {dimension_numbers = #tpu.dot_dimension_numbers<[1], [0], [0], [1], [0, 0, 1, 1], [], []>} : vector<6x192xbf16>, vector<192x64xbf16>, vector<6x64xf32> -> vector<6x64xf32>
    %c0_124 = arith.constant 0 : index
    %c0_125 = arith.constant 0 : index
    %293 = vector.load %arg36[%c0_124, %c0_125] : memref<1x64xf32, #tpu.memory_space<vmem>>, vector<1x64xf32>
    %294 = vector.broadcast %293 : vector<1x64xf32> to vector<6x64xf32>
    %295 = arith.addf %292, %294 : vector<6x64xf32>
    %cst_126 = arith.constant 0.000000e+00 : f32
    %296 = vector.broadcast %cst_126 : f32 to vector<6x64xf32>
    %297 = arith.maximumf %295, %296 : vector<6x64xf32>
    %298 = vector.broadcast %251 : vector<6x1xf32> to vector<6x64xf32>
    %299 = arith.mulf %297, %298 : vector<6x64xf32>
    %300 = tpu.concatenate %250, %299, %250 in 0 : vector<1x64xf32>, vector<6x64xf32>, vector<1x64xf32> -> vector<8x64xf32>
    %301 = vector.extract_strided_slice %300 {offsets = [0, 0], sizes = [6, 64], strides = [1, 1]} : vector<8x64xf32> to vector<6x64xf32>
    %302 = vector.extract_strided_slice %300 {offsets = [1, 0], sizes = [6, 64], strides = [1, 1]} : vector<8x64xf32> to vector<6x64xf32>
    %303 = vector.extract_strided_slice %300 {offsets = [2, 0], sizes = [6, 64], strides = [1, 1]} : vector<8x64xf32> to vector<6x64xf32>
    %304 = tpu.concatenate %301, %302, %303 in 1 : vector<6x64xf32>, vector<6x64xf32>, vector<6x64xf32> -> vector<6x192xf32>
    %305 = arith.truncf %304 : vector<6x192xf32> to vector<6x192xbf16>
    %c0_127 = arith.constant 0 : index
    %c0_128 = arith.constant 0 : index
    %306 = vector.load %arg37[%c0_127, %c0_128] : memref<192x64xbf16, #tpu.memory_space<vmem>>, vector<192x64xbf16>
    %cst_129 = arith.constant dense<0.000000e+00> : vector<6x64xf32>
    %307 = tpu.matmul %305, %306, %cst_129 {dimension_numbers = #tpu.dot_dimension_numbers<[1], [0], [0], [1], [0, 0, 1, 1], [], []>} : vector<6x192xbf16>, vector<192x64xbf16>, vector<6x64xf32> -> vector<6x64xf32>
    %c0_130 = arith.constant 0 : index
    %c0_131 = arith.constant 0 : index
    %308 = vector.load %arg38[%c0_130, %c0_131] : memref<1x64xf32, #tpu.memory_space<vmem>>, vector<1x64xf32>
    %309 = vector.broadcast %308 : vector<1x64xf32> to vector<6x64xf32>
    %310 = arith.addf %307, %309 : vector<6x64xf32>
    %311 = vector.extract_strided_slice %283 {offsets = [1, 0], sizes = [6, 64], strides = [1, 1]} : vector<8x64xf32> to vector<6x64xf32>
    %312 = arith.addf %310, %311 : vector<6x64xf32>
    %313 = vector.broadcast %251 : vector<6x1xf32> to vector<6x64xf32>
    %314 = arith.mulf %312, %313 : vector<6x64xf32>
    %315 = tpu.concatenate %250, %314, %250 in 0 : vector<1x64xf32>, vector<6x64xf32>, vector<1x64xf32> -> vector<8x64xf32>
    %316 = vector.extract_strided_slice %315 {offsets = [1, 0], sizes = [1, 64], strides = [1, 1]} : vector<8x64xf32> to vector<1x64xf32>
    %cst_132 = arith.constant 0.000000e+00 : f32
    %317 = vector.broadcast %cst_132 : f32 to vector<1x64xf32>
    %318 = arith.maximumf %316, %317 : vector<1x64xf32>
    %319 = vector.extract_strided_slice %315 {offsets = [2, 0], sizes = [1, 64], strides = [1, 1]} : vector<8x64xf32> to vector<1x64xf32>
    %cst_133 = arith.constant 0.000000e+00 : f32
    %320 = vector.broadcast %cst_133 : f32 to vector<1x64xf32>
    %321 = arith.maximumf %319, %320 : vector<1x64xf32>
    %322 = tpu.concatenate %318, %321 in 1 : vector<1x64xf32>, vector<1x64xf32> -> vector<1x128xf32>
    %323 = vector.extract_strided_slice %315 {offsets = [5, 0], sizes = [1, 64], strides = [1, 1]} : vector<8x64xf32> to vector<1x64xf32>
    %cst_134 = arith.constant 0.000000e+00 : f32
    %324 = vector.broadcast %cst_134 : f32 to vector<1x64xf32>
    %325 = arith.maximumf %323, %324 : vector<1x64xf32>
    %326 = vector.extract_strided_slice %315 {offsets = [6, 0], sizes = [1, 64], strides = [1, 1]} : vector<8x64xf32> to vector<1x64xf32>
    %cst_135 = arith.constant 0.000000e+00 : f32
    %327 = vector.broadcast %cst_135 : f32 to vector<1x64xf32>
    %328 = arith.maximumf %326, %327 : vector<1x64xf32>
    %329 = tpu.concatenate %325, %328 in 1 : vector<1x64xf32>, vector<1x64xf32> -> vector<1x128xf32>
    %330 = tpu.concatenate %322, %329 in 0 : vector<1x128xf32>, vector<1x128xf32> -> vector<2x128xf32>
    tpu.wait_dma2 semaphore(%arg50 : memref<!tpu.dma_semaphore, #tpu.memory_space<semaphore_mem>>) src(%arg45 : memref<384x1024xbf16, #tpu.memory_space<any>>) dst(%arg49 : memref<384x1024xbf16, #tpu.memory_space<vmem>>)
    %c0_136 = arith.constant 0 : index
    %c0_137 = arith.constant 0 : index
    %331 = vector.load %arg43[%c0_136, %c0_137] : memref<2x256xf32, #tpu.memory_space<vmem>>, vector<2x256xf32>
    %332 = tpu.concatenate %330, %331 in 1 : vector<2x128xf32>, vector<2x256xf32> -> vector<2x384xf32>
    %333 = arith.truncf %332 : vector<2x384xf32> to vector<2x384xbf16>
    %c0_138 = arith.constant 0 : index
    %c0_139 = arith.constant 0 : index
    %334 = vector.load %arg49[%c0_138, %c0_139] : memref<384x1024xbf16, #tpu.memory_space<vmem>>, vector<384x1024xbf16>
    %cst_140 = arith.constant dense<0.000000e+00> : vector<2x1024xf32>
    %335 = tpu.matmul %333, %334, %cst_140 {dimension_numbers = #tpu.dot_dimension_numbers<[1], [0], [0], [1], [0, 0, 1, 1], [], []>} : vector<2x384xbf16>, vector<384x1024xbf16>, vector<2x1024xf32> -> vector<2x1024xf32>
    %c0_141 = arith.constant 0 : index
    %c0_142 = arith.constant 0 : index
    %336 = vector.load %arg46[%c0_141, %c0_142] : memref<1x1024xf32, #tpu.memory_space<vmem>>, vector<1x1024xf32>
    %337 = vector.broadcast %336 : vector<1x1024xf32> to vector<2x1024xf32>
    %338 = arith.addf %335, %337 : vector<2x1024xf32>
    %339 = vector.extract_strided_slice %338 {offsets = [0, 0], sizes = [2, 256], strides = [1, 1]} : vector<2x1024xf32> to vector<2x256xf32>
    %340 = arith.negf %339 : vector<2x256xf32>
    %341 = math.exp %340 : vector<2x256xf32>
    %cst_143 = arith.constant 1.000000e+00 : f32
    %342 = vector.broadcast %cst_143 : f32 to vector<2x256xf32>
    %343 = arith.addf %342, %341 : vector<2x256xf32>
    %344 = arith.divf %342, %343 : vector<2x256xf32>
    %345 = vector.extract_strided_slice %338 {offsets = [0, 256], sizes = [2, 256], strides = [1, 1]} : vector<2x1024xf32> to vector<2x256xf32>
    %346 = arith.negf %345 : vector<2x256xf32>
    %347 = math.exp %346 : vector<2x256xf32>
    %cst_144 = arith.constant 1.000000e+00 : f32
    %348 = vector.broadcast %cst_144 : f32 to vector<2x256xf32>
    %349 = arith.addf %348, %347 : vector<2x256xf32>
    %350 = arith.divf %348, %349 : vector<2x256xf32>
    %351 = vector.extract_strided_slice %338 {offsets = [0, 512], sizes = [2, 256], strides = [1, 1]} : vector<2x1024xf32> to vector<2x256xf32>
    %352 = math.tanh %351 : vector<2x256xf32>
    %353 = vector.extract_strided_slice %338 {offsets = [0, 768], sizes = [2, 256], strides = [1, 1]} : vector<2x1024xf32> to vector<2x256xf32>
    %354 = arith.negf %353 : vector<2x256xf32>
    %355 = math.exp %354 : vector<2x256xf32>
    %cst_145 = arith.constant 1.000000e+00 : f32
    %356 = vector.broadcast %cst_145 : f32 to vector<2x256xf32>
    %357 = arith.addf %356, %355 : vector<2x256xf32>
    %358 = arith.divf %356, %357 : vector<2x256xf32>
    %c0_146 = arith.constant 0 : index
    %c0_147 = arith.constant 0 : index
    %359 = vector.load %arg44[%c0_146, %c0_147] : memref<2x256xf32, #tpu.memory_space<vmem>>, vector<2x256xf32>
    %360 = arith.mulf %350, %359 : vector<2x256xf32>
    %361 = arith.mulf %344, %352 : vector<2x256xf32>
    %362 = arith.addf %360, %361 : vector<2x256xf32>
    %363 = math.tanh %362 : vector<2x256xf32>
    %364 = arith.mulf %358, %363 : vector<2x256xf32>
    %c0_148 = arith.constant 0 : index
    %c0_149 = arith.constant 0 : index
    %365 = vector.load %arg47[%c0_148, %c0_149] : memref<2x256xf32, #tpu.memory_space<vmem>>, vector<2x256xf32>
    tpu.vector_store %arg47[%c0_148, %c0_149], %364 {strides = array<i32>} : memref<2x256xf32, #tpu.memory_space<vmem>>, vector<2x256xf32>,
    %c0_150 = arith.constant 0 : index
    %c0_151 = arith.constant 0 : index
    %366 = vector.load %arg48[%c0_150, %c0_151] : memref<2x256xf32, #tpu.memory_space<vmem>>, vector<2x256xf32>
    tpu.vector_store %arg48[%c0_150, %c0_151], %362 {strides = array<i32>} : memref<2x256xf32, #tpu.memory_space<vmem>>, vector<2x256xf32>,
    return
  }
}

</mosaic_0001>

<bundles_post_ra>
// kernel: forward.1
= control target key start
LH: loop header
LB: loop body
LE: loop exit
PB: predicated region body
PF: predicated region fallthrough
CT: control target
= control target key end

     0   :  { %s9545_s6 = smov 1   ;;  %s9546_s10 = smov 2   ;;  %s11126_s0 = inlined_call_operand.smem [shape: u32[49], index: -1, kind: input, shape index: {}] }
   0x1   :  { %s9644_s5 = sld [smem:[%s11126_s0]]   ;;  %s9547_s14 = smov 3  }
   0x2   :  { %s9649_s9 = sld [smem:[%s11126_s0 + %s9545_s6]]   ;;  %s9548_s18 = smov 4  }
   0x3   :  { %s9654_s13 = sld [smem:[%s11126_s0 + %s9546_s10]]   ;;  %s9549_s22 = smov 5  }
   0x4   :  { %s9659_s17 = sld [smem:[%s11126_s0 + %s9547_s14]]   ;;  %s9550_s26 = smov 6  }
   0x5   :  { %s9664_s21 = sld [smem:[%s11126_s0 + %s9548_s18]]   ;;  %s9551_s30 = smov 7  }
   0x6   :  { %s9669_s25 = sld [smem:[%s11126_s0 + %s9549_s22]]   ;;  %s9552_s4 = smov 8  }
   0x7   :  { %11154 = sst [smem:[#allocation60_spill]] %s9644_s5  ;;  %s9553_s10 = smov 9  }
   0x8   :  { %11155 = sst [smem:[#allocation61_spill]] %s9649_s9  ;;  %s9554_s15 = smov 10  }
   0x9   :  { %11156 = sst [smem:[#allocation62_spill]] %s9654_s13  ;;  %s9555_s20 = smov 11  }
   0xa   :  { %11157 = sst [smem:[#allocation63_spill]] %s9659_s17  ;;  %s9557_s1 = smov 13  }
   0xb   :  { %s9674_s29 = sld [smem:[%s11126_s0 + %s9550_s26]]   ;;  %s9556_s26 = smov 12  }
   0xc   :  { %11158 = sst [smem:[#allocation64_spill]] %s9669_s25  ;;  %s9558_s7 = smov 14  }
   0xd   :  { %s9679_s3 = sld [smem:[%s11126_s0 + %s9551_s30]]   ;;  %s9560_s22 = smov 16  }
   0xe   :  { %s9684_s8 = sld [smem:[%s11126_s0 + %s9552_s4]]   ;;  %s9561_s28 = smov 17  }
   0xf   :  { %s9689_s14 = sld [smem:[%s11126_s0 + %s9553_s10]]  }
  0x10   :  { %s9694_s19 = sld [smem:[%s11126_s0 + %s9554_s15]]   ;;  %s9559_s15 = smov 15  }
  0x11   :  { %s9699_s24 = sld [smem:[%s11126_s0 + %s9555_s20]]  }
  0x12   :  { %s9704_s30 = sld [smem:[%s11126_s0 + %s9556_s26]]  }
  0x13   :  { %11159 = sst [smem:[#allocation65_spill]] %s9679_s3 }
  0x14   :  { %s9709_s6 = sld [smem:[%s11126_s0 + %s9557_s1]]  }
  0x15   :  { %11160 = sst [smem:[#allocation66_spill]] %s9689_s14 }
  0x16   :  { %s9714_s12 = sld [smem:[%s11126_s0 + %s9558_s7]]   ;;  %s9562_s7 = smov 18  }
  0x17   :  { %11161 = sst [smem:[#allocation67_spill]] %s9699_s24 }
  0x18   :  { %s9719_s20 = sld [smem:[%s11126_s0 + %s9559_s15]]   ;;  %s9563_s15 = smov 19  }
  0x19   :  { %s9724_s27 = sld [smem:[%s11126_s0 + %s9560_s22]]   ;;  %s9564_s22 = smov 20  }
  0x1a   :  { %11162 = sst [smem:[#allocation68_spill]] %s9709_s6 }
  0x1b   :  { %s9729_s4 = sld [smem:[%s11126_s0 + %s9561_s28]]   ;;  %s9565_s28 = smov 21  }
  0x1c   :  { %11163 = sst [smem:[#allocation69_spill]] %s9714_s12 }
  0x1d   :  { %s9734_s14 = sld [smem:[%s11126_s0 + %s9562_s7]]   ;;  %s9566_s7 = smov 22  }
  0x1e   :  { %11164 = sst [smem:[#allocation70_spill]] %s9719_s20 }
  0x1f   :  { %s9739_s20 = sld [smem:[%s11126_s0 + %s9563_s15]]   ;;  %s9567_s15 = smov 23  }
  0x20   :  { %s9744_s3 = sld [smem:[%s11126_s0 + %s9564_s22]]   ;;  %s9568_s22 = smov 24  }
  0x21   :  { %11165 = sst [smem:[#allocation71_spill]] %s9729_s4 }
  0x22   :  { %s9749_s25 = sld [smem:[%s11126_s0 + %s9565_s28]]   ;;  %s9569_s28 = smov 25  }
  0x23   :  { %s9754_s17 = sld [smem:[%s11126_s0 + %s9566_s7]]   ;;  %s9570_s7 = smov 26  }
  0x24   :  { %s9759_s12 = sld [smem:[%s11126_s0 + %s9567_s15]]   ;;  %s9571_s15 = smov 27  }
  0x25   :  { %11166 = sst [smem:[#allocation72_spill]] %s9739_s20 }
  0x26   :  { %s9764_s24 = sld [smem:[%s11126_s0 + %s9568_s22]]   ;;  %s9572_s22 = smov 28  }
  0x27   :  { %s9769_s13 = sld [smem:[%s11126_s0 + %s9569_s28]]   ;;  %s9573_s28 = smov 29  }
  0x28   :  { %11167 = sst [smem:[#allocation73_spill]] %s9749_s25 }
  0x29   :  { %s9774_s6 = sld [smem:[%s11126_s0 + %s9570_s7]]   ;;  %s9574_s7 = smov 30  }
  0x2a   :  { %11168 = sst [smem:[#allocation74_spill]] %s9759_s12 }
  0x2b   :  { %s9779_s9 = sld [smem:[%s11126_s0 + %s9571_s15]]   ;;  %s9575_s15 = smov 31  }
  0x2c   :  { %s9784_s5 = sld [smem:[%s11126_s0 + %s9572_s22]]   ;;  %s9576_s22 = smov 32  }
  0x2d   :  { %11169 = sst [smem:[#allocation75_spill]] %s9769_s13 }
  0x2e   :  { %s9789_s13 = sld [smem:[%s11126_s0 + %s9573_s28]]   ;;  %s9577_s28 = smov 33  }
  0x2f   :  { %s9794_s12 = sld [smem:[%s11126_s0 + %s9574_s7]]   ;;  %s9578_s7 = smov 34  }
  0x30   :  { %s9814_s25 = sld [smem:[%s11126_s0 + %s9578_s7]]   ;;  %s9582_s7 = smov 38  }
  0x31   :  { %11170 = sst [smem:[#allocation76_spill]] %s9779_s9 }
  0x32   :  { %11171 = sst [smem:[#allocation77_spill]] %s9784_s5 }
  0x33   :  { %s9799_s9 = sld [smem:[%s11126_s0 + %s9575_s15]]   ;;  %s9579_s15 = smov 35  }
  0x34   :  { %11172 = sst [smem:[#allocation78_spill]] %s9789_s13 }
  0x35   :  { %s9804_s5 = sld [smem:[%s11126_s0 + %s9576_s22]]   ;;  %s9580_s22 = smov 36  }
  0x36   :  { %s9809_s13 = sld [smem:[%s11126_s0 + %s9577_s28]]   ;;  %s9581_s28 = smov 37  }
  0x37   :  { %s9834_s20 = sld [smem:[%s11126_s0 + %s9582_s7]]   ;;  %s9586_s7 = smov 42  }
  0x38   :  { %s9854_s4 = sld [smem:[%s11126_s0 + %s9586_s7]]   ;;  %s9590_s7 = smov 46  }
  0x39   :  { %11173 = sst [smem:[#allocation79_spill]] %s9799_s9 }
  0x3a   :  { %s9819_s9 = sld [smem:[%s11126_s0 + %s9579_s15]]   ;;  %s9583_s15 = smov 39  }
  0x3b   :  { %11174 = sst [smem:[#allocation80_spill]] %s9804_s5 }
  0x3c   :  { %11175 = sst [smem:[#allocation81_spill]] %s9809_s13 }
  0x3d   :  { %s9824_s5 = sld [smem:[%s11126_s0 + %s9580_s22]]   ;;  %s9584_s22 = smov 40  }
  0x3e   :  { %s9829_s13 = sld [smem:[%s11126_s0 + %s9581_s28]]   ;;  %s9585_s28 = smov 41  }
  0x3f   :  { %11182 = sst [smem:[#allocation88_spill]] %s9854_s4 }
  0x40   :  { %11176 = sst [smem:[#allocation82_spill]] %s9819_s9 }
  0x41   :  { %s9839_s9 = sld [smem:[%s11126_s0 + %s9583_s15]]   ;;  %s9587_s15 = smov 43  }
  0x42   :  { %s9874_s4 = sld [smem:[%s11126_s0 + %s9590_s7]]  }
  0x43   :  { %11177 = sst [smem:[#allocation83_spill]] %s9824_s5 }
  0x44   :  { %11178 = sst [smem:[#allocation84_spill]] %s9829_s13 }
  0x45   :  { %s9844_s5 = sld [smem:[%s11126_s0 + %s9584_s22]]   ;;  %s9588_s22 = smov 44  }
  0x46   :  { %s9849_s13 = sld [smem:[%s11126_s0 + %s9585_s28]]   ;;  %s9589_s28 = smov 45  }
  0x47   :  { %11179 = sst [smem:[#allocation85_spill]] %s9839_s9 }
  0x48   :  { %s9859_s9 = sld [smem:[%s11126_s0 + %s9587_s15]]   ;;  %s9591_s15 = smov 47  }
  0x4b   :  { %11180 = sst [smem:[#allocation86_spill]] %s9844_s5 }
  0x4c   :  { %11181 = sst [smem:[#allocation87_spill]] %s9849_s13 }
  0x4d   :  { %s9864_s5 = sld [smem:[%s11126_s0 + %s9588_s22]]   ;;  %s9592_s22 = smov 48  }
  0x4e   :  { %11183 = sst [smem:[#allocation89_spill]] %s9859_s9 }
  0x4f   :  { %s9869_s13 = sld [smem:[%s11126_s0 + %s9589_s28]]  }
  0x50   :  { %s9879_s9 = sld [smem:[%s11126_s0 + %s9591_s15]]  }
  0x53   :  { %11184 = sst [smem:[#allocation90_spill]] %s9864_s5 }
  0x54   :  { %s9884_s5 = sld [smem:[%s11126_s0 + %s9592_s22]]  }
  0x55   :  { %103 = vsyncpa [#allocation5], 0 }
  0x56   :  { %104 = vsyncpa [#allocation8], 0 }
  0x57   :  { %105 = vsyncpa [#allocation11], 0 }
  0x58   :  { %106 = vsyncpa [#allocation14], 0 }
  0x59   :  { %107 = vsyncpa [#allocation17], 0 }
  0x5a   :  { %108 = vsyncpa [#allocation20], 0 }
  0x5b   :  { %109 = vsyncpa [#allocation23], 0 }
  0x5c   :  { %110 = vsyncpa [#allocation26], 0 }
  0x5d   :  { %111 = vsyncpa [#allocation29], 0 }
  0x5e   :  { %112 = vsyncpa [#allocation32], 0 }
  0x5f   :  { %113 = vsyncpa [#allocation35], 0 }
  0x60   :  { %114 = vsyncpa [#allocation38], 0 }
  0x61   :  { %115 = vsyncpa [#allocation41], 0 }
  0x62   :  { %116 = vsyncpa [#allocation6], 0  ;;  %s9593_s28 = smov [#allocation7]   ;;  %s9594_s1 = smov [#allocation10]  }
  0x63   :  { %s143_s0 = sshll.u32 %s9593_s28, 4  ;;  %s167_s2 = sshll.u32 %s9594_s1, 4  ;;  %s144_s0 = int_to_ptr.vmem [resolvable:$true] %s143_s0  ;;  %s168_s2 = int_to_ptr.vmem [resolvable:$true] %s167_s2 }
  0x64   :  { %s8965_s7 = scalar_lea.hbm %s9674_s29, 16 }
  0x65   :  { %p8966_p0 = scmp.ne.s32.totalorder %s9674_s29, %s8965_s7  ;;  %p8969_p1 = scmp.lt.u32.totalorder %s8965_s7, %s9674_s29 }
  0x67   :  { %p8971_p2 = pnand %p8969_p1, %p8966_p0 }
  0x69   :  { %8974 = shalt.err (!%p8971_p2)
}
  0x6a   :  { %s8975_s10 = scalar_lea.vmem %s144_s0, 16  ;;  %s8979_s11 = scalar_lea.vmem %s144_s0, 32 }
  0x6b   :  { %p8976_p3 = scmp.ne.s32.totalorder %s144_s0, %s8975_s10  ;;  %p8980_p4 = scmp.lt.s32.totalorder %s144_s0, %s144_s0 }
  0x6c   :  { %p8981_p5 = scmp.lt.s32.totalorder %s8979_s11, %s8975_s10 }
  0x6e   :  { %p8982_p6 = por %p8981_p5, %p8980_p4 }
  0x70   :  { %p8983_p7 = pnand %p8982_p6, %p8976_p3 }
  0x72   :  { %8986 = shalt.err (!%p8983_p7)
}
  0x73   :  { %146 = dma.hbm_to_vmem [thread:$0]  %s9674_s29, 16, %s144_s0, [#allocation8]  }
  0x74   :  { %s8987_s15 = scalar_lea.hbm %s9694_s19, 16 }
  0x75   :  { %p8988_p8 = scmp.ne.s32.totalorder %s9694_s19, %s8987_s15  ;;  %p8991_p9 = scmp.lt.u32.totalorder %s8987_s15, %s9694_s19 }
  0x77   :  { %p8993_p10 = pnand %p8991_p9, %p8988_p8 }
  0x79   :  { %8996 = shalt.err (!%p8993_p10)
}
  0x7a   :  { %s8997_s16 = scalar_lea.vmem %s168_s2, 16  ;;  %s9001_s18 = scalar_lea.vmem %s168_s2, 32 }
  0x7b   :  { %p8998_p11 = scmp.ne.s32.totalorder %s168_s2, %s8997_s16  ;;  %p9002_p12 = scmp.lt.s32.totalorder %s168_s2, %s168_s2 }
  0x7c   :  { %p9003_p13 = scmp.lt.s32.totalorder %s9001_s18, %s8997_s16 }
  0x7e   :  { %p9004_p0 = por %p9003_p13, %p9002_p12 }
  0x80   :  { %p9005_p1 = pnand %p9004_p0, %p8998_p11 }
  0x82   :  { %9008 = shalt.err (!%p9005_p1)
}
  0x83   :  { %170 = dma.hbm_to_vmem [thread:$0]  %s9694_s19, 16, %s168_s2, [#allocation11]  }
  0x84   :  { %s9595_s22 = smov [#allocation13]   ;;  %s9596_s23 = smov [#allocation16]  }
  0x85   :  { %s197_s29 = sshll.u32 %s9595_s22, 4  ;;  %s219_s26 = sshll.u32 %s9596_s23, 4  ;;  %s198_s29 = int_to_ptr.vmem [resolvable:$true] %s197_s29  ;;  %s220_s26 = int_to_ptr.vmem [resolvable:$true] %s219_s26 }
  0x86   :  { %s9009_s28 = scalar_lea.hbm %s9724_s27, 32 }
  0x87   :  { %p9010_p2 = scmp.ne.s32.totalorder %s9724_s27, %s9009_s28  ;;  %p9013_p3 = scmp.lt.u32.totalorder %s9009_s28, %s9724_s27 }
  0x89   :  { %p9015_p4 = pnand %p9013_p3, %p9010_p2 }
  0x8b   :  { %9018 = shalt.err (!%p9015_p4)
}
  0x8c   :  { %s9019_s0 = scalar_lea.vmem %s198_s29, 32  ;;  %p9024_p6 = scmp.lt.s32.totalorder %s198_s29, %s198_s29 }
  0x8d   :  { %p9020_p5 = scmp.ne.s32.totalorder %s198_s29, %s9019_s0  ;;  %p9025_p7 = scmp.lt.s32.totalorder %s9019_s0, %s9019_s0 }
  0x8f   :  { %p9026_p8 = por %p9025_p7, %p9024_p6 }
  0x91   :  { %p9027_p9 = pnand %p9026_p8, %p9020_p5 }
  0x93   :  { %9030 = shalt.err (!%p9027_p9)
}
  0x94   :  { %200 = dma.hbm_to_vmem [thread:$0]  %s9724_s27, 32, %s198_s29, [#allocation14]  }
  0x95   :  { %s9031_s19 = scalar_lea.hbm %s9734_s14, 16 }
  0x96   :  { %p9032_p10 = scmp.ne.s32.totalorder %s9734_s14, %s9031_s19  ;;  %p9035_p11 = scmp.lt.u32.totalorder %s9031_s19, %s9734_s14 }
  0x98   :  { %p9037_p12 = pnand %p9035_p11, %p9032_p10 }
  0x9a   :  { %9040 = shalt.err (!%p9037_p12)
}
  0x9b   :  { %s9041_s1 = scalar_lea.vmem %s220_s26, 16  ;;  %s9045_s2 = scalar_lea.vmem %s220_s26, 32 }
  0x9c   :  { %p9042_p13 = scmp.ne.s32.totalorder %s220_s26, %s9041_s1  ;;  %p9046_p0 = scmp.lt.s32.totalorder %s220_s26, %s220_s26 }
  0x9d   :  { %p9047_p1 = scmp.lt.s32.totalorder %s9045_s2, %s9041_s1 }
  0x9f   :  { %p9048_p2 = por %p9047_p1, %p9046_p0 }
  0xa1   :  { %p9049_p3 = pnand %p9048_p2, %p9042_p13 }
  0xa3   :  { %9052 = shalt.err (!%p9049_p3)
}
  0xa4   :  { %222 = dma.hbm_to_vmem [thread:$0]  %s9734_s14, 16, %s220_s26, [#allocation17]  }
  0xa5   :  { %s9597_s7 = smov [#allocation19]   ;;  %s9598_s10 = smov [#allocation22]  }
  0xa6   :  { %s241_s27 = sshll.u32 %s9597_s7, 4  ;;  %s263_s11 = sshll.u32 %s9598_s10, 4  ;;  %s242_s27 = int_to_ptr.vmem [resolvable:$true] %s241_s27  ;;  %s264_s11 = int_to_ptr.vmem [resolvable:$true] %s263_s11 }
  0xa7   :  { %s9053_s15 = scalar_lea.hbm %s9744_s3, 16 }
  0xa8   :  { %p9054_p4 = scmp.ne.s32.totalorder %s9744_s3, %s9053_s15  ;;  %p9057_p5 = scmp.lt.u32.totalorder %s9053_s15, %s9744_s3 }
  0xaa   :  { %p9059_p6 = pnand %p9057_p5, %p9054_p4 }
  0xac   :  { %9062 = shalt.err (!%p9059_p6)
}
  0xad   :  { %s9063_s16 = scalar_lea.vmem %s242_s27, 16  ;;  %s9067_s18 = scalar_lea.vmem %s242_s27, 32 }
  0xae   :  { %p9064_p7 = scmp.ne.s32.totalorder %s242_s27, %s9063_s16  ;;  %p9068_p8 = scmp.lt.s32.totalorder %s242_s27, %s242_s27 }
  0xaf   :  { %p9069_p9 = scmp.lt.s32.totalorder %s9067_s18, %s9063_s16 }
  0xb1   :  { %p9070_p10 = por %p9069_p9, %p9068_p8 }
  0xb3   :  { %p9071_p11 = pnand %p9070_p10, %p9064_p7 }
  0xb5   :  { %9074 = shalt.err (!%p9071_p11)
}
  0xb6   :  { %244 = dma.hbm_to_vmem [thread:$0]  %s9744_s3, 16, %s242_s27, [#allocation20]  }
  0xb7   :  { %s9075_s14 = scalar_lea.hbm %s9754_s17, 16 }
  0xb8   :  { %p9076_p12 = scmp.ne.s32.totalorder %s9754_s17, %s9075_s14  ;;  %p9079_p13 = scmp.lt.u32.totalorder %s9075_s14, %s9754_s17 }
  0xba   :  { %p9081_p0 = pnand %p9079_p13, %p9076_p12 }
  0xbc   :  { %9084 = shalt.err (!%p9081_p0)
}
  0xbd   :  { %s9085_s22 = scalar_lea.vmem %s264_s11, 16  ;;  %s9089_s29 = scalar_lea.vmem %s264_s11, 32 }
  0xbe   :  { %p9086_p1 = scmp.ne.s32.totalorder %s264_s11, %s9085_s22  ;;  %p9090_p2 = scmp.lt.s32.totalorder %s264_s11, %s264_s11 }
  0xbf   :  { %p9091_p3 = scmp.lt.s32.totalorder %s9089_s29, %s9085_s22 }
  0xc1   :  { %p9092_p4 = por %p9091_p3, %p9090_p2 }
  0xc3   :  { %p9093_p5 = pnand %p9092_p4, %p9086_p1 }
  0xc5   :  { %9096 = shalt.err (!%p9093_p5)
}
  0xc6   :  { %266 = dma.hbm_to_vmem [thread:$0]  %s9754_s17, 16, %s264_s11, [#allocation23]  }
  0xc7   :  { %s9599_s23 = smov [#allocation25]   ;;  %s9097_s26 = scalar_lea.hbm %s9764_s24, 16 }
  0xc8   :  { %s285_s3 = sshll.u32 %s9599_s23, 4  ;;  %p9098_p6 = scmp.ne.s32.totalorder %s9764_s24, %s9097_s26  ;;  %s286_s3 = int_to_ptr.vmem [resolvable:$true] %s285_s3 }
  0xc9   :  { %p9101_p7 = scmp.lt.u32.totalorder %s9097_s26, %s9764_s24 }
  0xcb   :  { %p9103_p8 = pnand %p9101_p7, %p9098_p6 }
  0xcd   :  { %9106 = shalt.err (!%p9103_p8)
}
  0xce   :  { %s9107_s28 = scalar_lea.vmem %s286_s3, 16  ;;  %s9111_s0 = scalar_lea.vmem %s286_s3, 32 }
  0xcf   :  { %p9108_p9 = scmp.ne.s32.totalorder %s286_s3, %s9107_s28  ;;  %p9112_p10 = scmp.lt.s32.totalorder %s286_s3, %s286_s3 }
  0xd0   :  { %p9113_p11 = scmp.lt.s32.totalorder %s9111_s0, %s9107_s28 }
  0xd2   :  { %p9114_p12 = por %p9113_p11, %p9112_p10 }
  0xd4   :  { %p9115_p13 = pnand %p9114_p12, %p9108_p9 }
  0xd6   :  { %9118 = shalt.err (!%p9115_p13)
}
  0xd7   :  { %288 = dma.hbm_to_vmem [thread:$0]  %s9764_s24, 16, %s286_s3, [#allocation26]  }
  0xd8   :  { %s9600_s17 = smov [#allocation28]   ;;  %s9601_s1 = smov [#allocation31]  }
  0xd9   :  { %s306_s19 = sshll.u32 %s9600_s17, 4  ;;  %s335_s2 = sshll.u32 %s9601_s1, 4  ;;  %s307_s19 = int_to_ptr.vmem [resolvable:$true] %s306_s19  ;;  %s336_s2 = int_to_ptr.vmem [resolvable:$true] %s335_s2 }
  0xda   :  { %s9119_s7 = scalar_lea.hbm %s9774_s6, 128 }
  0xdb   :  { %p9120_p0 = scmp.ne.s32.totalorder %s9774_s6, %s9119_s7  ;;  %p9123_p1 = scmp.lt.u32.totalorder %s9119_s7, %s9774_s6 }
  0xdd   :  { %p9125_p2 = pnand %p9123_p1, %p9120_p0 }
  0xdf   :  { %9128 = shalt.err (!%p9125_p2)
}
  0xe0   :  { %s9129_s27 = scalar_lea.vmem %s307_s19, 128  ;;  %p9134_p4 = scmp.lt.s32.totalorder %s307_s19, %s307_s19 }
  0xe1   :  { %p9130_p3 = scmp.ne.s32.totalorder %s307_s19, %s9129_s27  ;;  %p9135_p5 = scmp.lt.s32.totalorder %s9129_s27, %s9129_s27 }
  0xe3   :  { %p9136_p6 = por %p9135_p5, %p9134_p4 }
  0xe5   :  { %p9137_p7 = pnand %p9136_p6, %p9130_p3 }
  0xe7   :  { %9140 = shalt.err (!%p9137_p7)
}
  0xe8   :  { %s9602_s10 = smov 64   ;;  %s9603_s24 = smov 4  }
  0xe9   :  { %312 = dma.hbm_to_vmem [thread:$0]  %s9774_s6, 128, %s307_s19, [#allocation29], %s9602_s10, %s9602_s10, %s9603_s24  }
  0xea   :  { %s9141_s11 = scalar_lea.hbm %s9794_s12, 16 }
  0xeb   :  { %p9142_p8 = scmp.ne.s32.totalorder %s9794_s12, %s9141_s11  ;;  %p9145_p9 = scmp.lt.u32.totalorder %s9141_s11, %s9794_s12 }
  0xed   :  { %p9147_p10 = pnand %p9145_p9, %p9142_p8 }
  0xef   :  { %9150 = shalt.err (!%p9147_p10)
}
  0xf0   :  { %s9151_s15 = scalar_lea.vmem %s336_s2, 16  ;;  %s9155_s16 = scalar_lea.vmem %s336_s2, 32 }
  0xf1   :  { %p9152_p11 = scmp.ne.s32.totalorder %s336_s2, %s9151_s15  ;;  %p9156_p12 = scmp.lt.s32.totalorder %s336_s2, %s336_s2 }
  0xf2   :  { %p9157_p13 = scmp.lt.s32.totalorder %s9155_s16, %s9151_s15 }
  0xf4   :  { %p9158_p0 = por %p9157_p13, %p9156_p12 }
  0xf6   :  { %p9159_p1 = pnand %p9158_p0, %p9152_p11 }
  0xf8   :  { %9162 = shalt.err (!%p9159_p1)
}
  0xf9   :  { %338 = dma.hbm_to_vmem [thread:$0]  %s9794_s12, 16, %s336_s2, [#allocation32]  }
  0xfa   :  { %s9604_s6 = smov [#allocation34]   ;;  %s9605_s14 = smov [#allocation37]  }
  0xfb   :  { %s359_s18 = sshll.u32 %s9604_s6, 4  ;;  %s383_s22 = sshll.u32 %s9605_s14, 4  ;;  %s360_s18 = int_to_ptr.vmem [resolvable:$true] %s359_s18  ;;  %s384_s22 = int_to_ptr.vmem [resolvable:$true] %s383_s22 }
  0xfc   :  { %s9163_s29 = scalar_lea.hbm %s9814_s25, 16 }
  0xfd   :  { %p9164_p2 = scmp.ne.s32.totalorder %s9814_s25, %s9163_s29  ;;  %p9167_p3 = scmp.lt.u32.totalorder %s9163_s29, %s9814_s25 }
  0xff   :  { %p9169_p4 = pnand %p9167_p3, %p9164_p2 }
 0x101   :  { %9172 = shalt.err (!%p9169_p4)
}
 0x102   :  { %s9173_s23 = scalar_lea.vmem %s360_s18, 16  ;;  %s9177_s3 = scalar_lea.vmem %s360_s18, 32 }
 0x103   :  { %p9174_p5 = scmp.ne.s32.totalorder %s360_s18, %s9173_s23  ;;  %p9178_p6 = scmp.lt.s32.totalorder %s360_s18, %s360_s18 }
 0x104   :  { %p9179_p7 = scmp.lt.s32.totalorder %s9177_s3, %s9173_s23 }
 0x106   :  { %p9180_p8 = por %p9179_p7, %p9178_p6 }
 0x108   :  { %p9181_p9 = pnand %p9180_p8, %p9174_p5 }
 0x10a   :  { %9184 = shalt.err (!%p9181_p9)
}
 0x10b   :  { %362 = dma.hbm_to_vmem [thread:$0]  %s9814_s25, 16, %s360_s18, [#allocation35]  }
 0x10c   :  { %s9185_s12 = scalar_lea.hbm %s9834_s20, 16 }
 0x10d   :  { %p9186_p10 = scmp.ne.s32.totalorder %s9834_s20, %s9185_s12  ;;  %p9189_p11 = scmp.lt.u32.totalorder %s9185_s12, %s9834_s20 }
 0x10f   :  { %p9191_p12 = pnand %p9189_p11, %p9186_p10 }
 0x111   :  { %9194 = shalt.err (!%p9191_p12)
}
 0x112   :  { %s9195_s26 = scalar_lea.vmem %s384_s22, 16  ;;  %s9199_s28 = scalar_lea.vmem %s384_s22, 32 }
 0x113   :  { %p9196_p13 = scmp.ne.s32.totalorder %s384_s22, %s9195_s26  ;;  %p9200_p0 = scmp.lt.s32.totalorder %s384_s22, %s384_s22 }
 0x114   :  { %p9201_p1 = scmp.lt.s32.totalorder %s9199_s28, %s9195_s26 }
 0x116   :  { %p9202_p2 = por %p9201_p1, %p9200_p0 }
 0x118   :  { %p9203_p3 = pnand %p9202_p2, %p9196_p13 }
 0x11a   :  { %9206 = shalt.err (!%p9203_p3)
}
 0x11b   :  { %386 = dma.hbm_to_vmem [thread:$0]  %s9834_s20, 16, %s384_s22, [#allocation38]  }
 0x11c   :  { %s9606_s25 = smov [#allocation4]   ;;  %s9607_s17 = smov [#allocation9]  }
 0x11d   :  { %s131_s0 = sshll.u32 %s9606_s25, 4  ;;  %s155_s19 = sshll.u32 %s9607_s17, 4  ;;  %s132_s0 = int_to_ptr.vmem [resolvable:$true] %s131_s0  ;;  %s156_s19 = int_to_ptr.vmem [resolvable:$true] %s155_s19 }
 0x11e   :  { %s9207_s1 = scalar_lea.hbm %s9664_s21, 16 }
 0x11f   :  { %p9208_p4 = scmp.ne.s32.totalorder %s9664_s21, %s9207_s1  ;;  %p9211_p5 = scmp.lt.u32.totalorder %s9207_s1, %s9664_s21 }
 0x121   :  { %p9213_p6 = pnand %p9211_p5, %p9208_p4 }
 0x123   :  { %9216 = shalt.err (!%p9213_p6)
}
 0x124   :  { %s9217_s2 = scalar_lea.vmem %s132_s0, 16  ;;  %s9221_s7 = scalar_lea.vmem %s132_s0, 32 }
 0x125   :  { %p9218_p7 = scmp.ne.s32.totalorder %s132_s0, %s9217_s2  ;;  %p9222_p8 = scmp.lt.s32.totalorder %s132_s0, %s132_s0 }
 0x126   :  { %p9223_p9 = scmp.lt.s32.totalorder %s9221_s7, %s9217_s2 }
 0x128   :  { %p9224_p10 = por %p9223_p9, %p9222_p8 }
 0x12a   :  { %p9225_p11 = pnand %p9224_p10, %p9218_p7 }
 0x12c   :  { %9228 = shalt.err (!%p9225_p11)
}
 0x12d   :  { %134 = dma.hbm_to_vmem [thread:$0]  %s9664_s21, 16, %s132_s0, [#allocation5]  }
 0x12e   :  { %s9229_s20 = scalar_lea.hbm %s9684_s8, 16 }
 0x12f   :  { %p9230_p12 = scmp.ne.s32.totalorder %s9684_s8, %s9229_s20  ;;  %p9233_p13 = scmp.lt.u32.totalorder %s9229_s20, %s9684_s8 }
 0x131   :  { %p9235_p0 = pnand %p9233_p13, %p9230_p12 }
 0x133   :  { %9238 = shalt.err (!%p9235_p0)
}
 0x134   :  { %s9239_s27 = scalar_lea.vmem %s156_s19, 16  ;;  %s9243_s11 = scalar_lea.vmem %s156_s19, 32 }
 0x135   :  { %p9240_p1 = scmp.ne.s32.totalorder %s156_s19, %s9239_s27  ;;  %p9244_p2 = scmp.lt.s32.totalorder %s156_s19, %s156_s19 }
 0x136   :  { %p9245_p3 = scmp.lt.s32.totalorder %s9243_s11, %s9239_s27 }
 0x138   :  { %p9246_p4 = por %p9245_p3, %p9244_p2 }
 0x13a   :  { %p9247_p5 = pnand %p9246_p4, %p9240_p1 }
 0x13c   :  { %9250 = shalt.err (!%p9247_p5)
}
 0x13d   :  { %158 = dma.hbm_to_vmem [thread:$0]  %s9684_s8, 16, %s156_s19, [#allocation8]  }
 0x13e   :  { %s9608_s21 = smov [#allocation12]   ;;  %s9609_s16 = smov [#allocation15]  }
 0x13f   :  { %s178_s15 = sshll.u32 %s9608_s21, 4  ;;  %s206_s6 = sshll.u32 %s9609_s16, 4  ;;  %s179_s15 = int_to_ptr.vmem [resolvable:$true] %s178_s15  ;;  %s207_s6 = int_to_ptr.vmem [resolvable:$true] %s206_s6 }
 0x140   :  { %s9251_s18 = scalar_lea.hbm %s9704_s30, 192 }
 0x141   :  { %p9252_p6 = scmp.ne.s32.totalorder %s9704_s30, %s9251_s18  ;;  %p9255_p7 = scmp.lt.u32.totalorder %s9251_s18, %s9704_s30 }
 0x143   :  { %p9257_p8 = pnand %p9255_p7, %p9252_p6 }
 0x145   :  { %9260 = shalt.err (!%p9257_p8)
}
 0x146   :  { %s9261_s14 = scalar_lea.vmem %s179_s15, 192  ;;  %p9266_p10 = scmp.lt.s32.totalorder %s179_s15, %s179_s15 }
 0x147   :  { %p9262_p9 = scmp.ne.s32.totalorder %s179_s15, %s9261_s14  ;;  %p9267_p11 = scmp.lt.s32.totalorder %s9261_s14, %s9261_s14 }
 0x149   :  { %p9268_p12 = por %p9267_p11, %p9266_p10 }
 0x14b   :  { %p9269_p13 = pnand %p9268_p12, %p9262_p9 }
 0x14d   :  { %9272 = shalt.err (!%p9269_p13)
}
 0x14e   :  { %s11185_s8 = sld [smem:[#allocation71_spill]] }
 0x14f   :  { %184 = dma.hbm_to_vmem [thread:$0]  %s9704_s30, 192, %s179_s15, [#allocation11], %s9602_s10, %s9602_s10, %s9603_s24  }
 0x154   :  { %s9273_s22 = scalar_lea.hbm %s11185_s8, 3072 }
 0x155   :  { %p9274_p0 = scmp.ne.s32.totalorder %s11185_s8, %s9273_s22  ;;  %p9277_p1 = scmp.lt.u32.totalorder %s9273_s22, %s11185_s8 }
 0x157   :  { %p9279_p2 = pnand %p9277_p1, %p9274_p0 }
 0x159   :  { %9282 = shalt.err (!%p9279_p2)
}
 0x15a   :  { %s9283_s29 = scalar_lea.vmem %s207_s6, 3072  ;;  %p9288_p4 = scmp.lt.s32.totalorder %s207_s6, %s207_s6 }
 0x15b   :  { %p9284_p3 = scmp.ne.s32.totalorder %s207_s6, %s9283_s29  ;;  %p9289_p5 = scmp.lt.s32.totalorder %s9283_s29, %s9283_s29 }
 0x15d   :  { %p9290_p6 = por %p9289_p5, %p9288_p4 }
 0x15f   :  { %p9291_p7 = pnand %p9290_p6, %p9284_p3 }
 0x161   :  { %9294 = shalt.err (!%p9291_p7)
}
 0x162   :  { %s11186_s23 = sld [smem:[#allocation72_spill]]  ;;  %s9610_s30 = smov [#allocation18]  }
 0x163   :  { %212 = dma.hbm_to_vmem [thread:$0]  %s11185_s8, 3072, %s207_s6, [#allocation14], %s9602_s10, %s9602_s10, %s9603_s24  }
 0x164   :  { %s228_s3 = sshll.u32 %s9610_s30, 4  ;;  %s9611_s12 = smov [#allocation21]   ;;  %s229_s3 = int_to_ptr.vmem [resolvable:$true] %s228_s3 }
 0x165   :  { %s250_s26 = sshll.u32 %s9611_s12, 4  ;;  %s251_s26 = int_to_ptr.vmem [resolvable:$true] %s250_s26 }
 0x168   :  { %s9295_s28 = scalar_lea.hbm %s11186_s23, 3072 }
 0x169   :  { %p9296_p8 = scmp.ne.s32.totalorder %s11186_s23, %s9295_s28  ;;  %p9299_p9 = scmp.lt.u32.totalorder %s9295_s28, %s11186_s23 }
 0x16b   :  { %p9301_p10 = pnand %p9299_p9, %p9296_p8 }
 0x16d   :  { %9304 = shalt.err (!%p9301_p10)
}
 0x16e   :  { %s9305_s25 = scalar_lea.vmem %s229_s3, 3072  ;;  %p9310_p12 = scmp.lt.s32.totalorder %s229_s3, %s229_s3 }
 0x16f   :  { %p9306_p11 = scmp.ne.s32.totalorder %s229_s3, %s9305_s25  ;;  %p9311_p13 = scmp.lt.s32.totalorder %s9305_s25, %s9305_s25 }
 0x171   :  { %p9312_p0 = por %p9311_p13, %p9310_p12 }
 0x173   :  { %p9313_p1 = pnand %p9312_p0, %p9306_p11 }
 0x175   :  { %9316 = shalt.err (!%p9313_p1)
}
 0x176   :  { %s11187_s0 = sld [smem:[#allocation73_spill]] }
 0x177   :  { %234 = dma.hbm_to_vmem [thread:$0]  %s11186_s23, 3072, %s229_s3, [#allocation17], %s9602_s10, %s9602_s10, %s9603_s24  }
 0x17c   :  { %s9317_s17 = scalar_lea.hbm %s11187_s0, 3072 }
 0x17d   :  { %p9318_p2 = scmp.ne.s32.totalorder %s11187_s0, %s9317_s17  ;;  %p9321_p3 = scmp.lt.u32.totalorder %s9317_s17, %s11187_s0 }
 0x17f   :  { %p9323_p4 = pnand %p9321_p3, %p9318_p2 }
 0x181   :  { %9326 = shalt.err (!%p9323_p4)
}
 0x182   :  { %s9327_s19 = scalar_lea.vmem %s251_s26, 3072  ;;  %p9332_p6 = scmp.lt.s32.totalorder %s251_s26, %s251_s26 }
 0x183   :  { %p9328_p5 = scmp.ne.s32.totalorder %s251_s26, %s9327_s19  ;;  %p9333_p7 = scmp.lt.s32.totalorder %s9327_s19, %s9327_s19 }
 0x185   :  { %p9334_p8 = por %p9333_p7, %p9332_p6 }
 0x187   :  { %p9335_p9 = pnand %p9334_p8, %p9328_p5 }
 0x189   :  { %9338 = shalt.err (!%p9335_p9)
}
 0x18a   :  { %s11188_s1 = sld [smem:[#allocation74_spill]]  ;;  %s9612_s2 = smov [#allocation24]  }
 0x18b   :  { %256 = dma.hbm_to_vmem [thread:$0]  %s11187_s0, 3072, %s251_s26, [#allocation20], %s9602_s10, %s9602_s10, %s9603_s24  }
 0x18c   :  { %s272_s7 = sshll.u32 %s9612_s2, 4  ;;  %s9613_s20 = smov [#allocation27]   ;;  %s273_s7 = int_to_ptr.vmem [resolvable:$true] %s272_s7 }
 0x18d   :  { %s294_s27 = sshll.u32 %s9613_s20, 4  ;;  %s295_s27 = int_to_ptr.vmem [resolvable:$true] %s294_s27 }
 0x190   :  { %s9339_s11 = scalar_lea.hbm %s11188_s1, 3072 }
 0x191   :  { %p9340_p10 = scmp.ne.s32.totalorder %s11188_s1, %s9339_s11  ;;  %p9343_p11 = scmp.lt.u32.totalorder %s9339_s11, %s11188_s1 }
 0x193   :  { %p9345_p12 = pnand %p9343_p11, %p9340_p10 }
 0x195   :  { %9348 = shalt.err (!%p9345_p12)
}
 0x196   :  { %s9349_s21 = scalar_lea.vmem %s273_s7, 3072  ;;  %p9354_p0 = scmp.lt.s32.totalorder %s273_s7, %s273_s7 }
 0x197   :  { %p9350_p13 = scmp.ne.s32.totalorder %s273_s7, %s9349_s21  ;;  %p9355_p1 = scmp.lt.s32.totalorder %s9349_s21, %s9349_s21 }
 0x199   :  { %p9356_p2 = por %p9355_p1, %p9354_p0 }
 0x19b   :  { %p9357_p3 = pnand %p9356_p2, %p9350_p13 }
 0x19d   :  { %9360 = shalt.err (!%p9357_p3)
}
 0x19e   :  { %s11189_s15 = sld [smem:[#allocation75_spill]] }
 0x19f   :  { %278 = dma.hbm_to_vmem [thread:$0]  %s11188_s1, 3072, %s273_s7, [#allocation23], %s9602_s10, %s9602_s10, %s9603_s24  }
 0x1a4   :  { %s9361_s16 = scalar_lea.hbm %s11189_s15, 2048 }
 0x1a5   :  { %p9362_p4 = scmp.ne.s32.totalorder %s11189_s15, %s9361_s16  ;;  %p9365_p5 = scmp.lt.u32.totalorder %s9361_s16, %s11189_s15 }
 0x1a7   :  { %p9367_p6 = pnand %p9365_p5, %p9362_p4 }
 0x1a9   :  { %9370 = shalt.err (!%p9367_p6)
}
 0x1aa   :  { %s9371_s6 = scalar_lea.vmem %s295_s27, 2048  ;;  %p9376_p8 = scmp.lt.s32.totalorder %s295_s27, %s295_s27 }
 0x1ab   :  { %p9372_p7 = scmp.ne.s32.totalorder %s295_s27, %s9371_s6  ;;  %p9377_p9 = scmp.lt.s32.totalorder %s9371_s6, %s9371_s6 }
 0x1ad   :  { %p9378_p10 = por %p9377_p9, %p9376_p8 }
 0x1af   :  { %p9379_p11 = pnand %p9378_p10, %p9372_p7 }
 0x1b1   :  { %9382 = shalt.err (!%p9379_p11)
}
 0x1b2   :  { %s11190_s18 = sld [smem:[#allocation78_spill]]  ;;  %s9614_s14 = smov [#allocation30]  }
 0x1b3   :  { %300 = dma.hbm_to_vmem [thread:$0]  %s11189_s15, 2048, %s295_s27, [#allocation26], %s9602_s10, %s9602_s10, %s9603_s24  }
 0x1b4   :  { %s322_s8 = sshll.u32 %s9614_s14, 4  ;;  %s9615_s22 = smov [#allocation33]   ;;  %s323_s8 = int_to_ptr.vmem [resolvable:$true] %s322_s8 }
 0x1b5   :  { %s347_s29 = sshll.u32 %s9615_s22, 4  ;;  %s348_s29 = int_to_ptr.vmem [resolvable:$true] %s347_s29 }
 0x1b8   :  { %s9383_s23 = scalar_lea.hbm %s11190_s18, 3072 }
 0x1b9   :  { %p9384_p12 = scmp.ne.s32.totalorder %s11190_s18, %s9383_s23  ;;  %p9387_p13 = scmp.lt.u32.totalorder %s9383_s23, %s11190_s18 }
 0x1bb   :  { %p9389_p0 = pnand %p9387_p13, %p9384_p12 }
 0x1bd   :  { %9392 = shalt.err (!%p9389_p0)
}
 0x1be   :  { %s9393_s30 = scalar_lea.vmem %s323_s8, 3072  ;;  %p9398_p2 = scmp.lt.s32.totalorder %s323_s8, %s323_s8 }
 0x1bf   :  { %p9394_p1 = scmp.ne.s32.totalorder %s323_s8, %s9393_s30  ;;  %p9399_p3 = scmp.lt.s32.totalorder %s9393_s30, %s9393_s30 }
 0x1c1   :  { %p9400_p4 = por %p9399_p3, %p9398_p2 }
 0x1c3   :  { %p9401_p5 = pnand %p9400_p4, %p9394_p1 }
 0x1c5   :  { %9404 = shalt.err (!%p9401_p5)
}
 0x1c6   :  { %s11191_s3 = sld [smem:[#allocation80_spill]] }
 0x1c7   :  { %328 = dma.hbm_to_vmem [thread:$0]  %s11190_s18, 3072, %s323_s8, [#allocation29], %s9602_s10, %s9602_s10, %s9603_s24  }
 0x1cc   :  { %s9405_s12 = scalar_lea.hbm %s11191_s3, 16 }
 0x1cd   :  { %p9406_p6 = scmp.ne.s32.totalorder %s11191_s3, %s9405_s12  ;;  %p9409_p7 = scmp.lt.u32.totalorder %s9405_s12, %s11191_s3 }
 0x1cf   :  { %p9411_p8 = pnand %p9409_p7, %p9406_p6 }
 0x1d1   :  { %9414 = shalt.err (!%p9411_p8)
}
 0x1d2   :  { %s9415_s26 = scalar_lea.vmem %s348_s29, 16  ;;  %s9419_s28 = scalar_lea.vmem %s348_s29, 32 }
 0x1d3   :  { %p9416_p9 = scmp.ne.s32.totalorder %s348_s29, %s9415_s26  ;;  %p9420_p10 = scmp.lt.s32.totalorder %s348_s29, %s348_s29 }
 0x1d4   :  { %p9421_p11 = scmp.lt.s32.totalorder %s9419_s28, %s9415_s26 }
 0x1d6   :  { %p9422_p12 = por %p9421_p11, %p9420_p10 }
 0x1d8   :  { %p9423_p13 = pnand %p9422_p12, %p9416_p9 }
 0x1da   :  { %9426 = shalt.err (!%p9423_p13)
}
 0x1db   :  { %s11192_s25 = sld [smem:[#allocation83_spill]]  ;;  %s9616_s0 = smov [#allocation36]  }
 0x1dc   :  { %350 = dma.hbm_to_vmem [thread:$0]  %s11191_s3, 16, %s348_s29, [#allocation32]  }
 0x1dd   :  { %s371_s17 = sshll.u32 %s9616_s0, 4  ;;  %s9617_s19 = smov [#allocation39]   ;;  %s372_s17 = int_to_ptr.vmem [resolvable:$true] %s371_s17 }
 0x1de   :  { %s395_s1 = sshll.u32 %s9617_s19, 4  ;;  %s396_s1 = int_to_ptr.vmem [resolvable:$true] %s395_s1 }
 0x1e1   :  { %s9427_s2 = scalar_lea.hbm %s11192_s25, 16 }
 0x1e2   :  { %p9428_p0 = scmp.ne.s32.totalorder %s11192_s25, %s9427_s2  ;;  %p9431_p1 = scmp.lt.u32.totalorder %s9427_s2, %s11192_s25 }
 0x1e4   :  { %p9433_p2 = pnand %p9431_p1, %p9428_p0 }
 0x1e6   :  { %9436 = shalt.err (!%p9433_p2)
}
 0x1e7   :  { %s9437_s7 = scalar_lea.vmem %s372_s17, 16  ;;  %s9441_s20 = scalar_lea.vmem %s372_s17, 32 }
 0x1e8   :  { %p9438_p3 = scmp.ne.s32.totalorder %s372_s17, %s9437_s7  ;;  %p9442_p4 = scmp.lt.s32.totalorder %s372_s17, %s372_s17 }
 0x1e9   :  { %p9443_p5 = scmp.lt.s32.totalorder %s9441_s20, %s9437_s7 }
 0x1eb   :  { %p9444_p6 = por %p9443_p5, %p9442_p4 }
 0x1ed   :  { %p9445_p7 = pnand %p9444_p6, %p9438_p3 }
 0x1ef   :  { %9448 = shalt.err (!%p9445_p7)
}
 0x1f0   :  { %s11193_s27 = sld [smem:[#allocation86_spill]] }
 0x1f1   :  { %374 = dma.hbm_to_vmem [thread:$0]  %s11192_s25, 16, %s372_s17, [#allocation35]  }
 0x1f6   :  { %s9449_s11 = scalar_lea.hbm %s11193_s27, 64 }
 0x1f7   :  { %p9450_p8 = scmp.ne.s32.totalorder %s11193_s27, %s9449_s11  ;;  %p9453_p9 = scmp.lt.u32.totalorder %s9449_s11, %s11193_s27 }
 0x1f9   :  { %p9455_p10 = pnand %p9453_p9, %p9450_p8 }
 0x1fb   :  { %9458 = shalt.err (!%p9455_p10)
}
 0x1fc   :  { %s9459_s21 = scalar_lea.vmem %s396_s1, 64  ;;  %p9464_p12 = scmp.lt.s32.totalorder %s396_s1, %s396_s1 }
 0x1fd   :  { %p9460_p11 = scmp.ne.s32.totalorder %s396_s1, %s9459_s21  ;;  %p9465_p13 = scmp.lt.s32.totalorder %s9459_s21, %s9459_s21 }
 0x1ff   :  { %p9466_p0 = por %p9465_p13, %p9464_p12 }
 0x201   :  { %p9467_p1 = pnand %p9466_p0, %p9460_p11 }
 0x203   :  { %9470 = shalt.err (!%p9467_p1)
}
 0x204   :  { %398 = dma.hbm_to_vmem [thread:$0]  %s11193_s27, 64, %s396_s1, [#allocation38]  }
 0x205   :  { %s9618_s15 = smov [#allocation40]   ;;  %s9471_s6 = scalar_lea.hbm %s9874_s4, 128 }
 0x206   :  { %s413_s16 = sshll.u32 %s9618_s15, 4  ;;  %p9472_p2 = scmp.ne.s32.totalorder %s9874_s4, %s9471_s6  ;;  %s414_s16 = int_to_ptr.vmem [resolvable:$true] %s413_s16 }
 0x207   :  { %p9475_p3 = scmp.lt.u32.totalorder %s9471_s6, %s9874_s4 }
 0x209   :  { %p9477_p4 = pnand %p9475_p3, %p9472_p2 }
 0x20b   :  { %9480 = shalt.err (!%p9477_p4)
}
 0x20c   :  { %s9481_s18 = scalar_lea.vmem %s414_s16, 128  ;;  %p9486_p6 = scmp.lt.s32.totalorder %s414_s16, %s414_s16 }
 0x20d   :  { %p9482_p5 = scmp.ne.s32.totalorder %s414_s16, %s9481_s18  ;;  %p9487_p7 = scmp.lt.s32.totalorder %s9481_s18, %s9481_s18 }
 0x20f   :  { %p9488_p8 = por %p9487_p7, %p9486_p6 }
 0x211   :  { %p9489_p9 = pnand %p9488_p8, %p9482_p5 }
 0x213   :  { %9492 = shalt.err (!%p9489_p9)
}
 0x214   :  { %416 = dma.hbm_to_vmem [thread:$0]  %s9874_s4, 128, %s414_s16, [#allocation41]  }
 0x215   :  { %9515 = dma.done.wait [#allocation5], 16  }
 0x216   :  { %9516 = vsyncadd [#allocation5], 4294967280 }
 0x217   :  { %9517 = dma.done.wait [#allocation8], 32  }
 0x218   :  { %9518 = vsyncadd [#allocation8], 4294967264 }
 0x219   :  { %9519 = dma.done.wait [#allocation11], 208  }
 0x21a   :  { %9520 = vsyncadd [#allocation11], 4294967088 }
 0x21b   :  { %9521 = dma.done.wait [#allocation14], 3104  }
 0x21c   :  { %9522 = vsyncadd [#allocation14], 4294964192 }
 0x21d   :  { %9523 = dma.done.wait [#allocation17], 3088  }
 0x21e   :  { %9524 = vsyncadd [#allocation17], 4294964208 }
 0x21f   :  { %9525 = dma.done.wait [#allocation20], 3088  }
 0x220   :  { %9526 = vsyncadd [#allocation20], 4294964208 }
 0x221   :  { %9527 = dma.done.wait [#allocation23], 3088  }
 0x222   :  { %9528 = vsyncadd [#allocation23], 4294964208 }
 0x223   :  { %9529 = dma.done.wait [#allocation26], 2064  }
 0x224   :  { %9530 = vsyncadd [#allocation26], 4294965232 }
 0x225   :  { %9531 = dma.done.wait [#allocation29], 3200  }
 0x226   :  { %9532 = vsyncadd [#allocation29], 4294964096 }
 0x227   :  { %9533 = dma.done.wait [#allocation32], 32  }
 0x228   :  { %9534 = vsyncadd [#allocation32], 4294967264 }
 0x229   :  { %9535 = dma.done.wait [#allocation35], 32  }
 0x22a   :  { %9536 = vsyncadd [#allocation35], 4294967264 }
 0x22b   :  { %9537 = dma.done.wait [#allocation38], 80  }
 0x22c   :  { %9538 = vsyncadd [#allocation38], 4294967216 }
 0x22d   :  { %9539 = dma.done.wait [#allocation41], 128  }
 0x22e   :  { %9540 = vsyncadd [#allocation41], 4294967168  ;;  %s494_s4 = sld [smem:[#allocation0]]   ;;  %s9619_s14 = smov 1024   ;;  %vm535_vm0 = vcmask 1046528   ;;  %vm560_vm1 = vcmask 1045504  }
 0x22f   :  { %506 = sst [smem:[#allocation44]] %s9619_s14  ;;  %s9620_s8 = smov 8   ;;  %vm575_vm2 = vcmask 523264   ;;  %v9627_v31 = vmov 0   ;;  %vm928_vm3 = vcmask 130048   ;;  %vm964_vm4 = vcmask 1040384  }
 0x230   :  { %508 = sst [smem:[#allocation44 + $0x1]] %s9619_s14  ;;  %s9621_s22 = smov 128   ;;  %8341 = vset.pattern.permute.xlu1 %v9627_v31  ;;  %8342 = vset.pattern.permute.xlu0 %v9627_v31  ;;  %vm1010_vm5 = vcmask 1042432   ;;  %vm1179_vm6 = vcmask 916480   ;;  %vm1240_vm7 = vcmask 785408   ;;  %vm1475_vm8 = vcmask 277504   ;;  %vm10491_vm9 = vmneg %vm964_vm4 }
 0x231   :  { %510 = sst [smem:[#allocation44 + $0x2]] %s9620_s8  ;;  %s11194_s29 = sld [smem:[#allocation60_spill]]  ;;  %vm9631_vm10 = vmmov 1   ;;  %vm10507_vm12 = vmpackc.low %vm1010_vm5, %vm1010_vm5  ;;  %vm3427_vm13 = vcmask 261120   ;;  %vm9634_vm14 = vmmov 0   ;;  %vm3821_vm15 = vcmask 146432  }
 0x232   :  { %512 = sst [smem:[#allocation44 + $0x3]] %s9602_s10  ;;  %s9622_s23 = smov 2   ;;  %vm10499_vm11 = vmpackc.low %vm9631_vm10, %vm10491_vm9 }
 0x233   :  { %514 = sst [smem:[#allocation44 + $0x4]] %s9621_s22  ;;  %s9623_s30 = smov [#allocation2]  }
 0x234   :  { %516 = sst [smem:[#allocation44 + $0x5]] %s9622_s23  ;;  %s502_s3 = sshll.u32 %s9623_s30, 4  ;;  %s503_s3 = int_to_ptr.vmem [resolvable:$true] %s502_s3 }
 0x235   :  { %s7140_s12 = sshll.u32 %s494_s4, 26  ;;  %s9624_s26 = smov 512  }
 0x236   :  { %518 = sst [smem:[#allocation44 + $0x6]] %s9624_s26  ;;  %s7141_s28 = sadd.s32 134217728, %s7140_s12 }
 0x237   :  { %520 = sst [smem:[#allocation44 + $0x7]] %s9602_s10  ;;  %s9625_s25 = smov [#allocation3]  }
 0x238   :  { %522 = sst [smem:[#allocation44 + $0x8]] %s9603_s24  ;;  %s9626_s0 = smov [#allocation43]  }
 0x239   :  { %s11195_s17 = sld [smem:[#allocation61_spill]]  ;;  %s9628_s19 = smov 16  }
 0x23a   :  { %524 = dma.general %s9869_s13, 24576, %s503_s3, %s9625_s25, %s9626_s0, [#allocation44], %s7141_s28, 0  }
 0x23b   :  { %v10011_v0 = vld [vmem:[%s11194_s29] sm:$0xff]  ;;  %v10014_v1 = vld [vmem:[%s11194_s29 + $0x8] sm:$0xff]  ;;  %v10017_v2 = vld [vmem:[%s11194_s29 + $0x10] sm:$0xff]  ;;  %s11196_s13 = sld [smem:[#allocation68_spill]]  ;;  %s11197_s24 = sld [smem:[#allocation62_spill]] }
 0x23c   :  { %v536_v3 = vrot.slane %v10011_v0, 1  ;;  %v537_v4 = vrot.slane %v10014_v1, 1  ;;  %v539_v5 = vrot.slane %v10017_v2, 1  ;;  %v10023_v6 = vld [vmem:[%s11194_s29 + $0x18] sm:$0xff]  ;;  %v10026_v7 = vld [vmem:[%s11194_s29 + $0x20] sm:$0xf] }
 0x23d   :  { %v541_v8 = vrot.slane %v10023_v6, 1  ;;  %v543_v9 = vrot.slane %v10026_v7, 1  ;;  %v561_v14 = vrot.slane %v10011_v0, 2  ;;  %v562_v19 = vrot.slane %v10014_v1, 2  ;;  %s11198_s1 = sld [smem:[#allocation67_spill]]  ;;  %s9629_s2 = smov 96  }
 0x23e   :  { %v538_v10 = vsel %vm535_vm0, %v536_v3, %v537_v4  ;;  %v540_v11 = vsel %vm535_vm0, %v537_v4, %v539_v5  ;;  %v564_v20 = vrot.slane %v10017_v2, 2  ;;  %v566_v62 = vrot.slane %v10023_v6, 2  ;;  %s9630_s7 = smov 112   ;;  %s11199_s20 = sld [smem:[#allocation69_spill]] }
 0x23f   :  { %v8518_v12 = vld [vmem:[%s11195_s17 + $0x4] ss:$8 sps:$4 sm:$0xff]   ;;  %v8520_v13 = vld [vmem:[%s11195_s17] ss:$8 sps:$4 sm:$0xff]   ;;  %v8331_v15 = vpack.i.bf16 %v540_v11, %v538_v10  ;;  %v542_v16 = vsel %vm535_vm0, %v539_v5, %v541_v8  ;;  %v544_v17 = vsel %vm535_vm0, %v541_v8, %v543_v9  ;;  %553 = vrot.lane.b32.xlu1 %v543_v9, %s9602_s10  ;;  %v8521_v18 = vld [vmem:[%s11195_s17 + $0x14] ss:$8 sps:$4 sm:$0xff]   ;;  %v563_v23 = vsel %vm560_vm1, %v561_v14, %v562_v19 }
 0x240   :  { %752 = vmatprep.subr.bf16.mxu0 %v8518_v12  ;;  %v8336_v21 = vpack.i.bf16 %v544_v17, %v542_v16  ;;  %v8523_v22 = vld [vmem:[%s11195_s17 + $0x10] ss:$8 sps:$4 sm:$0xff]   ;;  %v8524_v24 = vld [vmem:[%s11195_s17 + $0x24] ss:$8 sps:$4 sm:$0xff]   ;;  %v565_v25 = vsel %vm560_vm1, %v562_v19, %v564_v20  ;;  %v8526_v27 = vld [vmem:[%s11195_s17 + $0x20] ss:$8 sps:$4 sm:$0xff]   ;;  %v567_v4 = vsel %vm560_vm1, %v564_v20, %v566_v62 }
 0x241   :  { %8332 = vrot.lane.b32.xlu0 %v8331_v15, %s9602_s10  ;;  %753 = vmatpush1.bf16.msra.mxu0 %v8520_v13  ;;  %v582_v26 = vpack.c.bf16 %v565_v25, %v563_v23  ;;  %v8527_v28 = vld [vmem:[%s11195_s17 + $0x34] ss:$8 sps:$4 sm:$0xff]   ;;  %v8529_v29 = vld [vmem:[%s11195_s17 + $0x30] ss:$8 sps:$4 sm:$0xff]   ;;  %v8530_v30 = vld [vmem:[%s11195_s17 + $0x44] ss:$8 sps:$4 sm:$0xff]  }
 0x242   :  { %754 = vmatprep.subr.bf16.mxu0 %v8521_v18  ;;  %v8532_v32 = vld [vmem:[%s11195_s17 + $0x40] ss:$8 sps:$4 sm:$0xff]   ;;  %v8533_v33 = vld [vmem:[%s11195_s17 + $0x54] ss:$8 sps:$4 sm:$0xff]   ;;  %v8535_v41 = vld [vmem:[%s11195_s17 + $0x50] ss:$8 sps:$4 sm:$0xff]  }
 0x243   :  { %7166 = vmatprep.mubr.msk.bf16.mxu0 %vm575_vm2, %v582_v26  ;;  %v813_v34 = vld [vmem:[%s11196_s13] sm:$0xff]  ;;  %v815_v35 = vld [vmem:[%s11196_s13 + $0x10] sm:$0xff]  ;;  %v814_v38 = vld [vmem:[%s11196_s13 + $0x8] sm:$0xff]  ;;  %v568_v63 = vrot.slane %v10026_v7, 2  ;;  %s11200_s27 = sld [smem:[#allocation76_spill]]  ;;  %s11201_s11 = sld [smem:[#allocation63_spill]] }
 0x244   :  { %v853_v36 = vsub.f32 1.0, %v813_v34  ;;  %820 = vperm.xlu1 %8341, %v813_v34   ;;  %v855_v37 = vsub.f32 1.0, %v815_v35  ;;  %v817_v39 = vld [vmem:[%s11196_s13 + $0x20] sm:$0x3]  ;;  %v816_v40 = vld [vmem:[%s11196_s13 + $0x18] sm:$0xff]  ;;  %v854_v42 = vsub.f32 1.0, %v814_v38 }
 0x245   :  { %8337 = vrot.lane.b32.xlu0 %v8336_v21, %s9602_s10  ;;  %755 = vmatpush1.bf16.msra.mxu0 %v8523_v22  ;;  %v856_v43 = vsub.f32 1.0, %v816_v40  ;;  %v8536_v44 = vld [vmem:[%s11195_s17 + $0x64] ss:$8 sps:$4 sm:$0xff]   ;;  %v857_v46 = vsub.f32 1.0, %v817_v39  ;;  %v8538_v50 = vld [vmem:[%s11195_s17 + $0x60] ss:$8 sps:$4 sm:$0xff]   ;;  %v569_v5 = vsel %vm560_vm1, %v566_v62, %v568_v63  ;;  %v613_v22 = vlaneseq }
 0x246   :  { %756 = vmatprep.subr.bf16.mxu0 %v8524_v24  ;;  %v858_v45 = vmul.f32 -1e+30, %v853_v36  ;;  %v860_v47 = vmul.f32 -1e+30, %v855_v37  ;;  %v859_v48 = vmul.f32 -1e+30, %v854_v42  ;;  %v584_v12 = vpack.c.bf16 %v569_v5, %v567_v4 }
 0x247   :  { %v861_v49 = vmul.f32 -1e+30, %v856_v43  ;;  %v8539_v51 = vld [vmem:[%s11195_s17 + $0x74] ss:$8 sps:$4 sm:$0xff]   ;;  %v8541_v52 = vld [vmem:[%s11195_s17 + $0x70] ss:$8 sps:$4 sm:$0xff]  }
 0x248   :  { %830 = vperm.xlu1 %8341, %v815_v35   ;;  %v8542_v53 = vld [vmem:[%s11195_s17 + $0x84] ss:$8 sps:$4 sm:$0xff]   ;;  %v8544_v54 = vld [vmem:[%s11195_s17 + $0x80] ss:$8 sps:$4 sm:$0xff]   ;;  %v8545_v55 = vld [vmem:[%s11195_s17 + $0x94] ss:$8 sps:$4 sm:$0xff]  }
 0x249   :  { %757 = vmatpush1.bf16.msra.mxu0 %v8526_v27  ;;  %825 = vperm.xlu0 %8342, %v814_v38   ;;  %v862_v56 = vmul.f32 -1e+30, %v857_v46  ;;  %v8547_v57 = vld [vmem:[%s11195_s17 + $0x90] ss:$8 sps:$4 sm:$0xff]   ;;  %v8548_v58 = vld [vmem:[%s11195_s17 + $0xa4] ss:$8 sps:$4 sm:$0xff]  }
 0x24a   :  { %758 = vmatprep.subr.bf16.mxu0 %v8527_v28  ;;  %v8550_v59 = vld [vmem:[%s11195_s17 + $0xa0] ss:$8 sps:$4 sm:$0xff]   ;;  %v8551_v60 = vld [vmem:[%s11195_s17 + $0xb4] ss:$8 sps:$4 sm:$0xff]   ;;  %v8553_v61 = vld [vmem:[%s11195_s17 + $0xb0] ss:$8 sps:$4 sm:$0xff]  }
 0x24b   :  { %v10094_v24 = vshrl.u32 %v613_v22, 7  ;;  %v611_v25 = vld [vmem:[%s11197_s24] sm:$0x3]  ;;  %s11202_s21 = sld [smem:[#allocation64_spill]]  ;;  %s11205_s15 = sld [smem:[#allocation65_spill]] }
 0x24c   :  { %865 = vperm.xlu1 %8341, %v858_v45   ;;  %s11210_s16 = sld [smem:[#allocation66_spill]]  ;;  %s11211_s6 = sld [smem:[#allocation70_spill]] }
 0x24d   :  { %759 = vmatpush1.bf16.msra.mxu0 %v8529_v29  ;;  %870 = vperm.xlu0 %8342, %v859_v48   ;;  %s9632_s18 = smov 32   ;;  %s11212_s4 = sld [smem:[#allocation77_spill]] }
 0x24e   :  { %760 = vmatprep.subr.bf16.mxu0 %v8530_v30  ;;  %s11213_s14 = sld [smem:[#allocation87_spill]]  ;;  %s11216_s8 = sld [smem:[#allocation85_spill]] }
 0x24f   :  { %s11217_s22 = sld [smem:[#allocation88_spill]]  ;;  %s11218_s29 = sld [smem:[#allocation79_spill]] }
 0x250   :  { %875 = vperm.xlu1 %8341, %v860_v47   ;;  %s11219_s23 = sld [smem:[#allocation81_spill]]  ;;  %s11220_s30 = sld [smem:[#allocation82_spill]] }
 0x251   :  { %761 = vmatpush1.bf16.msra.mxu0 %v8532_v32  ;;  %835 = vperm.xlu0 %8342, %v816_v40   ;;  %s11221_s3 = sld [smem:[#allocation84_spill]] }
 0x252   :  { %762 = vmatprep.subr.bf16.mxu0 %v8533_v33 }
 0x254   :  { %840 = vperm.xlu1 %8341, %v817_v39  }
 0x255   :  { %763 = vmatpush1.bf16.msra.mxu0 %v8535_v41  ;;  %880 = vperm.xlu0 %8342, %v861_v49  }
 0x256   :  { %764 = vmatprep.subr.bf16.mxu0 %v8536_v44 }
 0x258   :  { %885 = vperm.xlu1 %8341, %v862_v56  }
 0x259   :  { %765 = vmatpush1.bf16.msra.mxu0 %v8538_v50 }
 0x25a   :  { %766 = vmatprep.subr.bf16.mxu0 %v8539_v51 }
 0x25d   :  { %767 = vmatpush1.bf16.msra.mxu0 %v8541_v52 }
 0x25e   :  { %768 = vmatprep.subr.bf16.mxu0 %v8542_v53 }
 0x261   :  { %769 = vmatpush1.bf16.msra.mxu0 %v8544_v54 }
 0x262   :  { %770 = vmatprep.subr.bf16.mxu0 %v8545_v55 }
 0x265   :  { %771 = vmatpush1.bf16.msra.mxu0 %v8547_v57 }
 0x266   :  { %772 = vmatprep.subr.bf16.mxu0 %v8548_v58 }
 0x269   :  { %773 = vmatpush1.bf16.msra.mxu0 %v8550_v59 }
 0x26a   :  { %774 = vmatprep.subr.bf16.mxu0 %v8551_v60 }
 0x26d   :  { %775 = vmatpush1.bf16.msra.mxu0 %v8553_v61 }
 0x2b1   :  { %v554_v20 = vpop.permute.xlu1 %553 }
 0x2b3   :  { %v8333_v3 = vpop.permute.xlu0 %8332 }
 0x2b4   :  { %v8335_v8 = vunpack.i.h.bf16 %v8333_v3  ;;  %v8334_v9 = vunpack.i.l.bf16 %v8333_v3 }
 0x2b6   :  { %v576_v10 = vsel %vm575_vm2, %v10011_v0, %v8334_v9  ;;  %v577_v11 = vsel %vm575_vm2, %v10014_v1, %v8335_v8  ;;  %v586_v0 = vpack.c.bf16 %v568_v63, %v568_v63  ;;  %v580_v1 = vsel %vm575_vm2, %v10026_v7, %v554_v20 }
 0x2b7   :  { %v581_v13 = vpack.c.bf16 %v577_v11, %v576_v10  ;;  %v8338_v14 = vpop.permute.xlu0 %8337  ;;  %v585_v21 = vpack.c.bf16 %v580_v1, %v580_v1 }
 0x2b8   :  { %v8340_v15 = vunpack.i.h.bf16 %v8338_v14  ;;  %v8339_v16 = vunpack.i.l.bf16 %v8338_v14 }
 0x2b9   :  { %785 = vmatmul.mubr.bf16.vlgmr.msra.gmra.mrb[0].mxu0 %v581_v13 }
 0x2ba   :  { %7167 = vmatprep.mubr.msk.bf16.mxu0 %vm575_vm2, %v584_v12  ;;  %v578_v17 = vsel %vm575_vm2, %v10017_v2, %v8339_v16  ;;  %v579_v18 = vsel %vm575_vm2, %v10023_v6, %v8340_v15  ;;  %v10097_v2 = vsub.s32 0, %v10094_v24  ;;  %v10101_v6 = vsub.s32 1, %v10094_v24 }
 0x2bb   :  { %v583_v19 = vpack.c.bf16 %v579_v18, %v578_v17 }
 0x2bc   :  { %v616_v28 = vrot.slane %v611_v25, %v10097_v2  ;;  %v620_v7 = vrot.slane %v611_v25, %v10101_v6  ;;  %v8555_v25 = vld [vmem:[%s11198_s1] sm:$0xff]  }
 0x2c1   :  { %795 = vmatmul.mubr.bf16.gmra.mrb[4].mxu0 %v583_v19 }
 0x2c2   :  { %7168 = vmatprep.mubr.msk.bf16.mxu0 %vm575_vm2, %v586_v0 }
 0x2c3   :  { %v821_v23 = vpop.permute.xlu1 %820 }
 0x2c7   :  { %v831_v26 = vpop.permute.xlu1 %830 }
 0x2c8   :  { %v826_v27 = vpop.permute.xlu0 %825 }
 0x2c9   :  { %805 = vmatmul.mubr.bf16.gmra.mrb[8].mxu0 %v585_v21 }
 0x2cb   :  { %v866_v30 = vpop.permute.xlu1 %865 }
 0x2cc   :  { %v871_v34 = vpop.permute.xlu0 %870 }
 0x2cf   :  { %v876_v46 = vpop.permute.xlu1 %875 }
 0x2d0   :  { %v836_v48 = vpop.permute.xlu0 %835 }
 0x2d3   :  { %v841_v3 = vpop.permute.xlu1 %840 }
 0x2d4   :  { %v881_v4 = vpop.permute.xlu0 %880 }
 0x2d7   :  { %v886_v0 = vpop.permute.xlu1 %885 }
 0x38c   :  { %v786_v29 = vpop.f32.mrb[0].mxu0 }
 0x38d   :  { %v787_v32 = vadd.f32 %v786_v29, %v616_v28  ;;  %v788_v33 = vpop.f32.mrb[1].mxu0 }
 0x38e   :  { %v789_v35 = vadd.f32 %v788_v33, %v620_v7  ;;  %v790_v36 = vpop.f32.mrb[2].mxu0 }
 0x38f   :  { %v843_v37 = vmul.f32 %v821_v23, %v787_v32  ;;  %v791_v38 = vadd.f32 %v790_v36, %v616_v28  ;;  %v792_v39 = vpop.f32.mrb[3].mxu0 }
 0x390   :  { %v844_v40 = vmul.f32 %v821_v23, %v789_v35  ;;  %v793_v41 = vadd.f32 %v792_v39, %v620_v7  ;;  %v8554_v23 = vld [vmem:[%s11198_s1 + $0x40] sm:$0xff]  }
 0x391   :  { %v888_v42 = vadd.f32 %v866_v30, %v843_v37  ;;  %v845_v43 = vmul.f32 %v826_v27, %v791_v38  ;;  %7589 = vmatprep.subr.bf16.mxu1 %v8554_v23  ;;  %v8561_v23 = vld [vmem:[%s11198_s1 + $0x18] sm:$0xff]  }
 0x392   :  { %v889_v44 = vadd.f32 %v866_v30, %v844_v40  ;;  %v846_v45 = vmul.f32 %v826_v27, %v793_v41  ;;  %7590 = vmatpush3.bf16.msra.mxu1 %v8555_v25  ;;  %v8557_v27 = vld [vmem:[%s11198_s1 + $0x8] sm:$0xff]   ;;  %v8562_v25 = vld [vmem:[%s11198_s1 + $0x60] sm:$0xff]  }
 0x393   :  { %v890_v47 = vadd.f32 %v871_v34, %v845_v43 }
 0x394   :  { %v891_v49 = vadd.f32 %v871_v34, %v846_v45  ;;  %v796_v50 = vpop.f32.mrb[4].mxu0  ;;  %v8343_v51 = vpack.i.bf16 %v889_v44, %v888_v42 }
 0x395   :  { %v797_v52 = vadd.f32 %v796_v50, %v616_v28  ;;  %v798_v53 = vpop.f32.mrb[5].mxu0 }
 0x396   :  { %v799_v54 = vadd.f32 %v798_v53, %v620_v7  ;;  %v800_v55 = vpop.f32.mrb[6].mxu0  ;;  %8344 = vrot.lane.b32.xlu0 %v8343_v51, %s9628_s19  ;;  %v8348_v56 = vpack.i.bf16 %v891_v49, %v890_v47 }
 0x397   :  { %v847_v57 = vmul.f32 %v831_v26, %v797_v52  ;;  %v801_v58 = vadd.f32 %v800_v55, %v616_v28  ;;  %v802_v59 = vpop.f32.mrb[7].mxu0 }
 0x398   :  { %v848_v60 = vmul.f32 %v831_v26, %v799_v54  ;;  %v803_v61 = vadd.f32 %v802_v59, %v620_v7  ;;  %8349 = vrot.lane.b32.xlu1 %v8348_v56, %s9628_s19  ;;  %v8556_v26 = vld [vmem:[%s11198_s1 + $0x48] sm:$0xff]  }
 0x399   :  { %v892_v62 = vadd.f32 %v876_v46, %v847_v57  ;;  %v849_v63 = vmul.f32 %v836_v48, %v801_v58  ;;  %7591 = vmatprep.subr.bf16.mxu1 %v8556_v26 }
 0x39a   :  { %v893_v5 = vadd.f32 %v876_v46, %v848_v60  ;;  %v850_v8 = vmul.f32 %v836_v48, %v803_v61  ;;  %7592 = vmatpush3.bf16.msra.mxu1 %v8557_v27 }
 0x39b   :  { %v894_v9 = vadd.f32 %v881_v4, %v849_v63 }
 0x39c   :  { %v895_v10 = vadd.f32 %v881_v4, %v850_v8  ;;  %v806_v11 = vpop.f32.mrb[8].mxu0  ;;  %v8353_v12 = vpack.i.bf16 %v893_v5, %v892_v62 }
 0x39d   :  { %v807_v13 = vadd.f32 %v806_v11, %v616_v28  ;;  %v808_v14 = vpop.f32.mrb[9].mxu0  ;;  %v8558_v28 = vld [vmem:[%s11198_s1 + $0x50] sm:$0xff]  }
 0x39e   :  { %v809_v15 = vadd.f32 %v808_v14, %v620_v7  ;;  %v810_v16 = vpop.f32.mrb[10].mxu0  ;;  %8354 = vrot.lane.b32.xlu0 %v8353_v12, %s9628_s19  ;;  %v8358_v17 = vpack.i.bf16 %v895_v10, %v894_v9  ;;  %v8559_v7 = vld [vmem:[%s11198_s1 + $0x10] sm:$0xff]   ;;  %7593 = vmatprep.subr.bf16.mxu1 %v8558_v28 }
 0x39f   :  { %v851_v18 = vmul.f32 %v841_v3, %v807_v13  ;;  %v811_v19 = vpop.f32.mrb[11].mxu0  ;;  %7594 = vmatpush3.bf16.msra.mxu1 %v8559_v7 }
 0x3a0   :  { %v852_v20 = vmul.f32 %v841_v3, %v809_v15  ;;  %8359 = vrot.lane.b32.xlu1 %v8358_v17, %s9628_s19 }
 0x3a1   :  { %v896_v1 = vadd.f32 %v886_v0, %v851_v18 }
 0x3a2   :  { %v897_v21 = vadd.f32 %v886_v0, %v852_v20 }
 0x3a4   :  { %v8363_v22 = vpack.i.bf16 %v897_v21, %v896_v1 }
 0x3a6   :  { %8364 = vrot.lane.b32.xlu0 %v8363_v22, %s9628_s19  ;;  %v8560_v22 = vld [vmem:[%s11198_s1 + $0x58] sm:$0xff]  }
 0x3a7   :  { %7595 = vmatprep.subr.bf16.mxu1 %v8560_v22 }
 0x3a8   :  { %7596 = vmatpush3.bf16.msra.mxu1 %v8561_v23 }
 0x3a9   :  { %7597 = vmatprep.subr.bf16.mxu1 %v8562_v25 }
 0x408   :  { %v8345_v29 = vpop.permute.xlu0 %8344 }
 0x409   :  { %v8347_v30 = vunpack.i.h.bf16 %v8345_v29  ;;  %v8346_v32 = vunpack.i.l.bf16 %v8345_v29 }
 0x40a   :  { %v8350_v33 = vpop.permute.xlu1 %8349 }
 0x40b   :  { %v949_v34 = vsel %vm928_vm3, %v8347_v30, -1e+30  ;;  %v929_v35 = vsel %vm928_vm3, %v8346_v32, %v8347_v30  ;;  %v944_v36 = vsel %vm928_vm3, -1e+30, %v8346_v32  ;;  %v8352_v37 = vunpack.i.h.bf16 %v8350_v33 }
 0x40c   :  { %v967_v38 = vrot.slane %v949_v34, 7  ;;  %v965_v39 = vrot.slane %v944_v36, 7  ;;  %v966_v40 = vrot.slane %v929_v35, 7  ;;  %v8351_v41 = vunpack.i.l.bf16 %v8350_v33 }
 0x40d   :  { %v950_v42 = vsel %vm928_vm3, %v8352_v37, -1e+30 }
 0x40e   :  { %v930_v43 = vsel %vm928_vm3, %v8351_v41, %v8352_v37  ;;  %v10122_v44 = vsel %vm964_vm4, -1e+30, %v967_v38  ;;  %v10125_v45 = vsel %vm964_vm4, -1e+30, %v965_v39  ;;  %v10128_v46 = vsel %vm964_vm4, -1e+30, %v966_v40 }
 0x40f   :  { %v972_v47 = vrot.slane %v950_v42, 7  ;;  %v945_v48 = vsel %vm928_vm3, -1e+30, %v8351_v41  ;;  %v970_v51 = vrot.slane %v930_v43, 7  ;;  %v1026_v54 = vrot.slane %v10122_v44, 1 }
 0x410   :  { %v8355_v49 = vpop.permute.xlu0 %8354  ;;  %v968_v50 = vrot.slane %v945_v48, 7  ;;  %v1083_v55 = vrot.slane %v10122_v44, 2  ;;  %v1020_v58 = vrot.slane %v10125_v45, 1  ;;  %v1023_v59 = vrot.slane %v10128_v46, 1 }
 0x411   :  { %v8357_v52 = vunpack.i.h.bf16 %v8355_v49  ;;  %v8356_v53 = vunpack.i.l.bf16 %v8355_v49  ;;  %v10134_v56 = vsel %vm964_vm4, %v967_v38, %v972_v47  ;;  %v1077_v60 = vrot.slane %v10125_v45, 2  ;;  %v8563_v38 = vld [vmem:[%s11198_s1 + $0x20] sm:$0xff]  }
 0x412   :  { %v8360_v57 = vpop.permute.xlu1 %8359  ;;  %v10140_v61 = vsel %vm964_vm4, %v966_v40, %v970_v51  ;;  %v10143_v62 = vsel %vm964_vm4, %v965_v39, %v968_v50  ;;  %v1027_v3 = vrot.slane %v10134_v56, 1  ;;  %v1080_v15 = vrot.slane %v10128_v46, 2  ;;  %7598 = vmatpush3.bf16.msra.mxu1 %v8563_v38 }
 0x413   :  { %v1024_v63 = vrot.slane %v10140_v61, 1  ;;  %v1081_v4 = vrot.slane %v10140_v61, 2  ;;  %v951_v5 = vsel %vm928_vm3, %v8357_v52, -1e+30  ;;  %v931_v8 = vsel %vm928_vm3, %v8356_v53, %v8357_v52 }
 0x414   :  { %v946_v9 = vsel %vm928_vm3, -1e+30, %v8356_v53  ;;  %v8362_v10 = vunpack.i.h.bf16 %v8360_v57  ;;  %v978_v11 = vrot.slane %v951_v5, 7  ;;  %v976_v13 = vrot.slane %v931_v8, 7 }
 0x415   :  { %v974_v12 = vrot.slane %v946_v9, 7  ;;  %v8361_v14 = vunpack.i.l.bf16 %v8360_v57  ;;  %v1021_v16 = vrot.slane %v10143_v62, 1  ;;  %v1084_v17 = vrot.slane %v10134_v56, 2 }
 0x416   :  { %v952_v18 = vsel %vm928_vm3, %v8362_v10, -1e+30  ;;  %v1078_v19 = vrot.slane %v10143_v62, 2  ;;  %v10157_v0 = vsel %vm964_vm4, %v972_v47, %v978_v11  ;;  %v1025_v21 = vsel %vm535_vm0, %v1023_v59, %v1024_v63 }
 0x417   :  { %v984_v20 = vrot.slane %v952_v18, 7  ;;  %v10166_v26 = vsel %vm964_vm4, %v968_v50, %v974_v12  ;;  %v10169_v27 = vsel %vm964_vm4, %v970_v51, %v976_v13  ;;  %v1028_v28 = vsel %vm535_vm0, %v1026_v54, %v1027_v3 }
 0x418   :  { %v8365_v1 = vpop.permute.xlu0 %8364  ;;  %v1082_v7 = vsel %vm560_vm1, %v1080_v15, %v1081_v4  ;;  %v1033_v29 = vrot.slane %v10157_v0, 1  ;;  %v1090_v30 = vrot.slane %v10157_v0, 2  ;;  %v932_v32 = vsel %vm928_vm3, %v8361_v14, %v8362_v10 }
 0x419   :  { %v947_v33 = vsel %vm928_vm3, -1e+30, %v8361_v14  ;;  %v982_v35 = vrot.slane %v932_v32, 7  ;;  %v10182_v36 = vsel %vm964_vm4, %v978_v11, %v984_v20  ;;  %v8367_v37 = vunpack.i.h.bf16 %v8365_v1  ;;  %v8564_v14 = vld [vmem:[%s11198_s1 + $0x68] sm:$0xff]  }
 0x41a   :  { %v980_v34 = vrot.slane %v947_v33, 7  ;;  %v1029_v39 = vrot.slane %v10166_v26, 1  ;;  %v1031_v40 = vrot.slane %v10169_v27, 1  ;;  %v8366_v41 = vunpack.i.l.bf16 %v8365_v1  ;;  %7599 = vmatprep.subr.bf16.mxu1 %v8564_v14  ;;  %v8566_v33 = vld [vmem:[%s11198_s1 + $0x70] sm:$0xff]  }
 0x41b   :  { %v1063_v42 = vmax.f32 %v10128_v46, %v1025_v21  ;;  %v1086_v43 = vrot.slane %v10166_v26, 2  ;;  %v1088_v47 = vrot.slane %v10169_v27, 2  ;;  %v953_v48 = vsel %vm928_vm3, %v8367_v37, -1e+30 }
 0x41c   :  { %v1064_v49 = vmax.f32 %v10122_v44, %v1028_v28  ;;  %v10193_v50 = vsel %vm964_vm4, %v974_v12, %v980_v34  ;;  %v10196_v51 = vsel %vm964_vm4, %v976_v13, %v982_v35  ;;  %v1039_v52 = vrot.slane %v10182_v36, 1 }
 0x41d   :  { %v1096_v46 = vrot.slane %v10182_v36, 2  ;;  %v990_v53 = vrot.slane %v953_v48, 7  ;;  %v933_v54 = vsel %vm928_vm3, %v8366_v41, %v8367_v37  ;;  %v948_v57 = vsel %vm928_vm3, -1e+30, %v8366_v41  ;;  %vm10826_vm3 = vmpackc.low %vm1010_vm5, %vm10491_vm9 }
 0x41e   :  { %v1085_v59 = vsel %vm560_vm1, %v1083_v55, %v1084_v17  ;;  %v986_v5 = vrot.slane %v948_v57, 7  ;;  %v988_v8 = vrot.slane %v933_v54, 7  ;;  %v10207_v9 = vmax.f32 %v1063_v42, %v1082_v7  ;;  %v8565_v55 = vld [vmem:[%s11198_s1 + $0x28] sm:$0xff]  }
 0x41f   :  { %v1121_v10 = vmax.f32 %v1064_v49, %v1085_v59  ;;  %v1037_v11 = vrot.slane %v10196_v51, 1  ;;  %v991_v12 = vsel %vm964_vm4, %v984_v20, %v990_v53  ;;  %v1022_v13 = vsel %vm535_vm0, %v1020_v58, %v1021_v16  ;;  %7600 = vmatpush3.bf16.msra.mxu1 %v8565_v55  ;;  %v8568_v49 = vld [vmem:[%s11198_s1 + $0x78] sm:$0xff]  }
 0x420   :  { %v1030_v44 = vsel %vm535_vm0, %v1021_v16, %v1029_v39  ;;  %v10220_v15 = vsel %vm1010_vm5, %v991_v12, -1e+30  ;;  %v987_v18 = vsel %vm964_vm4, %v980_v34, %v986_v5  ;;  %v989_v1 = vsel %vm964_vm4, %v982_v35, %v988_v8  ;;  %v8567_v34 = vld [vmem:[%s11198_s1 + $0x30] sm:$0xff]   ;;  %7601 = vmatprep.subr.bf16.mxu1 %v8566_v33  ;;  %v8569_v53 = vld [vmem:[%s11198_s1 + $0x38] sm:$0xff]  }
 0x421   :  { %v8373_v21 = vpack.i.bf16 %v1121_v10, %v10207_v9  ;;  %v1094_v20 = vrot.slane %v10196_v51, 2  ;;  %v10227_v22 = vsel %vm1010_vm5, %v989_v1, -1e+30  ;;  %v1079_v58 = vsel %vm560_vm1, %v1077_v60, %v1078_v19 }
 0x422   :  { %v1045_v16 = vrot.slane %v10220_v15, 1  ;;  %v10236_v23 = vsel %vm1010_vm5, %v987_v18, -1e+30  ;;  %v1043_v25 = vrot.slane %v10227_v22, 1  ;;  %v1062_v28 = vmax.f32 %v10125_v45, %v1022_v13 }
 0x423   :  { %8374 = vrot.lane.b32.xlu0 %v8373_v21, %s9629_s2  ;;  %8369 = vrot.lane.b32.xlu1 %v8373_v21, %s9630_s7  ;;  %v1065_v60 = vmax.f32 %v10143_v62, %v1030_v44  ;;  %v1087_v7 = vsel %vm560_vm1, %v1078_v19, %v1086_v43  ;;  %v1032_v32 = vsel %vm535_vm0, %v1024_v63, %v1031_v40  ;;  %v1098_v59 = vrot.slane %v10236_v23, 2 }
 0x424   :  { %v1034_v45 = vsel %vm535_vm0, %v1027_v3, %v1033_v29  ;;  %v10258_v35 = vmax.f32 %v1062_v28, %v1079_v58  ;;  %v1066_v37 = vmax.f32 %v10140_v61, %v1032_v32  ;;  %v1089_v63 = vsel %vm560_vm1, %v1081_v4, %v1088_v47  ;;  %7602 = vmatpush3.bf16.msra.mxu1 %v8567_v34  ;;  %v1533_v32 = vld [vmem:[%s11199_s20] sm:$0xff] }
 0x425   :  { %v1067_v62 = vmax.f32 %v10134_v56, %v1034_v45  ;;  %v10267_v19 = vmax.f32 %v1065_v60, %v1087_v7  ;;  %v1091_v3 = vsel %vm560_vm1, %v1084_v17, %v1090_v30  ;;  %v1038_v38 = vsel %vm535_vm0, %v1031_v40, %v1037_v11  ;;  %7603 = vmatprep.subr.bf16.mxu1 %v8568_v49  ;;  %v3360_v45 = vld [vmem:[%s11200_s27 + $0x10] sm:$0x3] }
 0x426   :  { %v1040_v41 = vsel %vm535_vm0, %v1033_v29, %v1039_v52  ;;  %v10280_v61 = vmax.f32 %v1066_v37, %v1089_v63  ;;  %v1069_v42 = vmax.f32 %v10169_v27, %v1038_v38  ;;  %v1035_v56 = vrot.slane %v10193_v50, 1  ;;  %v3358_v37 = vld [vmem:[%s11200_s27] sm:$0xff] }
 0x427   :  { %v1124_v4 = vmax.f32 %v1067_v62, %v1091_v3  ;;  %v1070_v48 = vmax.f32 %v10157_v0, %v1040_v41  ;;  %v1041_v17 = vrot.slane %v10236_v23, 1  ;;  %v8383_v40 = vpack.i.bf16 %v10267_v19, %v10258_v35 }
 0x428   :  { %v1095_v54 = vsel %vm560_vm1, %v1088_v47, %v1094_v20  ;;  %v1097_v57 = vsel %vm560_vm1, %v1090_v30, %v1096_v46  ;;  %v1044_v5 = vsel %vm535_vm0, %v1037_v11, %v1043_v25  ;;  %v1046_v27 = vsel %vm535_vm0, %v1039_v52, %v1045_v16  ;;  %7604 = vmatpush3.bf16.msra.mxu1 %v8569_v53 }
 0x429   :  { %v8388_v29 = vpack.i.bf16 %v1124_v4, %v10280_v61  ;;  %8384 = vrot.lane.b32.xlu0 %v8383_v40, %s9629_s2  ;;  %8379 = vrot.lane.b32.xlu1 %v8383_v40, %s9630_s7  ;;  %v10312_v47 = vmax.f32 %v1069_v42, %v1095_v54  ;;  %v1127_v0 = vmax.f32 %v1070_v48, %v1097_v57  ;;  %v1100_v30 = vrot.slane %v10227_v22, 2 }
 0x42a   :  { %v1102_v8 = vrot.slane %v10220_v15, 2  ;;  %v1072_v10 = vmax.f32 %v10196_v51, %v1044_v5  ;;  %v1073_v12 = vmax.f32 %v10182_v36, %v1046_v27  ;;  %v1036_v11 = vsel %vm535_vm0, %v1029_v39, %v1035_v56 }
 0x42b   :  { %v1042_v13 = vsel %vm535_vm0, %v1035_v56, %v1041_v17  ;;  %v1092_v52 = vrot.slane %v10193_v50, 2  ;;  %v1068_v14 = vmax.f32 %v10166_v26, %v1036_v11  ;;  %v8403_v55 = vpack.i.bf16 %v1127_v0, %v10312_v47 }
 0x42c   :  { %v1071_v44 = vmax.f32 %v10193_v50, %v1042_v13  ;;  %v1101_v18 = vsel %vm560_vm1, %v1094_v20, %v1100_v30  ;;  %v1103_v39 = vsel %vm560_vm1, %v1096_v46, %v1102_v8  ;;  %v1075_v20 = vmax.f32 %v10227_v22, %v1043_v25  ;;  %v3359_v25 = vld [vmem:[%s11200_s27 + $0x8] sm:$0xff] }
 0x42d   :  { %8389 = vrot.lane.b32.xlu0 %v8388_v29, %s9630_s7  ;;  %8394 = vrot.lane.b32.xlu1 %v8388_v29, %s9629_s2  ;;  %v1099_v1 = vsel %vm560_vm1, %v1092_v52, %v1098_v59  ;;  %v10335_v21 = vmax.f32 %v1072_v10, %v1101_v18  ;;  %v1130_v50 = vmax.f32 %v1073_v12, %v1103_v39  ;;  %v3383_v33 = vsub.f32 1.0, %v3359_v25 }
 0x42e   :  { %v10337_v58 = vmax.f32 %v1071_v44, %v1099_v1  ;;  %v1093_v28 = vsel %vm560_vm1, %v1086_v43, %v1092_v52  ;;  %v1076_v26 = vmax.f32 %v10220_v15, %v1045_v16  ;;  %v1074_v43 = vmax.f32 %v10236_v23, %v1041_v17  ;;  %v1535_v16 = vld [vmem:[%s11199_s20 + $0x10] sm:$0x3]  ;;  %v1534_v23 = vld [vmem:[%s11199_s20 + $0x8] sm:$0xff] }
 0x42f   :  { %v10344_v51 = vmax.f32 %v1068_v14, %v1093_v28  ;;  %v8413_v36 = vpack.i.bf16 %v1130_v50, %v10335_v21  ;;  %v10358_v60 = vmax.f32 %v1075_v20, %v1100_v30  ;;  %v3384_v34 = vsub.f32 1.0, %v3360_v45 }
 0x430   :  { %v1133_v7 = vmax.f32 %v1076_v26, %v1102_v8  ;;  %v10362_v22 = vmax.f32 %v1074_v43, %v1098_v59  ;;  %v3386_v62 = vmul.f32 -1e+30, %v3383_v33  ;;  %v3382_v63 = vsub.f32 1.0, %v3358_v37 }
 0x431   :  { %8404 = vrot.lane.b32.xlu0 %v8403_v55, %s9629_s2  ;;  %8399 = vrot.lane.b32.xlu1 %v8403_v55, %s9630_s7  ;;  %v8408_v46 = vpack.i.bf16 %v10337_v58, %v10344_v51  ;;  %v3387_v3 = vmul.f32 -1e+30, %v3384_v34 }
 0x432   :  { %v8428_v15 = vpack.i.bf16 %v1133_v7, %v10358_v60  ;;  %v3385_v38 = vmul.f32 -1e+30, %v3382_v63 }
 0x435   :  { %8414 = vrot.lane.b32.xlu0 %v8413_v36, %s9630_s7  ;;  %8409 = vrot.lane.b32.xlu1 %v8408_v46, %s9630_s7 }
 0x439   :  { %8419 = vrot.lane.b32.xlu0 %v8408_v46, %s9629_s2  ;;  %8424 = vrot.lane.b32.xlu1 %v8413_v36, %s9629_s2 }
 0x43d   :  { %1173 = vrot.lane.b32.xlu0 %v10362_v22, %s9630_s7  ;;  %8429 = vrot.lane.b32.xlu1 %v8428_v15, %s9630_s7 }
 0x441   :  { %1234 = vrot.lane.b32.xlu0 %v10362_v22, %s9629_s2  ;;  %8434 = vrot.lane.b32.xlu1 %v8428_v15, %s9629_s2 }
 0x445   :  { %1874 = vperm.xlu0 %8342, %v1535_v16   ;;  %1869 = vperm.xlu1 %8341, %v1534_v23  }
 0x449   :  { %3368 = vperm.xlu0 %8342, %v3359_v25   ;;  %1864 = vperm.xlu1 %8341, %v1533_v32  }
 0x44d   :  { %3363 = vperm.xlu0 %8342, %v3358_v37   ;;  %3373 = vperm.xlu1 %8341, %v3360_v45  }
 0x451   :  { %3400 = vperm.xlu0 %8342, %v3387_v3   ;;  %3395 = vperm.xlu1 %8341, %v3386_v62  }
 0x455   :  { %3390 = vperm.xlu1 %8341, %v3385_v38  }
 0x495   :  { %v8375_v41 = vpop.permute.xlu0 %8374  ;;  %v8370_v4 = vpop.permute.xlu1 %8369 }
 0x496   :  { %v8372_v42 = vunpack.i.h.bf16 %v8370_v4  ;;  %v8371_v48 = vunpack.i.l.bf16 %v8370_v4  ;;  %v8377_v29 = vunpack.i.h.bf16 %v8375_v41  ;;  %v8376_v54 = vunpack.i.l.bf16 %v8375_v41 }
 0x498   :  { %v1181_v53 = vsel %vm1179_vm6, %v8371_v48, %v8372_v42  ;;  %v1242_v50 = vsel %vm1240_vm7, %v8376_v54, %v8377_v29 }
 0x499   :  { %v1201_v11 = vmax.f32 %v10207_v9, %v1181_v53 }
 0x49b   :  { %v8385_v56 = vpop.permute.xlu0 %8384  ;;  %v8380_v17 = vpop.permute.xlu1 %8379  ;;  %v1262_v46 = vmax.f32 %v1201_v11, %v1242_v50 }
 0x49c   :  { %v8381_v40 = vunpack.i.l.bf16 %v8380_v17  ;;  %v8386_v57 = vunpack.i.l.bf16 %v8385_v56  ;;  %v8382_v59 = vunpack.i.h.bf16 %v8380_v17  ;;  %v8387_v13 = vunpack.i.h.bf16 %v8385_v56 }
 0x49e   :  { %v1180_v49 = vsel %vm1179_vm6, %v8381_v40, %v8371_v48  ;;  %v1241_v14 = vsel %vm1240_vm7, %v8386_v57, %v8376_v54 }
 0x49f   :  { %v8390_v5 = vpop.permute.xlu0 %8389  ;;  %v8395_v27 = vpop.permute.xlu1 %8394  ;;  %v1200_v12 = vmax.f32 %v10258_v35, %v1180_v49 }
 0x4a0   :  { %v8392_v0 = vunpack.i.h.bf16 %v8390_v5  ;;  %v8391_v30 = vunpack.i.l.bf16 %v8390_v5  ;;  %v8397_v8 = vunpack.i.h.bf16 %v8395_v27  ;;  %v8396_v10 = vunpack.i.l.bf16 %v8395_v27 }
 0x4a1   :  { %v1261_v26 = vmax.f32 %v1200_v12, %v1241_v14 }
 0x4a2   :  { %v1182_v52 = vsel %vm1179_vm6, %v8382_v59, %v8391_v30  ;;  %v1183_v44 = vsel %vm1179_vm6, %v8391_v30, %v8392_v0  ;;  %v1243_v28 = vsel %vm1240_vm7, %v8387_v13, %v8396_v10  ;;  %v1244_v9 = vsel %vm1240_vm7, %v8396_v10, %v8397_v8 }
 0x4a3   :  { %v1202_v55 = vmax.f32 %v10267_v19, %v1182_v52  ;;  %v8405_v18 = vpop.permute.xlu0 %8404  ;;  %v8400_v39 = vpop.permute.xlu1 %8399  ;;  %v1203_v1 = vmax.f32 %v10280_v61, %v1183_v44 }
 0x4a4   :  { %v8402_v35 = vunpack.i.h.bf16 %v8400_v39  ;;  %v8401_v36 = vunpack.i.l.bf16 %v8400_v39  ;;  %v8407_v33 = vunpack.i.h.bf16 %v8405_v18  ;;  %v8406_v34 = vunpack.i.l.bf16 %v8405_v18 }
 0x4a5   :  { %v1264_v20 = vmax.f32 %v1203_v1, %v1244_v9  ;;  %v1263_v43 = vmax.f32 %v1202_v55, %v1243_v28  ;;  %v8575_v9 = vld [vmem:[%s11201_s11 + $0x48] sm:$0xff]  }
 0x4a6   :  { %v1185_v7 = vsel %vm1179_vm6, %v8401_v36, %v8402_v35  ;;  %v1246_v53 = vsel %vm1240_vm7, %v8406_v34, %v8407_v33 }
 0x4a7   :  { %v8415_v15 = vpop.permute.xlu0 %8414  ;;  %v8410_v19 = vpop.permute.xlu1 %8409  ;;  %v1272_v16 = vpack.c.bf16 %v1264_v20, %v1262_v46  ;;  %v1271_v23 = vpack.c.bf16 %v1263_v43, %v1261_v26  ;;  %v1205_v3 = vmax.f32 %v10312_v47, %v1185_v7  ;;  %v8577_v46 = vld [vmem:[%s11201_s11 + $0x8] sm:$0xff]   ;;  %v8578_v20 = vld [vmem:[%s11201_s11 + $0x50] sm:$0xff]   ;;  %v8581_v43 = vld [vmem:[%s11201_s11 + $0x58] sm:$0xff]  }
 0x4a8   :  { %v8417_v25 = vunpack.i.h.bf16 %v8415_v15  ;;  %v8416_v61 = vunpack.i.l.bf16 %v8415_v15  ;;  %v8412_v32 = vunpack.i.h.bf16 %v8410_v19  ;;  %v8411_v45 = vunpack.i.l.bf16 %v8410_v19  ;;  %v8580_v26 = vld [vmem:[%s11201_s11 + $0x10] sm:$0xff]   ;;  %v8583_v7 = vld [vmem:[%s11201_s11 + $0x18] sm:$0xff]   ;;  %v8584_v15 = vld [vmem:[%s11201_s11 + $0x60] sm:$0xff]  }
 0x4a9   :  { %1437 = vmatprep.mubr.bf16.mxu1 %v1272_v16  ;;  %v1266_v5 = vmax.f32 %v1205_v3, %v1246_v53  ;;  %v8586_v19 = vld [vmem:[%s11201_s11 + $0x20] sm:$0xff]  }
 0x4aa   :  { %v1187_v37 = vsel %vm1179_vm6, %v8416_v61, %v8417_v25  ;;  %v1186_v62 = vsel %vm1179_vm6, %v8412_v32, %v8416_v61  ;;  %v1184_v63 = vsel %vm1179_vm6, %v8411_v45, %v8401_v36  ;;  %1438 = vmatmul.mubr.bf16.vlgmr.msra.gmra.mrb[0].mxu1 %v1271_v23  ;;  %v8570_v36 = vld [vmem:[#allocation12] sm:$0xff]  }
 0x4ab   :  { %v8420_v38 = vpop.permute.xlu0 %8419  ;;  %v8425_v41 = vpop.permute.xlu1 %8424  ;;  %v1207_v17 = vmax.f32 %v10335_v21, %v1187_v37  ;;  %v1206_v40 = vmax.f32 %v10337_v58, %v1186_v62  ;;  %v1204_v49 = vmax.f32 %v10344_v51, %v1184_v63 }
 0x4ac   :  { %v8422_v4 = vunpack.i.h.bf16 %v8420_v38  ;;  %v8421_v42 = vunpack.i.l.bf16 %v8420_v38  ;;  %v8427_v48 = vunpack.i.h.bf16 %v8425_v41  ;;  %v8426_v56 = vunpack.i.l.bf16 %v8425_v41 }
 0x4ae   :  { %v1245_v29 = vsel %vm1240_vm7, %v8421_v42, %v8406_v34  ;;  %v1247_v54 = vsel %vm1240_vm7, %v8422_v4, %v8426_v56  ;;  %v1248_v47 = vsel %vm1240_vm7, %v8426_v56, %v8427_v48 }
 0x4af   :  { %v1174_v57 = vpop.permute.xlu0 %1173  ;;  %v8430_v59 = vpop.permute.xlu1 %8429  ;;  %v1268_v27 = vmax.f32 %v1207_v17, %v1248_v47  ;;  %v1265_v0 = vmax.f32 %v1204_v49, %v1245_v29  ;;  %v1267_v30 = vmax.f32 %v1206_v40, %v1247_v54  ;;  %v8573_v49 = vld [vmem:[%s11201_s11 + $0x80] sm:$0xff]   ;;  %v8571_v29 = vld [vmem:[#allocation12 + $0x8] ss:$0 sps:$4 sm:$0x33]   ;;  %v8576_v54 = vld [vmem:[%s11201_s11 + $0x88] sm:$0xff]  }
 0x4b0   :  { %v8432_v8 = vunpack.i.h.bf16 %v8430_v59  ;;  %v8431_v21 = vunpack.i.l.bf16 %v8430_v59  ;;  %v8579_v47 = vld [vmem:[%s11201_s11 + $0x90] sm:$0xff]   ;;  %v8585_v59 = vld [vmem:[%s11201_s11 + $0xa0] sm:$0xff]  }
 0x4b1   :  { %v1274_v10 = vpack.c.bf16 %v1268_v27, %v1266_v5  ;;  %v1273_v58 = vpack.c.bf16 %v1267_v30, %v1265_v0  ;;  %v8587_v5 = vld [vmem:[%s11201_s11 + $0x68] sm:$0xff]   ;;  %v8590_v30 = vld [vmem:[%s11201_s11 + $0x70] sm:$0xff]  }
 0x4b2   :  { %v1188_v51 = vsel %vm1179_vm6, %v1174_v57, %v8431_v21  ;;  %v1189_v12 = vsel %vm1179_vm6, %v8431_v21, %v8432_v8  ;;  %v8582_v57 = vld [vmem:[%s11201_s11 + $0x98] sm:$0xff]   ;;  %v8588_v27 = vld [vmem:[%s11201_s11 + $0xa8] sm:$0xff]   ;;  %v8591_v8 = vld [vmem:[%s11201_s11 + $0xb0] sm:$0xff]  }
 0x4b3   :  { %v8435_v11 = vpop.permute.xlu1 %8434  ;;  %1445 = vmatprep.mubr.bf16.mxu1 %v1274_v10  ;;  %v1235_v44 = vpop.permute.xlu0 %1234  ;;  %v1209_v14 = vmax.f32 %v10358_v60, %v1189_v12  ;;  %v1208_v55 = vmax.f32 %v10362_v22, %v1188_v51  ;;  %v8572_v60 = vld [vmem:[%s11201_s11 + $0x40] sm:$0xff]   ;;  %v8589_v0 = vld [vmem:[%s11201_s11 + $0x28] sm:$0xff]   ;;  %v8592_v21 = vld [vmem:[%s11201_s11 + $0x30] sm:$0xff]  }
 0x4b4   :  { %v8437_v13 = vunpack.i.h.bf16 %v8435_v11  ;;  %v8436_v52 = vunpack.i.l.bf16 %v8435_v11  ;;  %1446 = vmatmul.mubr.bf16.gmra.mrb[4].mxu1 %v1273_v58  ;;  %v8574_v22 = vld [vmem:[%s11201_s11] sm:$0xff]   ;;  %7628 = vmatprep.subr.bf16.mxu0 %v8572_v60  ;;  %v8593_v10 = vld [vmem:[%s11201_s11 + $0x78] sm:$0xff]  }
 0x4b5   :  { %7629 = vmatpush3.bf16.msra.mxu0 %v8574_v22  ;;  %v8594_v58 = vld [vmem:[%s11201_s11 + $0xb8] sm:$0xff]   ;;  %v8596_v12 = vld [vmem:[%s11202_s21 + $0x40] sm:$0xff]  }
 0x4b6   :  { %v1250_v18 = vsel %vm1240_vm7, %v8436_v52, %v8437_v13  ;;  %v1249_v39 = vsel %vm1240_vm7, %v1235_v44, %v8436_v52  ;;  %7630 = vmatprep.subr.bf16.mxu0 %v8575_v9  ;;  %v8595_v51 = vld [vmem:[%s11201_s11 + $0x38] sm:$0xff]   ;;  %v8597_v11 = vld [vmem:[%s11202_s21 + $0x80] sm:$0xff]  }
 0x4b7   :  { %v1270_v1 = vmax.f32 %v1209_v14, %v1250_v18  ;;  %v1269_v50 = vmax.f32 %v1208_v55, %v1249_v39 }
 0x4b9   :  { %v1276_v28 = vpack.c.bf16 %v1270_v1, %v1270_v1  ;;  %v1275_v35 = vpack.c.bf16 %v1269_v50, %v1269_v50  ;;  %7631 = vmatpush3.bf16.msra.mxu0 %v8577_v46 }
 0x4ba   :  { %7632 = vmatprep.subr.bf16.mxu0 %v8578_v20 }
 0x4bb   :  { %1453 = vmatprep.mubr.bf16.mxu1 %v1276_v28 }
 0x4bc   :  { %1454 = vmatmul.mubr.bf16.gmra.mrb[8].mxu1 %v1275_v35 }
 0x4bd   :  { %7983 = vmatprep.mubr.msk.bf16.mxu1 %vm1475_vm8, %v8570_v36  ;;  %7633 = vmatpush3.bf16.msra.mxu0 %v8580_v26 }
 0x4be   :  { %7634 = vmatprep.subr.bf16.mxu0 %v8581_v43 }
 0x4c1   :  { %7635 = vmatpush3.bf16.msra.mxu0 %v8583_v7 }
 0x4c2   :  { %7636 = vmatprep.subr.bf16.mxu0 %v8584_v15 }
 0x4c5   :  { %7637 = vmatpush3.bf16.msra.mxu0 %v8586_v19 }
 0x4c6   :  { %7638 = vmatprep.subr.bf16.mxu0 %v8587_v5  ;;  %v8619_v5 = vld [vmem:[%s11202_s21 + $0x38] sm:$0xff]  }
 0x4c9   :  { %7639 = vmatpush3.bf16.msra.mxu0 %v8589_v0 }
 0x4ca   :  { %7640 = vmatprep.subr.bf16.mxu0 %v8590_v30 }
 0x4cd   :  { %7641 = vmatpush3.bf16.msra.mxu0 %v8592_v21  ;;  %v7189_v21 = vld [vmem:[#allocation4] ss:$0 sm:$0xff] }
 0x4ce   :  { %7642 = vmatprep.subr.bf16.mxu0 %v8593_v10 }
 0x4d1   :  { %7643 = vmatpush3.bf16.msra.mxu0 %v8595_v51 }
 0x4d2   :  { %7666 = vmatprep.subr.bf16.mxu0 %v8596_v12 }
 0x57d   :  { %v7605_v16 = vpop.f32.mrb[0].mxu1 }
 0x57e   :  { %v7606_v23 = vpop.f32.mrb[1].mxu1 }
 0x57f   :  { %v7607_v25 = vadd.f32 %v7606_v23, %v7605_v16  ;;  %v7608_v61 = vpop.f32.mrb[2].mxu1 }
 0x580   :  { %v7609_v32 = vpop.f32.mrb[3].mxu1 }
 0x581   :  { %v7610_v45 = vadd.f32 %v7609_v32, %v7608_v61  ;;  %v8598_v61 = vld [vmem:[%s11202_s21] sm:$0xff]  }
 0x583   :  { %v1464_v33 = vpack.c.bf16 %v7610_v45, %v7607_v25 }
 0x585   :  { %7977 = vmatprep.subr.bf16.mxu1 %v1464_v33 }
 0x586   :  { %7978 = vmatpush3.bf16.msra.mxu1 %v1464_v33 }
 0x587   :  { %v7611_v34 = vpop.f32.mrb[4].mxu1 }
 0x588   :  { %v7612_v37 = vpop.f32.mrb[5].mxu1 }
 0x589   :  { %v7613_v62 = vadd.f32 %v7612_v37, %v7611_v34  ;;  %v7614_v63 = vpop.f32.mrb[6].mxu1  ;;  %v8599_v34 = vld [vmem:[%s11202_s21 + $0x48] sm:$0xff]  }
 0x58a   :  { %v7615_v3 = vpop.f32.mrb[7].mxu1  ;;  %v8600_v37 = vld [vmem:[%s11202_s21 + $0x88] sm:$0xff]  }
 0x58b   :  { %v7616_v38 = vadd.f32 %v7615_v3, %v7614_v63  ;;  %v8602_v63 = vld [vmem:[%s11202_s21 + $0x50] sm:$0xff]  }
 0x58c   :  { %v8603_v3 = vld [vmem:[%s11202_s21 + $0x90] sm:$0xff]  }
 0x58d   :  { %v1465_v41 = vpack.c.bf16 %v7616_v38, %v7613_v62  ;;  %v8601_v62 = vld [vmem:[%s11202_s21 + $0x8] sm:$0xff]   ;;  %v8604_v38 = vld [vmem:[%s11202_s21 + $0x10] sm:$0xff]  }
 0x58f   :  { %v7617_v4 = vpop.f32.mrb[8].mxu1  ;;  %7979 = vmatprep.subr.bf16.mxu1 %v1465_v41 }
 0x590   :  { %v7618_v42 = vpop.f32.mrb[9].mxu1  ;;  %7980 = vmatpush3.bf16.msra.mxu1 %v1465_v41  ;;  %v8605_v41 = vld [vmem:[%s11202_s21 + $0x58] sm:$0xff]  }
 0x591   :  { %v7619_v48 = vadd.f32 %v7618_v42, %v7617_v4  ;;  %v7620_v56 = vpop.f32.mrb[10].mxu1  ;;  %v8606_v4 = vld [vmem:[%s11202_s21 + $0x98] sm:$0xff]  }
 0x592   :  { %v7621_v17 = vpop.f32.mrb[11].mxu1  ;;  %v8607_v42 = vld [vmem:[%s11202_s21 + $0x18] sm:$0xff]   ;;  %v8609_v56 = vld [vmem:[%s11202_s21 + $0xa0] sm:$0xff]  }
 0x593   :  { %v1466_v40 = vpack.c.bf16 %v7619_v48, %v7619_v48  ;;  %v8608_v48 = vld [vmem:[%s11202_s21 + $0x60] sm:$0xff]  }
 0x594   :  { %v8610_v17 = vld [vmem:[%s11202_s21 + $0x20] sm:$0xff]  }
 0x595   :  { %v1483_v53 = vsel %vm964_vm4, %v1466_v40, 0  ;;  %8239 = vmatprep.subr.msk.bf16.mxu1 %vm964_vm4, %v1466_v40  ;;  %v8611_v40 = vld [vmem:[%s11202_s21 + $0x68] sm:$0xff]  }
 0x596   :  { %7982 = vmatpush3.bf16.msra.mxu1 %v1483_v53  ;;  %v8613_v53 = vld [vmem:[%s11202_s21 + $0x28] sm:$0xff]  }
 0x597   :  { %7987 = vmatprep.subr.bf16.mxu1 %v8573_v49 }
 0x599   :  { %7984 = vmatmul.mubr.msk.bf16.vlgmr.msra.gmra.mrb[12].mxu1 %vm1475_vm8, %v8571_v29  ;;  %v8614_v29 = vld [vmem:[%s11202_s21 + $0x70] sm:$0xff]  }
 0x59a   :  { %7988 = vmatpush3.bf16.msra.mxu1 %v8573_v49  ;;  %v8612_v49 = vld [vmem:[%s11202_s21 + $0xa8] sm:$0xff]  }
 0x59b   :  { %7989 = vmatprep.subr.bf16.mxu1 %v8576_v54 }
 0x59e   :  { %7990 = vmatpush3.bf16.msra.mxu1 %v8576_v54  ;;  %v8615_v54 = vld [vmem:[%s11202_s21 + $0xb0] sm:$0xff]  }
 0x59f   :  { %7991 = vmatprep.subr.bf16.mxu1 %v8579_v47 }
 0x5a2   :  { %7992 = vmatpush3.bf16.msra.mxu1 %v8579_v47  ;;  %v8616_v47 = vld [vmem:[%s11202_s21 + $0x30] sm:$0xff]  }
 0x5a3   :  { %7993 = vmatprep.subr.bf16.mxu1 %v8582_v57 }
 0x5a6   :  { %7994 = vmatpush3.bf16.msra.mxu1 %v8582_v57  ;;  %v8617_v57 = vld [vmem:[%s11202_s21 + $0x78] sm:$0xff]  }
 0x5a7   :  { %7995 = vmatprep.subr.bf16.mxu1 %v8585_v59 }
 0x5aa   :  { %7996 = vmatpush3.bf16.msra.mxu1 %v8585_v59  ;;  %v8618_v59 = vld [vmem:[%s11202_s21 + $0xb8] sm:$0xff]  }
 0x5ab   :  { %7997 = vmatprep.subr.bf16.mxu1 %v8588_v27 }
 0x5ae   :  { %7998 = vmatpush3.bf16.msra.mxu1 %v8588_v27  ;;  %v10475_v27 = vpop.permute.xlu1 %1869 }
 0x5af   :  { %7999 = vmatprep.subr.bf16.mxu1 %v8591_v8 }
 0x5b2   :  { %8000 = vmatpush3.bf16.msra.mxu1 %v8591_v8 }
 0x5b3   :  { %8001 = vmatprep.subr.bf16.mxu1 %v8594_v58 }
 0x5b6   :  { %8002 = vmatpush3.bf16.msra.mxu1 %v8594_v58 }
 0x5b7   :  { %8007 = vmatprep.subr.bf16.mxu1 %v8597_v11 }
 0x66c   :  { %v10437_v13 = vpop.f32.mrb[12].mxu1 }
 0x66d   :  { %v1538_v52 = vmax.f32 %v10437_v13, 0.0  ;;  %v1519_v44 = vpop.f32.mrb[13].mxu1  ;;  %v2218_v39 = vrot.slane %v10437_v13, 1 }
 0x66e   :  { %v1536_v14 = vmax.f32 %v1519_v44, 0.0  ;;  %v7986_v55 = vpop.f32.mrb[14].mxu1  ;;  %v2215_v1 = vrot.slane %v1519_v44, 1 }
 0x66f   :  { %v1522_v18 = vpop.f32.mrb[15].mxu1  ;;  %v1545_v35 = vrot.slane %v1538_v52, 1  ;;  %v1553_v36 = vrot.slane %v1538_v52, 2  ;;  %v1561_v33 = vpack.c.bf16 %v1538_v52, %v1538_v52 }
 0x670   :  { %v1537_v50 = vmax.f32 %v1522_v18, 0.0  ;;  %v2216_v28 = vrot.slane %v1522_v18, 1  ;;  %v1542_v60 = vrot.slane %v1536_v14, 1  ;;  %v1550_v22 = vrot.slane %v1536_v14, 2 }
 0x671   :  { %v1563_v32 = vpack.c.bf16 %v1553_v36, %v1553_v36  ;;  %v1562_v45 = vpack.c.bf16 %v1545_v35, %v1545_v35 }
 0x672   :  { %v1543_v9 = vrot.slane %v1537_v50, 1  ;;  %v1551_v46 = vrot.slane %v1537_v50, 2  ;;  %v1558_v20 = vpack.c.bf16 %v1537_v50, %v1536_v14  ;;  %v10442_v26 = vsel %vm535_vm0, %v2215_v1, %v2216_v28 }
 0x673   :  { %v10447_v43 = vsel %vm535_vm0, %v2216_v28, %v2218_v39 }
 0x674   :  { %v1544_v7 = vsel %vm535_vm0, %v1542_v60, %v1543_v9  ;;  %v1546_v15 = vsel %vm535_vm0, %v1543_v9, %v1545_v35  ;;  %v1552_v19 = vsel %vm560_vm1, %v1550_v22, %v1551_v46  ;;  %v1554_v16 = vsel %vm560_vm1, %v1551_v46, %v1553_v36  ;;  %v10477_v35 = vpop.permute.xlu1 %1864 }
 0x675   :  { %v1559_v23 = vpack.c.bf16 %v1546_v15, %v1544_v7  ;;  %v1560_v25 = vpack.c.bf16 %v1554_v16, %v1552_v19 }
 0x677   :  { %1795 = vmatprep.mubr.bf16.mxu0 %v1559_v23  ;;  %8003 = vmatprep.mubr.bf16.mxu1 %v1560_v25 }
 0x678   :  { %1796 = vmatmul.mubr.bf16.vlgmr.msra.gmra.mrb[12].mxu0 %v1558_v20  ;;  %8004 = vmatmul.mubr.bf16.vlgmr.msra.gmra.mrb[16].mxu1 %v1563_v32 }
 0x679   :  { %1803 = vmatprep.mubr.bf16.mxu0 %v1562_v45  ;;  %7667 = vmatpush3.bf16.msra.mxu0 %v8598_v61 }
 0x67a   :  { %8008 = vmatpush3.bf16.msra.mxu1 %v8597_v11  ;;  %7668 = vmatprep.subr.bf16.mxu0 %v8599_v34 }
 0x67b   :  { %8009 = vmatprep.subr.bf16.mxu1 %v8600_v37 }
 0x67d   :  { %7669 = vmatpush3.bf16.msra.mxu0 %v8601_v62 }
 0x67e   :  { %8010 = vmatpush3.bf16.msra.mxu1 %v8600_v37  ;;  %7670 = vmatprep.subr.bf16.mxu0 %v8602_v63 }
 0x67f   :  { %8011 = vmatprep.subr.bf16.mxu1 %v8603_v3 }
 0x680   :  { %1804 = vmatmul.mubr.bf16.gmra.mrb[16].mxu0 %v1561_v33  ;;  %v10483_v33 = vpop.permute.xlu0 %1874 }
 0x681   :  { %7671 = vmatpush3.bf16.msra.mxu0 %v8604_v38 }
 0x682   :  { %8012 = vmatpush3.bf16.msra.mxu1 %v8603_v3  ;;  %7672 = vmatprep.subr.bf16.mxu0 %v8605_v41 }
 0x683   :  { %8013 = vmatprep.subr.bf16.mxu1 %v8606_v4 }
 0x685   :  { %7673 = vmatpush3.bf16.msra.mxu0 %v8607_v42 }
 0x686   :  { %8014 = vmatpush3.bf16.msra.mxu1 %v8606_v4  ;;  %7674 = vmatprep.subr.bf16.mxu0 %v8608_v48 }
 0x687   :  { %8015 = vmatprep.subr.bf16.mxu1 %v8609_v56 }
 0x689   :  { %7675 = vmatpush3.bf16.msra.mxu0 %v8610_v17 }
 0x68a   :  { %8016 = vmatpush3.bf16.msra.mxu1 %v8609_v56  ;;  %7676 = vmatprep.subr.bf16.mxu0 %v8611_v40  ;;  %v8810_v40 = vld [vmem:[#allocation21 + $0x8] sm:$0xff]  }
 0x68b   :  { %8017 = vmatprep.subr.bf16.mxu1 %v8612_v49 }
 0x68d   :  { %7677 = vmatpush3.bf16.msra.mxu0 %v8613_v53 }
 0x68e   :  { %8018 = vmatpush3.bf16.msra.mxu1 %v8612_v49  ;;  %7678 = vmatprep.subr.bf16.mxu0 %v8614_v29 }
 0x68f   :  { %8019 = vmatprep.subr.bf16.mxu1 %v8615_v54 }
 0x691   :  { %7679 = vmatpush3.bf16.msra.mxu0 %v8616_v47  ;;  %v8725_v47 = vld [vmem:[%s11211_s6 + $0x130] ss:$8 sps:$4 sm:$0xff]  }
 0x692   :  { %8020 = vmatpush3.bf16.msra.mxu1 %v8615_v54  ;;  %7680 = vmatprep.subr.bf16.mxu0 %v8617_v57 }
 0x693   :  { %8021 = vmatprep.subr.bf16.mxu1 %v8618_v59 }
 0x695   :  { %7681 = vmatpush3.bf16.msra.mxu0 %v8619_v5  ;;  %v8734_v5 = vld [vmem:[%s11211_s6 + $0x160] ss:$8 sps:$4 sm:$0xff]  }
 0x696   :  { %8022 = vmatpush3.bf16.msra.mxu1 %v8618_v59 }
 0x74b   :  { %v7644_v0 = vpop.f32.mrb[12].mxu0  ;;  %v8005_v30 = vpop.f32.mrb[16].mxu1 }
 0x74c   :  { %v7645_v8 = vpop.f32.mrb[13].mxu0  ;;  %v1845_v10 = vpop.f32.mrb[17].mxu1 }
 0x74d   :  { %v7646_v58 = vadd.f32 %v7645_v8, %v7644_v0  ;;  %v7647_v51 = vpop.f32.mrb[14].mxu0  ;;  %v8006_v12 = vpop.f32.mrb[18].mxu1  ;;  %v8621_v8 = vld [vmem:[%s11205_s15 + $0x80] sm:$0xff]  }
 0x74e   :  { %v7648_v11 = vpop.f32.mrb[15].mxu0  ;;  %v1848_v52 = vpop.f32.mrb[19].mxu1  ;;  %8027 = vmatprep.subr.bf16.mxu1 %v8621_v8  ;;  %v8626_v12 = vld [vmem:[%s11205_s15 + $0x50] sm:$0xff]  }
 0x74f   :  { %v1798_v44 = vadd.f32 %v7646_v58, %v7189_v21  ;;  %v7649_v14 = vadd.f32 %v7648_v11, %v7647_v51  ;;  %v8624_v58 = vld [vmem:[%s11205_s15 + $0x88] sm:$0xff]   ;;  %v8627_v11 = vld [vmem:[%s11205_s15 + $0x90] sm:$0xff]  }
 0x750   :  { %v8625_v51 = vld [vmem:[%s11205_s15 + $0x8] sm:$0xff]  }
 0x751   :  { %v1846_v55 = vadd.f32 %v1845_v10, %v1798_v44  ;;  %v1801_v18 = vadd.f32 %v7649_v14, %v7189_v21  ;;  %v8623_v10 = vld [vmem:[%s11205_s15 + $0x48] sm:$0xff]   ;;  %v8629_v44 = vld [vmem:[%s11205_s15 + $0x58] sm:$0xff]  }
 0x752   :  { %v8630_v14 = vld [vmem:[%s11205_s15 + $0x98] sm:$0xff]  }
 0x753   :  { %v1859_v1 = vmax.f32 %v1846_v55, 0.0  ;;  %v1849_v50 = vadd.f32 %v1848_v52, %v1801_v18  ;;  %v7650_v28 = vpop.f32.mrb[16].mxu0  ;;  %v8628_v52 = vld [vmem:[%s11205_s15 + $0x10] sm:$0xff]   ;;  %v8631_v55 = vld [vmem:[%s11205_s15 + $0x18] sm:$0xff]   ;;  %v8632_v18 = vld [vmem:[%s11205_s15 + $0x60] sm:$0xff]  }
 0x754   :  { %v7651_v36 = vpop.f32.mrb[17].mxu0 }
 0x755   :  { %v1877_v60 = vmul.f32 %v10477_v35, %v1859_v1  ;;  %v1860_v22 = vmax.f32 %v1849_v50, 0.0  ;;  %v7652_v9 = vadd.f32 %v7651_v36, %v7650_v28  ;;  %v7653_v46 = vpop.f32.mrb[18].mxu0  ;;  %v8633_v1 = vld [vmem:[%s11205_s15 + $0xa0] sm:$0xff]   ;;  %v8635_v28 = vld [vmem:[%s11205_s15 + $0x68] sm:$0xff]  }
 0x756   :  { %v7654_v20 = vpop.f32.mrb[19].mxu0  ;;  %v8634_v50 = vld [vmem:[%s11205_s15 + $0x20] sm:$0xff]   ;;  %v8636_v36 = vld [vmem:[%s11205_s15 + $0xa8] sm:$0xff]   ;;  %v8640_v46 = vld [vmem:[%s11205_s15 + $0x30] sm:$0xff]  }
 0x757   :  { %v1883_v7 = vrot.slane %v1877_v60, 7  ;;  %v1878_v15 = vmul.f32 %v10475_v27, %v1860_v22  ;;  %v1806_v19 = vadd.f32 %v7652_v9, %v7189_v21  ;;  %v8622_v21 = vld [vmem:[%s11205_s15] sm:$0xff]   ;;  %v8637_v60 = vld [vmem:[%s11205_s15 + $0x28] sm:$0xff]   ;;  %v8638_v22 = vld [vmem:[%s11205_s15 + $0x70] sm:$0xff]  }
 0x758   :  { %v8639_v9 = vld [vmem:[%s11205_s15 + $0xb0] sm:$0xff]   ;;  %v8641_v20 = vld [vmem:[%s11205_s15 + $0x78] sm:$0xff]  }
 0x759   :  { %v1891_v16 = vsel %vm964_vm4, 0.0, %v1883_v7  ;;  %v1884_v23 = vrot.slane %v1878_v15, 7  ;;  %v1854_v25 = vadd.f32 %v8005_v30, %v1806_v19  ;;  %v8620_v30 = vld [vmem:[%s11205_s15 + $0x40] sm:$0xff]   ;;  %v8643_v15 = vld [vmem:[%s11205_s15 + $0x38] sm:$0xff]  }
 0x75a   :  { %v1895_v61 = vrot.slane %v1891_v16, 1  ;;  %v1903_v34 = vrot.slane %v1891_v16, 2  ;;  %7704 = vmatprep.subr.bf16.mxu0 %v8620_v30  ;;  %v8644_v19 = vld [vmem:[%s11210_s16 + $0x40] sm:$0xff]  }
 0x75b   :  { %v1885_v32 = vsel %vm964_vm4, %v1883_v7, %v1884_v23  ;;  %v1861_v45 = vmax.f32 %v1854_v25, 0.0  ;;  %v10539_v16 = vld [vmem:[%s11210_s16 + $0x80] sm:$0xff]  }
 0x75c   :  { %v7241_v37 = vpack.c.bf16 %v1885_v32, %v1883_v7  ;;  %v1896_v62 = vrot.slane %v1885_v32, 1  ;;  %v1904_v63 = vrot.slane %v1885_v32, 2  ;;  %v8642_v7 = vld [vmem:[%s11205_s15 + $0xb8] sm:$0xff]   ;;  %v7214_v32 = vld [vmem:[#allocation7] ss:$0 sm:$0xff] }
 0x75d   :  { %v1879_v3 = vmul.f32 %v10483_v33, %v1861_v45 }
 0x75e   :  { %v1897_v38 = vsel %vm535_vm0, %v1895_v61, %v1896_v62  ;;  %v1905_v41 = vsel %vm560_vm1, %v1903_v34, %v1904_v63 }
 0x75f   :  { %v1886_v4 = vrot.slane %v1879_v3, 7 }
 0x761   :  { %v1887_v42 = vsel %vm964_vm4, %v1884_v23, %v1886_v4 }
 0x762   :  { %v1892_v48 = vsel %vm1010_vm5, %v1887_v42, 0.0  ;;  %v7244_v0 = vpack.c.bf16 %v1887_v42, %v1887_v42 }
 0x763   :  { %v1898_v56 = vrot.slane %v1892_v48, 1  ;;  %v1906_v17 = vrot.slane %v1892_v48, 2 }
 0x765   :  { %v1899_v49 = vsel %vm535_vm0, %v1896_v62, %v1898_v56  ;;  %v1907_v53 = vsel %vm560_vm1, %v1904_v63, %v1906_v17  ;;  %v1916_v57 = vpack.c.bf16 %v1906_v17, %v1906_v17  ;;  %v1915_v59 = vpack.c.bf16 %v1898_v56, %v1898_v56 }
 0x766   :  { %v1912_v29 = vpack.c.bf16 %v1899_v49, %v1897_v38  ;;  %v1913_v54 = vpack.c.bf16 %v1907_v53, %v1905_v41 }
 0x768   :  { %2148 = vmatprep.mubr.bf16.mxu0 %v1912_v29  ;;  %8023 = vmatprep.mubr.bf16.mxu1 %v1913_v54 }
 0x769   :  { %7242 = vmatmul.mubr.msk.bf16.vlgmr.msra.gmra.mrb[20].mxu0 %vm10499_vm11, %v7241_v37  ;;  %8024 = vmatmul.mubr.bf16.vlgmr.msra.gmra.mrb[20].mxu1 %v1916_v57 }
 0x76a   :  { %2156 = vmatprep.mubr.bf16.mxu0 %v1915_v59  ;;  %8028 = vmatpush3.bf16.msra.mxu1 %v8621_v8 }
 0x76b   :  { %7705 = vmatpush3.bf16.msra.mxu0 %v8622_v21  ;;  %8029 = vmatprep.subr.bf16.mxu1 %v8624_v58 }
 0x76c   :  { %7706 = vmatprep.subr.bf16.mxu0 %v8623_v10 }
 0x76e   :  { %8030 = vmatpush3.bf16.msra.mxu1 %v8624_v58 }
 0x76f   :  { %7707 = vmatpush3.bf16.msra.mxu0 %v8625_v51  ;;  %8031 = vmatprep.subr.bf16.mxu1 %v8627_v11 }
 0x770   :  { %7708 = vmatprep.subr.bf16.mxu0 %v8626_v12 }
 0x771   :  { %7245 = vmatmul.mubr.msk.bf16.gmra.mrb[24].mxu0 %vm10507_vm12, %v7244_v0 }
 0x772   :  { %8032 = vmatpush3.bf16.msra.mxu1 %v8627_v11 }
 0x773   :  { %7709 = vmatpush3.bf16.msra.mxu0 %v8628_v52  ;;  %8033 = vmatprep.subr.bf16.mxu1 %v8630_v14 }
 0x774   :  { %7710 = vmatprep.subr.bf16.mxu0 %v8629_v44 }
 0x776   :  { %8034 = vmatpush3.bf16.msra.mxu1 %v8630_v14 }
 0x777   :  { %7711 = vmatpush3.bf16.msra.mxu0 %v8631_v55  ;;  %8035 = vmatprep.subr.bf16.mxu1 %v8633_v1 }
 0x778   :  { %7712 = vmatprep.subr.bf16.mxu0 %v8632_v18 }
 0x77a   :  { %8036 = vmatpush3.bf16.msra.mxu1 %v8633_v1 }
 0x77b   :  { %7713 = vmatpush3.bf16.msra.mxu0 %v8634_v50  ;;  %8037 = vmatprep.subr.bf16.mxu1 %v8636_v36 }
 0x77c   :  { %7714 = vmatprep.subr.bf16.mxu0 %v8635_v28 }
 0x77e   :  { %8038 = vmatpush3.bf16.msra.mxu1 %v8636_v36 }
 0x77f   :  { %7715 = vmatpush3.bf16.msra.mxu0 %v8637_v60  ;;  %8039 = vmatprep.subr.bf16.mxu1 %v8639_v9 }
 0x780   :  { %7716 = vmatprep.subr.bf16.mxu0 %v8638_v22 }
 0x782   :  { %8040 = vmatpush3.bf16.msra.mxu1 %v8639_v9 }
 0x783   :  { %7717 = vmatpush3.bf16.msra.mxu0 %v8640_v46  ;;  %8041 = vmatprep.subr.bf16.mxu1 %v8642_v7 }
 0x784   :  { %7718 = vmatprep.subr.bf16.mxu0 %v8641_v20 }
 0x786   :  { %8042 = vmatpush3.bf16.msra.mxu1 %v8642_v7 }
 0x787   :  { %7719 = vmatpush3.bf16.msra.mxu0 %v8643_v15  ;;  %8047 = vmatprep.subr.bf16.mxu1 %v10539_v16 }
 0x788   :  { %7742 = vmatprep.subr.bf16.mxu0 %v8644_v19 }
 0x83c   :  { %v7682_v23 = vpop.f32.mrb[20].mxu0  ;;  %v8025_v25 = vpop.f32.mrb[20].mxu1 }
 0x83d   :  { %v7683_v61 = vpop.f32.mrb[21].mxu0  ;;  %v2198_v45 = vpop.f32.mrb[21].mxu1 }
 0x83e   :  { %v7684_v34 = vadd.f32 %v7683_v61, %v7682_v23  ;;  %v7685_v37 = vpop.f32.mrb[22].mxu0  ;;  %v8026_v62 = vpop.f32.mrb[22].mxu1 }
 0x83f   :  { %v7686_v63 = vpop.f32.mrb[23].mxu0  ;;  %v2201_v3 = vpop.f32.mrb[23].mxu1  ;;  %v8647_v62 = vld [vmem:[%s11210_s16 + $0x48] sm:$0xff]  }
 0x840   :  { %v2151_v38 = vadd.f32 %v7684_v34, %v7214_v32  ;;  %v7687_v41 = vadd.f32 %v7686_v63, %v7685_v37  ;;  %v8648_v63 = vld [vmem:[%s11210_s16 + $0x88] sm:$0xff]  }
 0x842   :  { %v2199_v4 = vadd.f32 %v2198_v45, %v2151_v38  ;;  %v2154_v42 = vadd.f32 %v7687_v41, %v7214_v32  ;;  %v8650_v38 = vld [vmem:[%s11210_s16 + $0x50] sm:$0xff]  }
 0x843   :  { %v8651_v41 = vld [vmem:[%s11210_s16 + $0x90] sm:$0xff]  }
 0x844   :  { %v2223_v48 = vadd.f32 %v10442_v26, %v2199_v4  ;;  %v2202_v56 = vadd.f32 %v2201_v3, %v2154_v42  ;;  %v7688_v17 = vpop.f32.mrb[24].mxu0  ;;  %v8649_v3 = vld [vmem:[%s11210_s16 + $0x8] sm:$0xff]   ;;  %v8652_v4 = vld [vmem:[%s11210_s16 + $0x10] sm:$0xff]   ;;  %v8654_v42 = vld [vmem:[%s11210_s16 + $0x98] sm:$0xff]  }
 0x845   :  { %v7689_v49 = vpop.f32.mrb[25].mxu0 }
 0x846   :  { %v2226_v53 = vmul.f32 %v2223_v48, %v10477_v35  ;;  %v2224_v29 = vadd.f32 %v10447_v43, %v2202_v56  ;;  %v7690_v54 = vadd.f32 %v7689_v49, %v7688_v17  ;;  %v7691_v57 = vpop.f32.mrb[26].mxu0  ;;  %v8655_v48 = vld [vmem:[%s11210_s16 + $0x18] sm:$0xff]   ;;  %v8656_v56 = vld [vmem:[%s11210_s16 + $0x60] sm:$0xff]  }
 0x847   :  { %v7692_v59 = vpop.f32.mrb[27].mxu0  ;;  %v8657_v17 = vld [vmem:[%s11210_s16 + $0xa0] sm:$0xff]   ;;  %v8662_v57 = vld [vmem:[%s11210_s16 + $0x70] sm:$0xff]  }
 0x848   :  { %v2232_v0 = vrot.slane %v2226_v53, 7  ;;  %v2227_v30 = vmul.f32 %v2224_v29, %v10475_v27  ;;  %v2159_v8 = vadd.f32 %v7690_v54, %v7214_v32  ;;  %v8646_v32 = vld [vmem:[%s11210_s16] sm:$0xff]   ;;  %v8659_v53 = vld [vmem:[%s11210_s16 + $0x68] sm:$0xff]   ;;  %v8663_v59 = vld [vmem:[%s11210_s16 + $0xb0] sm:$0xff]  }
 0x849   :  { %v8658_v49 = vld [vmem:[%s11210_s16 + $0x20] sm:$0xff]   ;;  %v8660_v29 = vld [vmem:[%s11210_s16 + $0xa8] sm:$0xff]  }
 0x84a   :  { %v2240_v21 = vsel %vm964_vm4, 0.0, %v2232_v0  ;;  %v2233_v10 = vrot.slane %v2227_v30, 7  ;;  %v2207_v58 = vadd.f32 %v8025_v25, %v2159_v8  ;;  %v8661_v54 = vld [vmem:[%s11210_s16 + $0x28] sm:$0xff]   ;;  %v8665_v30 = vld [vmem:[%s11210_s16 + $0x78] sm:$0xff]  }
 0x84b   :  { %v2242_v51 = vmax.f32 %v2240_v21, 0.0  ;;  %v2905_v52 = vrot.slane %v2240_v21, 1  ;;  %v8666_v8 = vld [vmem:[%s11210_s16 + $0xb8] sm:$0xff]  }
 0x84c   :  { %v2234_v26 = vsel %vm964_vm4, %v2232_v0, %v2233_v10  ;;  %v2225_v12 = vadd.f32 %v2218_v39, %v2207_v58  ;;  %v8664_v0 = vld [vmem:[%s11210_s16 + $0x30] sm:$0xff]   ;;  %v8667_v21 = vld [vmem:[%s11210_s16 + $0x38] sm:$0xff]  }
 0x84d   :  { %v2243_v11 = vmax.f32 %v2234_v26, 0.0  ;;  %v2906_v43 = vrot.slane %v2234_v26, 1  ;;  %v2248_v14 = vrot.slane %v2242_v51, 1  ;;  %v2256_v55 = vrot.slane %v2242_v51, 2 }
 0x84e   :  { %v2228_v44 = vmul.f32 %v2225_v12, %v10483_v33  ;;  %v7246_v12 = vld [vmem:[#allocation9] ss:$0 sm:$0xff] }
 0x84f   :  { %v2249_v18 = vrot.slane %v2243_v11, 1  ;;  %v2257_v1 = vrot.slane %v2243_v11, 2  ;;  %v2264_v50 = vpack.c.bf16 %v2243_v11, %v2242_v51  ;;  %v10552_v28 = vsel %vm535_vm0, %v2905_v52, %v2906_v43 }
 0x850   :  { %v2235_v36 = vrot.slane %v2228_v44, 7 }
 0x851   :  { %v2250_v60 = vsel %vm535_vm0, %v2248_v14, %v2249_v18  ;;  %v2258_v13 = vsel %vm560_vm1, %v2256_v55, %v2257_v1 }
 0x852   :  { %v2236_v39 = vsel %vm964_vm4, %v2233_v10, %v2235_v36  ;;  %v8670_v10 = vld [vmem:[%s11211_s6 + $0x4] ss:$8 sps:$4 sm:$0xff]  }
 0x853   :  { %v10558_v22 = vsel %vm1010_vm5, %v2236_v39, 0.0 }
 0x854   :  { %v2244_v9 = vmax.f32 %v10558_v22, 0.0  ;;  %v2908_v46 = vrot.slane %v10558_v22, 1 }
 0x856   :  { %v2251_v20 = vrot.slane %v2244_v9, 1  ;;  %v2259_v7 = vrot.slane %v2244_v9, 2  ;;  %v10565_v15 = vsel %vm535_vm0, %v2906_v43, %v2908_v46  ;;  %v2267_v37 = vpack.c.bf16 %v2244_v9, %v2244_v9 }
 0x858   :  { %v2252_v19 = vsel %vm535_vm0, %v2249_v18, %v2251_v20  ;;  %v2260_v23 = vsel %vm560_vm1, %v2257_v1, %v2259_v7  ;;  %v2269_v45 = vpack.c.bf16 %v2259_v7, %v2259_v7  ;;  %v2268_v34 = vpack.c.bf16 %v2251_v20, %v2251_v20 }
 0x859   :  { %v2265_v25 = vpack.c.bf16 %v2252_v19, %v2250_v60  ;;  %v2266_v61 = vpack.c.bf16 %v2260_v23, %v2258_v13 }
 0x85b   :  { %2501 = vmatprep.mubr.bf16.mxu0 %v2265_v25  ;;  %8043 = vmatprep.mubr.bf16.mxu1 %v2266_v61 }
 0x85c   :  { %2502 = vmatmul.mubr.bf16.vlgmr.msra.gmra.mrb[28].mxu0 %v2264_v50  ;;  %8044 = vmatmul.mubr.bf16.vlgmr.msra.gmra.mrb[24].mxu1 %v2269_v45 }
 0x85d   :  { %2509 = vmatprep.mubr.bf16.mxu0 %v2268_v34  ;;  %7743 = vmatpush3.bf16.msra.mxu0 %v8646_v32 }
 0x85e   :  { %8048 = vmatpush3.bf16.msra.mxu1 %v10539_v16  ;;  %7744 = vmatprep.subr.bf16.mxu0 %v8647_v62  ;;  %v8653_v16 = vld [vmem:[%s11210_s16 + $0x58] sm:$0xff]  }
 0x85f   :  { %8049 = vmatprep.subr.bf16.mxu1 %v8648_v63 }
 0x861   :  { %7745 = vmatpush3.bf16.msra.mxu0 %v8649_v3 }
 0x862   :  { %8050 = vmatpush3.bf16.msra.mxu1 %v8648_v63  ;;  %7746 = vmatprep.subr.bf16.mxu0 %v8650_v38 }
 0x863   :  { %8051 = vmatprep.subr.bf16.mxu1 %v8651_v41 }
 0x864   :  { %2510 = vmatmul.mubr.bf16.gmra.mrb[32].mxu0 %v2267_v37 }
 0x865   :  { %7747 = vmatpush3.bf16.msra.mxu0 %v8652_v4 }
 0x866   :  { %8052 = vmatpush3.bf16.msra.mxu1 %v8651_v41  ;;  %7748 = vmatprep.subr.bf16.mxu0 %v8653_v16 }
 0x867   :  { %8053 = vmatprep.subr.bf16.mxu1 %v8654_v42 }
 0x869   :  { %7749 = vmatpush3.bf16.msra.mxu0 %v8655_v48 }
 0x86a   :  { %8054 = vmatpush3.bf16.msra.mxu1 %v8654_v42  ;;  %7750 = vmatprep.subr.bf16.mxu0 %v8656_v56 }
 0x86b   :  { %8055 = vmatprep.subr.bf16.mxu1 %v8657_v17 }
 0x86d   :  { %7751 = vmatpush3.bf16.msra.mxu0 %v8658_v49 }
 0x86e   :  { %8056 = vmatpush3.bf16.msra.mxu1 %v8657_v17  ;;  %7752 = vmatprep.subr.bf16.mxu0 %v8659_v53 }
 0x86f   :  { %8057 = vmatprep.subr.bf16.mxu1 %v8660_v29 }
 0x871   :  { %7753 = vmatpush3.bf16.msra.mxu0 %v8661_v54 }
 0x872   :  { %8058 = vmatpush3.bf16.msra.mxu1 %v8660_v29  ;;  %7754 = vmatprep.subr.bf16.mxu0 %v8662_v57 }
 0x873   :  { %8059 = vmatprep.subr.bf16.mxu1 %v8663_v59 }
 0x875   :  { %7755 = vmatpush3.bf16.msra.mxu0 %v8664_v0 }
 0x876   :  { %8060 = vmatpush3.bf16.msra.mxu1 %v8663_v59  ;;  %7756 = vmatprep.subr.bf16.mxu0 %v8665_v30 }
 0x877   :  { %8061 = vmatprep.subr.bf16.mxu1 %v8666_v8 }
 0x879   :  { %7757 = vmatpush3.bf16.msra.mxu0 %v8667_v21  ;;  %v8668_v21 = vld [vmem:[%s11211_s6] ss:$8 sps:$4 sm:$0xff]  }
 0x87a   :  { %8062 = vmatpush3.bf16.msra.mxu1 %v8666_v8  ;;  %3256 = vmatprep.subr.bf16.mxu0 %v8670_v10 }
 0x92f   :  { %v7720_v58 = vpop.f32.mrb[28].mxu0  ;;  %v8045_v51 = vpop.f32.mrb[24].mxu1 }
 0x930   :  { %v7721_v26 = vpop.f32.mrb[29].mxu0  ;;  %v2551_v11 = vpop.f32.mrb[25].mxu1 }
 0x931   :  { %v7722_v52 = vadd.f32 %v7721_v26, %v7720_v58  ;;  %v7723_v43 = vpop.f32.mrb[30].mxu0  ;;  %v8046_v44 = vpop.f32.mrb[26].mxu1  ;;  %v8673_v58 = vld [vmem:[%s11211_s6 + $0x14] ss:$8 sps:$4 sm:$0xff]   ;;  %v8671_v26 = vld [vmem:[%s11211_s6 + $0x10] ss:$8 sps:$4 sm:$0xff]  }
 0x932   :  { %v7724_v14 = vpop.f32.mrb[31].mxu0  ;;  %v2554_v55 = vpop.f32.mrb[27].mxu1  ;;  %v8677_v44 = vld [vmem:[%s11211_s6 + $0x30] ss:$8 sps:$4 sm:$0xff]  }
 0x933   :  { %v2504_v18 = vadd.f32 %v7722_v52, %v7246_v12  ;;  %v7725_v1 = vadd.f32 %v7724_v14, %v7723_v43  ;;  %v8679_v43 = vld [vmem:[%s11211_s6 + $0x34] ss:$8 sps:$4 sm:$0xff]   ;;  %v8682_v14 = vld [vmem:[%s11211_s6 + $0x44] ss:$8 sps:$4 sm:$0xff]  }
 0x935   :  { %v2552_v50 = vadd.f32 %v2551_v11, %v2504_v18  ;;  %v2507_v36 = vadd.f32 %v7725_v1, %v7246_v12  ;;  %v8674_v11 = vld [vmem:[%s11211_s6 + $0x20] ss:$8 sps:$4 sm:$0xff]   ;;  %v8685_v18 = vld [vmem:[%s11211_s6 + $0x54] ss:$8 sps:$4 sm:$0xff]   ;;  %v8683_v1 = vld [vmem:[%s11211_s6 + $0x50] ss:$8 sps:$4 sm:$0xff]  }
 0x937   :  { %v2565_v60 = vmax.f32 %v2552_v50, 0.0  ;;  %v2555_v13 = vadd.f32 %v2554_v55, %v2507_v36  ;;  %v7726_v39 = vpop.f32.mrb[32].mxu0  ;;  %v8680_v55 = vld [vmem:[%s11211_s6 + $0x40] ss:$8 sps:$4 sm:$0xff]   ;;  %v8688_v50 = vld [vmem:[%s11211_s6 + $0x64] ss:$8 sps:$4 sm:$0xff]  }
 0x938   :  { %v7727_v9 = vpop.f32.mrb[33].mxu0  ;;  %v8686_v36 = vld [vmem:[%s11211_s6 + $0x60] ss:$8 sps:$4 sm:$0xff]  }
 0x939   :  { %v2568_v20 = vmul.f32 %v2565_v60, %v10477_v35  ;;  %v2566_v7 = vmax.f32 %v2555_v13, 0.0  ;;  %v7728_v19 = vadd.f32 %v7727_v9, %v7726_v39  ;;  %v7729_v23 = vpop.f32.mrb[34].mxu0  ;;  %v8691_v60 = vld [vmem:[%s11211_s6 + $0x74] ss:$8 sps:$4 sm:$0xff]   ;;  %v8689_v13 = vld [vmem:[%s11211_s6 + $0x70] ss:$8 sps:$4 sm:$0xff]  }
 0x93a   :  { %v7730_v25 = vpop.f32.mrb[35].mxu0  ;;  %v8694_v39 = vld [vmem:[%s11211_s6 + $0x84] ss:$8 sps:$4 sm:$0xff]   ;;  %v8692_v9 = vld [vmem:[%s11211_s6 + $0x80] ss:$8 sps:$4 sm:$0xff]  }
 0x93b   :  { %v2574_v61 = vrot.slane %v2568_v20, 7  ;;  %v2569_v32 = vmul.f32 %v2566_v7, %v10475_v27  ;;  %v2512_v45 = vadd.f32 %v7728_v19, %v7246_v12  ;;  %v8676_v12 = vld [vmem:[%s11211_s6 + $0x24] ss:$8 sps:$4 sm:$0xff]   ;;  %v8697_v20 = vld [vmem:[%s11211_s6 + $0x94] ss:$8 sps:$4 sm:$0xff]  }
 0x93c   :  { %v8695_v7 = vld [vmem:[%s11211_s6 + $0x90] ss:$8 sps:$4 sm:$0xff]   ;;  %v8700_v19 = vld [vmem:[%s11211_s6 + $0xa4] ss:$8 sps:$4 sm:$0xff]   ;;  %v8698_v23 = vld [vmem:[%s11211_s6 + $0xa0] ss:$8 sps:$4 sm:$0xff]  }
 0x93d   :  { %v2582_v34 = vsel %vm964_vm4, 0.0, %v2574_v61  ;;  %v2575_v37 = vrot.slane %v2569_v32, 7  ;;  %v2560_v62 = vadd.f32 %v8045_v51, %v2512_v45  ;;  %v8703_v25 = vld [vmem:[%s11211_s6 + $0xb4] ss:$8 sps:$4 sm:$0xff]   ;;  %v8704_v32 = vld [vmem:[%s11211_s6 + $0xc0] ss:$8 sps:$4 sm:$0xff]  }
 0x93e   :  { %v2586_v63 = vrot.slane %v2582_v34, 1  ;;  %v2594_v41 = vrot.slane %v2582_v34, 2  ;;  %v8706_v45 = vld [vmem:[%s11211_s6 + $0xc4] ss:$8 sps:$4 sm:$0xff]   ;;  %v8709_v34 = vld [vmem:[%s11211_s6 + $0xd4] ss:$8 sps:$4 sm:$0xff]  }
 0x93f   :  { %v2576_v3 = vsel %vm964_vm4, %v2574_v61, %v2575_v37  ;;  %v2567_v38 = vmax.f32 %v2560_v62, 0.0  ;;  %v8712_v62 = vld [vmem:[%s11211_s6 + $0xe4] ss:$8 sps:$4 sm:$0xff]  }
 0x940   :  { %v7298_v4 = vpack.c.bf16 %v2576_v3, %v2574_v61  ;;  %v2587_v16 = vrot.slane %v2576_v3, 1  ;;  %v2595_v42 = vrot.slane %v2576_v3, 2  ;;  %v8701_v61 = vld [vmem:[%s11211_s6 + $0xb0] ss:$8 sps:$4 sm:$0xff]   ;;  %v8715_v3 = vld [vmem:[%s11211_s6 + $0xf4] ss:$8 sps:$4 sm:$0xff]  }
 0x941   :  { %v2570_v48 = vmul.f32 %v2567_v38, %v10483_v33  ;;  %v8713_v38 = vld [vmem:[%s11211_s6 + $0xf0] ss:$8 sps:$4 sm:$0xff]  }
 0x942   :  { %v2588_v56 = vsel %vm535_vm0, %v2586_v63, %v2587_v16  ;;  %v2596_v17 = vsel %vm560_vm1, %v2594_v41, %v2595_v42  ;;  %v8710_v63 = vld [vmem:[%s11211_s6 + $0xe0] ss:$8 sps:$4 sm:$0xff]   ;;  %v8718_v41 = vld [vmem:[%s11211_s6 + $0x104] ss:$8 sps:$4 sm:$0xff]  }
 0x943   :  { %v2577_v49 = vrot.slane %v2570_v48, 7  ;;  %v7271_v48 = vld [vmem:[#allocation10] ss:$0 sm:$0xff] }
 0x945   :  { %v2578_v53 = vsel %vm964_vm4, %v2575_v37, %v2577_v49  ;;  %v8707_v37 = vld [vmem:[%s11211_s6 + $0xd0] ss:$8 sps:$4 sm:$0xff]  }
 0x946   :  { %v2583_v29 = vsel %vm1010_vm5, %v2578_v53, 0.0  ;;  %v7301_v52 = vpack.c.bf16 %v2578_v53, %v2578_v53 }
 0x947   :  { %v2589_v54 = vrot.slane %v2583_v29, 1  ;;  %v2597_v57 = vrot.slane %v2583_v29, 2 }
 0x949   :  { %v2590_v59 = vsel %vm535_vm0, %v2587_v16, %v2589_v54  ;;  %v2598_v0 = vsel %vm560_vm1, %v2595_v42, %v2597_v57  ;;  %v2607_v10 = vpack.c.bf16 %v2597_v57, %v2597_v57  ;;  %v2606_v51 = vpack.c.bf16 %v2589_v54, %v2589_v54 }
 0x94a   :  { %v2603_v30 = vpack.c.bf16 %v2590_v59, %v2588_v56  ;;  %v2604_v8 = vpack.c.bf16 %v2598_v0, %v2596_v17 }
 0x94c   :  { %2839 = vmatprep.mubr.bf16.mxu0 %v2603_v30  ;;  %8063 = vmatprep.mubr.bf16.mxu1 %v2604_v8 }
 0x94d   :  { %7299 = vmatmul.mubr.msk.bf16.vlgmr.msra.gmra.mrb[36].mxu0 %vm10499_vm11, %v7298_v4  ;;  %8064 = vmatmul.mubr.bf16.vlgmr.msra.gmra.mrb[28].mxu1 %v2607_v10 }
 0x94e   :  { %2847 = vmatprep.mubr.bf16.mxu0 %v2606_v51  ;;  %3257 = vmatpush1.bf16.msra.mxu0 %v8668_v21 }
 0x94f   :  { %3258 = vmatprep.subr.bf16.mxu0 %v8673_v58 }
 0x952   :  { %3259 = vmatpush1.bf16.msra.mxu0 %v8671_v26 }
 0x953   :  { %3260 = vmatprep.subr.bf16.mxu0 %v8676_v12 }
 0x955   :  { %7302 = vmatmul.mubr.msk.bf16.gmra.mrb[40].mxu0 %vm10507_vm12, %v7301_v52 }
 0x956   :  { %3261 = vmatpush1.bf16.msra.mxu0 %v8674_v11 }
 0x957   :  { %3262 = vmatprep.subr.bf16.mxu0 %v8679_v43 }
 0x95a   :  { %3263 = vmatpush1.bf16.msra.mxu0 %v8677_v44 }
 0x95b   :  { %3264 = vmatprep.subr.bf16.mxu0 %v8682_v14 }
 0x95e   :  { %3265 = vmatpush1.bf16.msra.mxu0 %v8680_v55 }
 0x95f   :  { %3266 = vmatprep.subr.bf16.mxu0 %v8685_v18 }
 0x962   :  { %3267 = vmatpush1.bf16.msra.mxu0 %v8683_v1 }
 0x963   :  { %3268 = vmatprep.subr.bf16.mxu0 %v8688_v50 }
 0x966   :  { %3269 = vmatpush1.bf16.msra.mxu0 %v8686_v36 }
 0x967   :  { %3270 = vmatprep.subr.bf16.mxu0 %v8691_v60 }
 0x96a   :  { %3271 = vmatpush1.bf16.msra.mxu0 %v8689_v13 }
 0x96b   :  { %3272 = vmatprep.subr.bf16.mxu0 %v8694_v39 }
 0x96e   :  { %3273 = vmatpush1.bf16.msra.mxu0 %v8692_v9 }
 0x96f   :  { %3274 = vmatprep.subr.bf16.mxu0 %v8697_v20 }
 0x972   :  { %3275 = vmatpush1.bf16.msra.mxu0 %v8695_v7 }
 0x973   :  { %3276 = vmatprep.subr.bf16.mxu0 %v8700_v19 }
 0x976   :  { %3277 = vmatpush1.bf16.msra.mxu0 %v8698_v23 }
 0x977   :  { %3278 = vmatprep.subr.bf16.mxu0 %v8703_v25 }
 0x97a   :  { %3279 = vmatpush1.bf16.msra.mxu0 %v8701_v61 }
 0x97b   :  { %3280 = vmatprep.subr.bf16.mxu0 %v8706_v45  ;;  %v8721_v45 = vld [vmem:[%s11211_s6 + $0x114] ss:$8 sps:$4 sm:$0xff]  }
 0x97e   :  { %3281 = vmatpush1.bf16.msra.mxu0 %v8704_v32 }
 0x97f   :  { %3282 = vmatprep.subr.bf16.mxu0 %v8709_v34 }
 0x982   :  { %3283 = vmatpush1.bf16.msra.mxu0 %v8707_v37  ;;  %v8719_v37 = vld [vmem:[%s11211_s6 + $0x110] ss:$8 sps:$4 sm:$0xff]  }
 0x983   :  { %3284 = vmatprep.subr.bf16.mxu0 %v8712_v62  ;;  %v8724_v62 = vld [vmem:[%s11211_s6 + $0x124] ss:$8 sps:$4 sm:$0xff]  }
 0x986   :  { %3285 = vmatpush1.bf16.msra.mxu0 %v8710_v63  ;;  %v8722_v63 = vld [vmem:[%s11211_s6 + $0x120] ss:$8 sps:$4 sm:$0xff]  }
 0x987   :  { %3286 = vmatprep.subr.bf16.mxu0 %v8715_v3 }
 0x98a   :  { %3287 = vmatpush1.bf16.msra.mxu0 %v8713_v38  ;;  %v8727_v38 = vld [vmem:[%s11211_s6 + $0x134] ss:$8 sps:$4 sm:$0xff]  }
 0x98b   :  { %3307 = vmatprep.subr.bf16.mxu0 %v8718_v41  ;;  %v8730_v41 = vld [vmem:[%s11211_s6 + $0x144] ss:$8 sps:$4 sm:$0xff]  }
 0xa20   :  { %v7758_v4 = vpop.f32.mrb[36].mxu0  ;;  %v8065_v16 = vpop.f32.mrb[28].mxu1 }
 0xa21   :  { %v7759_v42 = vpop.f32.mrb[37].mxu0  ;;  %v2889_v56 = vpop.f32.mrb[29].mxu1 }
 0xa22   :  { %v7760_v17 = vadd.f32 %v7759_v42, %v7758_v4  ;;  %v7761_v49 = vpop.f32.mrb[38].mxu0  ;;  %v8066_v53 = vpop.f32.mrb[30].mxu1  ;;  %v8728_v4 = vld [vmem:[%s11211_s6 + $0x140] ss:$8 sps:$4 sm:$0xff]   ;;  %v8731_v42 = vld [vmem:[%s11211_s6 + $0x150] ss:$8 sps:$4 sm:$0xff]  }
 0xa23   :  { %v7762_v29 = vpop.f32.mrb[39].mxu0  ;;  %v2892_v54 = vpop.f32.mrb[31].mxu1 }
 0xa24   :  { %v2842_v57 = vadd.f32 %v7760_v17, %v7271_v48  ;;  %v7763_v59 = vadd.f32 %v7762_v29, %v7761_v49  ;;  %v8737_v17 = vld [vmem:[%s11211_s6 + $0x170] ss:$8 sps:$4 sm:$0xff]   ;;  %v3374_v53 = vpop.permute.xlu1 %3373  ;;  %v3004_v29 = vld [vmem:[#allocation13] sm:$0x3] }
 0xa26   :  { %v2890_v0 = vadd.f32 %v2889_v56, %v2842_v57  ;;  %v2845_v30 = vadd.f32 %v7763_v59, %v7271_v48  ;;  %v8739_v56 = vld [vmem:[%s11211_s6 + $0x174] ss:$8 sps:$4 sm:$0xff]   ;;  %v3009_v57 = vrot.slane %v3004_v29, %v10097_v2 }
 0xa28   :  { %v2913_v8 = vadd.f32 %v10552_v28, %v2890_v0  ;;  %v2893_v21 = vadd.f32 %v2892_v54, %v2845_v30  ;;  %v7764_v10 = vpop.f32.mrb[40].mxu0  ;;  %v3369_v54 = vpop.permute.xlu0 %3368  ;;  %v3013_v0 = vrot.slane %v3004_v29, %v10101_v6 }
 0xa29   :  { %v7765_v58 = vpop.f32.mrb[41].mxu0  ;;  %v3396_v59 = vpop.permute.xlu1 %3395 }
 0xa2a   :  { %v2916_v51 = vmul.f32 %v2913_v8, %v10477_v35  ;;  %v2914_v26 = vadd.f32 %v10565_v15, %v2893_v21  ;;  %v7766_v12 = vadd.f32 %v7765_v58, %v7764_v10  ;;  %v7767_v11 = vpop.f32.mrb[42].mxu0 }
 0xa2b   :  { %v7768_v52 = vpop.f32.mrb[43].mxu0 }
 0xa2c   :  { %v2922_v43 = vrot.slane %v2916_v51, 7  ;;  %v2917_v44 = vmul.f32 %v2914_v26, %v10475_v27  ;;  %v2850_v14 = vadd.f32 %v7766_v12, %v7271_v48  ;;  %v8736_v48 = vld [vmem:[%s11211_s6 + $0x164] ss:$8 sps:$4 sm:$0xff]   ;;  %v3364_v10 = vpop.permute.xlu0 %3363 }
 0xa2d   :  { %v3391_v52 = vpop.permute.xlu1 %3390 }
 0xa2e   :  { %v2930_v55 = vsel %vm964_vm4, 0.0, %v2922_v43  ;;  %v2923_v18 = vrot.slane %v2917_v44, 7  ;;  %v2898_v1 = vadd.f32 %v8065_v16, %v2850_v14  ;;  %v8733_v16 = vld [vmem:[%s11211_s6 + $0x154] ss:$8 sps:$4 sm:$0xff]  }
 0xa2f   :  { %v2942_v50 = vrot.slane %v2930_v55, 2  ;;  %v2934_v60 = vrot.slane %v2930_v55, 1 }
 0xa30   :  { %v2924_v28 = vsel %vm964_vm4, %v2922_v43, %v2923_v18  ;;  %v2915_v36 = vadd.f32 %v2908_v46, %v2898_v1 }
 0xa31   :  { %v2943_v35 = vrot.slane %v2924_v28, 2  ;;  %v7353_v15 = vpack.c.bf16 %v2924_v28, %v2922_v43  ;;  %v2935_v13 = vrot.slane %v2924_v28, 1 }
 0xa32   :  { %v2918_v39 = vmul.f32 %v2915_v36, %v10483_v33  ;;  %v8716_v33 = vld [vmem:[%s11211_s6 + $0x100] ss:$8 sps:$4 sm:$0xff]  }
 0xa33   :  { %v2936_v27 = vsel %vm535_vm0, %v2934_v60, %v2935_v13  ;;  %v2944_v9 = vsel %vm560_vm1, %v2942_v50, %v2943_v35 }
 0xa34   :  { %v2925_v20 = vrot.slane %v2918_v39, 7 }
 0xa36   :  { %v2926_v7 = vsel %vm964_vm4, %v2923_v18, %v2925_v20 }
 0xa37   :  { %v2931_v19 = vsel %vm1010_vm5, %v2926_v7, 0.0  ;;  %v7356_v3 = vpack.c.bf16 %v2926_v7, %v2926_v7  ;;  %v3401_v7 = vpop.permute.xlu0 %3400 }
 0xa38   :  { %v2937_v22 = vrot.slane %v2931_v19, 1  ;;  %v2945_v46 = vrot.slane %v2931_v19, 2 }
 0xa3a   :  { %v2938_v23 = vsel %vm535_vm0, %v2935_v13, %v2937_v22  ;;  %v2946_v25 = vsel %vm560_vm1, %v2943_v35, %v2945_v46  ;;  %v2954_v34 = vpack.c.bf16 %v2937_v22, %v2937_v22  ;;  %v2955_v49 = vpack.c.bf16 %v2945_v46, %v2945_v46 }
 0xa3b   :  { %v2951_v61 = vpack.c.bf16 %v2938_v23, %v2936_v27  ;;  %v2952_v32 = vpack.c.bf16 %v2946_v25, %v2944_v9  ;;  %v8740_v25 = vld [vmem:[#allocation27 + $0x40] sm:$0xff]  }
 0xa3c   :  { %7780 = vmatprep.subr.bf16.mxu1 %v8740_v25  ;;  %v8749_v25 = vld [vmem:[#allocation27 + $0x20] sm:$0xff]  }
 0xa3d   :  { %3288 = vmatprep.mubr.bf16.mxu0 %v2951_v61  ;;  %v8741_v61 = vld [vmem:[#allocation27] sm:$0xff]  }
 0xa3e   :  { %7354 = vmatmul.mubr.msk.bf16.vlgmr.msra.gmra.mrb[44].mxu0 %vm10499_vm11, %v7353_v15  ;;  %7781 = vmatpush3.bf16.msra.mxu1 %v8741_v61 }
 0xa3f   :  { %3308 = vmatpush1.bf16.msra.mxu0 %v8716_v33  ;;  %3298 = vmatprep.mubr.bf16.mxu0 %v2954_v34  ;;  %v8742_v33 = vld [vmem:[#allocation27 + $0x48] sm:$0xff]   ;;  %v8745_v34 = vld [vmem:[#allocation27 + $0x10] sm:$0xff]  }
 0xa40   :  { %3309 = vmatprep.subr.bf16.mxu0 %v8721_v45  ;;  %7782 = vmatprep.subr.bf16.mxu1 %v8742_v33  ;;  %v8744_v45 = vld [vmem:[#allocation27 + $0x50] sm:$0xff]  }
 0xa43   :  { %3310 = vmatpush1.bf16.msra.mxu0 %v8719_v37  ;;  %v8746_v37 = vld [vmem:[#allocation27 + $0x58] sm:$0xff]  }
 0xa44   :  { %3311 = vmatprep.subr.bf16.mxu0 %v8724_v62  ;;  %v8747_v62 = vld [vmem:[#allocation27 + $0x18] sm:$0xff]  }
 0xa46   :  { %7357 = vmatmul.mubr.msk.bf16.gmra.mrb[48].mxu0 %vm10507_vm12, %v7356_v3 }
 0xa47   :  { %3312 = vmatpush1.bf16.msra.mxu0 %v8722_v63  ;;  %3339 = vmatprep.mubr.bf16.mxu0 %v9627_v31 }
 0xa48   :  { %3313 = vmatprep.subr.bf16.mxu0 %v8727_v38 }
 0xa4b   :  { %3314 = vmatpush1.bf16.msra.mxu0 %v8725_v47 }
 0xa4c   :  { %3315 = vmatprep.subr.bf16.mxu0 %v8730_v41 }
 0xa4f   :  { %3316 = vmatpush1.bf16.msra.mxu0 %v8728_v4 }
 0xa50   :  { %3317 = vmatprep.subr.bf16.mxu0 %v8733_v16 }
 0xa53   :  { %3318 = vmatpush1.bf16.msra.mxu0 %v8731_v42 }
 0xa54   :  { %3319 = vmatprep.subr.bf16.mxu0 %v8736_v48 }
 0xa57   :  { %3320 = vmatpush1.bf16.msra.mxu0 %v8734_v5 }
 0xa58   :  { %3321 = vmatprep.subr.bf16.mxu0 %v8739_v56 }
 0xa5b   :  { %3322 = vmatpush1.bf16.msra.mxu0 %v8737_v17 }
 0xa5e   :  { %3340 = vmatmul.mubr.bf16.vlgmr.msra.gmra.mrb[44].mxu0 %v2952_v32  ;;  %v8743_v32 = vld [vmem:[#allocation27 + $0x8] sm:$0xff]  }
 0xa5f   :  { %3349 = vmatprep.mubr.bf16.mxu0 %v9627_v31  ;;  %7783 = vmatpush3.bf16.msra.mxu1 %v8743_v32 }
 0xa60   :  { %7784 = vmatprep.subr.bf16.mxu1 %v8744_v45 }
 0xa63   :  { %7785 = vmatpush3.bf16.msra.mxu1 %v8745_v34 }
 0xa64   :  { %7786 = vmatprep.subr.bf16.mxu1 %v8746_v37 }
 0xa66   :  { %3350 = vmatmul.mubr.bf16.gmra.mrb[48].mxu0 %v2955_v49 }
 0xa67   :  { %7787 = vmatpush3.bf16.msra.mxu1 %v8747_v62 }
 0xb31   :  { %v3341_v30 = vpop.f32.mrb[44].mxu0 }
 0xb32   :  { %v8201_v8 = vadd.f32 %v3341_v30, %v3009_v57  ;;  %v3343_v21 = vpop.f32.mrb[45].mxu0 }
 0xb33   :  { %v8202_v58 = vadd.f32 %v3343_v21, %v3013_v0  ;;  %v3345_v51 = vpop.f32.mrb[46].mxu0 }
 0xb34   :  { %v3376_v26 = vmul.f32 %v8201_v8, %v3364_v10  ;;  %v8203_v12 = vadd.f32 %v3345_v51, %v3009_v57  ;;  %v3347_v11 = vpop.f32.mrb[47].mxu0 }
 0xb35   :  { %v3377_v43 = vmul.f32 %v8202_v58, %v3364_v10  ;;  %v8204_v44 = vadd.f32 %v3347_v11, %v3013_v0 }
 0xb36   :  { %v3403_v14 = vadd.f32 %v3391_v52, %v3376_v26  ;;  %v3378_v55 = vmul.f32 %v8203_v12, %v3369_v54 }
 0xb37   :  { %v3404_v18 = vadd.f32 %v3391_v52, %v3377_v43  ;;  %v3379_v1 = vmul.f32 %v8204_v44, %v3369_v54 }
 0xb38   :  { %v3405_v50 = vadd.f32 %v3396_v59, %v3378_v55 }
 0xb39   :  { %v3406_v28 = vadd.f32 %v3396_v59, %v3379_v1  ;;  %v3351_v36 = vpop.f32.mrb[48].mxu0  ;;  %v8448_v35 = vpack.i.bf16 %v3404_v18, %v3403_v14 }
 0xb3a   :  { %v8205_v15 = vadd.f32 %v3351_v36, %v3009_v57  ;;  %v3353_v60 = vpop.f32.mrb[49].mxu0 }
 0xb3b   :  { %v8206_v13 = vadd.f32 %v3353_v60, %v3013_v0  ;;  %v3355_v39 = vpop.f32.mrb[50].mxu0  ;;  %v8438_v27 = vpack.i.bf16 %v3406_v28, %v3405_v50 }
 0xb3c   :  { %v3380_v9 = vmul.f32 %v8205_v15, %v3374_v53  ;;  %v3356_v20 = vpop.f32.mrb[51].mxu0 }
 0xb3d   :  { %v3381_v19 = vmul.f32 %v8206_v13, %v3374_v53  ;;  %8439 = vrot.lane.b32.xlu0 %v8438_v27, %s9632_s18 }
 0xb3e   :  { %v3407_v22 = vadd.f32 %v3401_v7, %v3380_v9 }
 0xb3f   :  { %v3408_v46 = vadd.f32 %v3401_v7, %v3381_v19  ;;  %v8748_v7 = vld [vmem:[#allocation27 + $0x60] sm:$0xff]  }
 0xb40   :  { %7788 = vmatprep.subr.bf16.mxu1 %v8748_v7 }
 0xb41   :  { %8449 = vrot.lane.b32.xlu0 %v8448_v35, %s9632_s18  ;;  %v8443_v23 = vpack.i.bf16 %v3408_v46, %v3407_v22  ;;  %7789 = vmatpush3.bf16.msra.mxu1 %v8749_v25 }
 0xb43   :  { %8444 = vrot.lane.b32.xlu1 %v8443_v23, %s9632_s18 }
 0xbaf   :  { %v8440_v63 = vpop.permute.xlu0 %8439 }
 0xbb0   :  { %v8442_v3 = vunpack.i.h.bf16 %v8440_v63  ;;  %v8441_v38 = vunpack.i.l.bf16 %v8440_v63 }
 0xbb2   :  { %v3441_v47 = vsel %vm3427_vm13, %v8442_v3, -1e+30  ;;  %v3438_v41 = vsel %vm3427_vm13, -1e+30, %v8441_v38  ;;  %v3429_v16 = vsel %vm3427_vm13, %v8441_v38, %v8442_v3 }
 0xbb3   :  { %v8450_v4 = vpop.permute.xlu0 %8449  ;;  %v3456_v5 = vrot.slane %v3441_v47, 7  ;;  %v3452_v56 = vrot.slane %v3438_v41, 7  ;;  %v3454_v57 = vrot.slane %v3429_v16, 7 }
 0xbb4   :  { %v8452_v42 = vunpack.i.h.bf16 %v8450_v4  ;;  %v8451_v48 = vunpack.i.l.bf16 %v8450_v4  ;;  %v8750_v4 = vld [vmem:[#allocation27 + $0x68] sm:$0xff]  }
 0xbb5   :  { %v8445_v17 = vpop.permute.xlu1 %8444  ;;  %7790 = vmatprep.subr.bf16.mxu1 %v8750_v4 }
 0xbb6   :  { %v3440_v49 = vsel %vm3427_vm13, %v8452_v42, -1e+30  ;;  %v3428_v53 = vsel %vm3427_vm13, %v8451_v48, %v8452_v42  ;;  %v3437_v29 = vsel %vm3427_vm13, -1e+30, %v8451_v48  ;;  %v8447_v54 = vunpack.i.h.bf16 %v8445_v17 }
 0xbb7   :  { %v3451_v59 = vrot.slane %v3440_v49, 7  ;;  %v3449_v0 = vrot.slane %v3437_v29, 7  ;;  %v3450_v30 = vrot.slane %v3428_v53, 7  ;;  %v8446_v21 = vunpack.i.l.bf16 %v8445_v17 }
 0xbb8   :  { %v3442_v8 = vsel %vm3427_vm13, %v8447_v54, -1e+30 }
 0xbb9   :  { %v3457_v10 = vsel %vm964_vm4, %v3451_v59, %v3456_v5  ;;  %v3475_v58 = vsel %vm964_vm4, -1e+30, %v3451_v59  ;;  %v10691_v51 = vsel %vm964_vm4, %v3449_v0, %v3452_v56  ;;  %v10694_v26 = vsel %vm964_vm4, %v3450_v30, %v3454_v57 }
 0xbba   :  { %v3491_v12 = vrot.slane %v3475_v58, 1  ;;  %v3492_v11 = vrot.slane %v3457_v10, 1  ;;  %v3524_v52 = vrot.slane %v3475_v58, 2  ;;  %v3473_v43 = vsel %vm964_vm4, -1e+30, %v3449_v0 }
 0xbbb   :  { %v3474_v44 = vsel %vm964_vm4, -1e+30, %v3450_v30  ;;  %v3485_v14 = vrot.slane %v3473_v43, 1  ;;  %v3486_v55 = vrot.slane %v10691_v51, 1  ;;  %v3489_v18 = vrot.slane %v10694_v26, 1 }
 0xbbc   :  { %v3488_v1 = vrot.slane %v3474_v44, 1  ;;  %v3518_v50 = vrot.slane %v3473_v43, 2  ;;  %v3519_v28 = vrot.slane %v10691_v51, 2  ;;  %v3521_v36 = vrot.slane %v3474_v44, 2 }
 0xbbd   :  { %v3487_v35 = vsel %vm535_vm0, %v3485_v14, %v3486_v55  ;;  %v3462_v15 = vrot.slane %v3442_v8, 7  ;;  %v3430_v60 = vsel %vm3427_vm13, %v8446_v21, %v8447_v54  ;;  %v3439_v13 = vsel %vm3427_vm13, -1e+30, %v8446_v21  ;;  %v8754_v14 = vld [vmem:[#allocation27 + $0x78] sm:$0xff]  }
 0xbbe   :  { %v3509_v39 = vmax.f32 %v3473_v43, %v3487_v35  ;;  %v3458_v27 = vrot.slane %v3439_v13, 7  ;;  %v3460_v9 = vrot.slane %v3430_v60, 7  ;;  %v3490_v20 = vsel %vm535_vm0, %v3488_v1, %v3489_v18  ;;  %v3870_v60 = vld [vmem:[%s11212_s4 + $0x8] sm:$0x3]  ;;  %v3869_v13 = vld [vmem:[%s11212_s4] sm:$0xff] }
 0xbbf   :  { %v3463_v19 = vsel %vm964_vm4, %v3456_v5, %v3462_v15  ;;  %v3493_v22 = vsel %vm535_vm0, %v3491_v12, %v3492_v11  ;;  %v3510_v46 = vmax.f32 %v3474_v44, %v3490_v20  ;;  %v3522_v23 = vrot.slane %v10694_v26, 2 }
 0xbc0   :  { %v3459_v61 = vsel %vm964_vm4, %v3452_v56, %v3458_v27  ;;  %v3461_v33 = vsel %vm964_vm4, %v3454_v57, %v3460_v9  ;;  %v3478_v32 = vsel %vm1010_vm5, %v3463_v19, -1e+30  ;;  %v3511_v45 = vmax.f32 %v3475_v58, %v3493_v22  ;;  %v8751_v56 = vld [vmem:[#allocation27 + $0x28] sm:$0xff]   ;;  %v8752_v58 = vld [vmem:[#allocation27 + $0x70] sm:$0xff]  }
 0xbc1   :  { %v3476_v34 = vsel %vm1010_vm5, %v3459_v61, -1e+30  ;;  %v3477_v37 = vsel %vm1010_vm5, %v3461_v33, -1e+30  ;;  %v3498_v62 = vrot.slane %v3478_v32, 1  ;;  %v3523_v63 = vsel %vm560_vm1, %v3521_v36, %v3522_v23  ;;  %7791 = vmatpush3.bf16.msra.mxu1 %v8751_v56  ;;  %v5431_v27 = vld [vmem:[%s11213_s14] sm:$0xff] }
 0xbc2   :  { %v3494_v3 = vrot.slane %v3476_v34, 1  ;;  %v3496_v38 = vrot.slane %v3477_v37, 1  ;;  %v3527_v47 = vrot.slane %v3476_v34, 2  ;;  %v3525_v41 = vrot.slane %v3457_v10, 2  ;;  %7792 = vmatprep.subr.bf16.mxu1 %v8752_v58 }
 0xbc3   :  { %v10714_v16 = vmax.f32 %v3510_v46, %v3523_v63  ;;  %v3499_v42 = vsel %vm535_vm0, %v3492_v11, %v3498_v62  ;;  %v3529_v48 = vrot.slane %v3477_v37, 2  ;;  %v3531_v5 = vrot.slane %v3478_v32, 2 }
 0xbc4   :  { %v3526_v17 = vsel %vm560_vm1, %v3524_v52, %v3525_v41  ;;  %v3497_v49 = vsel %vm535_vm0, %v3489_v18, %v3496_v38  ;;  %v3514_v53 = vmax.f32 %v3457_v10, %v3499_v42  ;;  %v3495_v29 = vsel %vm535_vm0, %v3486_v55, %v3494_v3  ;;  %v8753_v52 = vld [vmem:[#allocation27 + $0x30] sm:$0xff]   ;;  %v8755_v55 = vld [vmem:[#allocation27 + $0x38] sm:$0xff]  }
 0xbc5   :  { %v3544_v54 = vmax.f32 %v3511_v45, %v3526_v17  ;;  %v3513_v57 = vmax.f32 %v10694_v26, %v3497_v49  ;;  %v3532_v59 = vsel %vm560_vm1, %v3525_v41, %v3531_v5  ;;  %v3530_v0 = vsel %vm560_vm1, %v3522_v23, %v3529_v48  ;;  %7793 = vmatpush3.bf16.msra.mxu1 %v8753_v52 }
 0xbc6   :  { %v3547_v30 = vmax.f32 %v3514_v53, %v3532_v59  ;;  %v3512_v8 = vmax.f32 %v10691_v51, %v3495_v29  ;;  %v3520_v21 = vsel %vm560_vm1, %v3518_v50, %v3519_v28  ;;  %v3528_v11 = vsel %vm560_vm1, %v3519_v28, %v3527_v47  ;;  %7794 = vmatprep.subr.bf16.mxu1 %v8754_v14 }
 0xbc7   :  { %v8458_v12 = vpack.i.bf16 %v3544_v54, %v10714_v16  ;;  %v10726_v10 = vmax.f32 %v3513_v57, %v3530_v0  ;;  %v10729_v43 = vmax.f32 %v3509_v39, %v3520_v21  ;;  %v3516_v18 = vmax.f32 %v3477_v37, %v3496_v38  ;;  %v5432_v39 = vld [vmem:[%s11213_s14 + $0x8] sm:$0x3] }
 0xbc8   :  { %v10731_v26 = vmax.f32 %v3512_v8, %v3528_v11  ;;  %v3517_v1 = vmax.f32 %v3478_v32, %v3498_v62  ;;  %v3515_v50 = vmax.f32 %v3476_v34, %v3494_v3  ;;  %v5446_v9 = vsub.f32 1.0, %v5432_v39 }
 0xbc9   :  { %8459 = vrot.lane.b32.xlu0 %v8458_v12, %s9602_s10  ;;  %8454 = vrot.lane.b32.xlu1 %v8458_v12, %s9629_s2  ;;  %v8468_v51 = vpack.i.bf16 %v3547_v30, %v10726_v10  ;;  %v10740_v28 = vmax.f32 %v3516_v18, %v3529_v48  ;;  %v5445_v20 = vsub.f32 1.0, %v5431_v27 }
 0xbca   :  { %v8463_v44 = vpack.i.bf16 %v10731_v26, %v10729_v43  ;;  %7795 = vmatpush3.bf16.msra.mxu1 %v8755_v55  ;;  %v3550_v36 = vmax.f32 %v3517_v1, %v3531_v5  ;;  %v10744_v35 = vmax.f32 %v3515_v50, %v3527_v47  ;;  %v5448_v7 = vmul.f32 -1e+30, %v5446_v9 }
 0xbcb   :  { %v5447_v19 = vmul.f32 -1e+30, %v5445_v20  ;;  %v9633_v20 = vmov 0.0  }
 0xbcc   :  { %v8483_v15 = vpack.i.bf16 %v3550_v36, %v10740_v28  ;;  %8067 = vmatprep.subr.bf16.mxu1 %v9633_v20 }
 0xbcd   :  { %8469 = vrot.lane.b32.xlu0 %v8468_v51, %s9629_s2  ;;  %8464 = vrot.lane.b32.xlu1 %v8463_v44, %s9629_s2 }
 0xbd1   :  { %8474 = vrot.lane.b32.xlu0 %v8463_v44, %s9602_s10  ;;  %8479 = vrot.lane.b32.xlu1 %v8468_v51, %s9602_s10 }
 0xbd5   :  { %3572 = vrot.lane.b32.xlu0 %v10744_v35, %s9629_s2  ;;  %8484 = vrot.lane.b32.xlu1 %v8483_v15, %s9629_s2 }
 0xbd9   :  { %3608 = vrot.lane.b32.xlu0 %v10744_v35, %s9602_s10  ;;  %8489 = vrot.lane.b32.xlu1 %v8483_v15, %s9602_s10 }
 0xbdd   :  { %4178 = vperm.xlu0 %8342, %v3870_v60   ;;  %4173 = vperm.xlu1 %8341, %v3869_v13  }
 0xbe1   :  { %5440 = vperm.xlu0 %8342, %v5432_v39   ;;  %5435 = vperm.xlu1 %8341, %v5431_v27  }
 0xbe5   :  { %5456 = vperm.xlu0 %8342, %v5448_v7   ;;  %5451 = vperm.xlu1 %8341, %v5447_v19  }
 0xc3b   :  { %v8460_v22 = vpop.permute.xlu0 %8459  ;;  %v8455_v46 = vpop.permute.xlu1 %8454 }
 0xc3c   :  { %v8457_v23 = vunpack.i.h.bf16 %v8455_v46  ;;  %v8456_v25 = vunpack.i.l.bf16 %v8455_v46  ;;  %v8462_v63 = vunpack.i.h.bf16 %v8460_v22  ;;  %v8461_v3 = vunpack.i.l.bf16 %v8460_v22 }
 0xc3e   :  { %v3579_v61 = vsel %vm1240_vm7, %v8456_v25, %v8457_v23  ;;  %v3615_v57 = vsel %vm575_vm2, %v8461_v3, %v8462_v63  ;;  %v8756_v63 = vld [vmem:[#allocation28] sm:$0x3f]  }
 0xc3f   :  { %v8470_v33 = vpop.permute.xlu0 %8469  ;;  %v8465_v32 = vpop.permute.xlu1 %8464  ;;  %v3591_v4 = vmax.f32 %v10714_v16, %v3579_v61 }
 0xc40   :  { %v8472_v45 = vunpack.i.h.bf16 %v8470_v33  ;;  %v8471_v34 = vunpack.i.l.bf16 %v8470_v33  ;;  %v8467_v37 = vunpack.i.h.bf16 %v8465_v32  ;;  %v8466_v62 = vunpack.i.l.bf16 %v8465_v32 }
 0xc41   :  { %v3627_v12 = vmax.f32 %v3591_v4, %v3615_v57  ;;  %v8762_v4 = vld [vmem:[#allocation15 + $0x10] sm:$0xff]   ;;  %v8772_v57 = vld [vmem:[#allocation15 + $0x38] sm:$0xff]  }
 0xc42   :  { %v3581_v38 = vsel %vm1240_vm7, %v8471_v34, %v8472_v45  ;;  %v3580_v47 = vsel %vm1240_vm7, %v8467_v37, %v8471_v34  ;;  %v3578_v41 = vsel %vm1240_vm7, %v8466_v62, %v8456_v25  ;;  %v8757_v37 = vld [vmem:[#allocation15 + $0x40] sm:$0xff]  }
 0xc43   :  { %v8475_v42 = vpop.permute.xlu0 %8474  ;;  %v8480_v48 = vpop.permute.xlu1 %8479  ;;  %v3593_v53 = vmax.f32 %v10726_v10, %v3581_v38  ;;  %v3592_v29 = vmax.f32 %v10731_v26, %v3580_v47  ;;  %v3590_v54 = vmax.f32 %v10729_v43, %v3578_v41  ;;  %v8759_v38 = vld [vmem:[#allocation15 + $0x48] sm:$0xff]   ;;  %v8761_v41 = vld [vmem:[#allocation15 + $0x50] sm:$0xff]  }
 0xc44   :  { %v8477_v5 = vunpack.i.h.bf16 %v8475_v42  ;;  %v8476_v56 = vunpack.i.l.bf16 %v8475_v42  ;;  %v8482_v17 = vunpack.i.h.bf16 %v8480_v48  ;;  %v8481_v49 = vunpack.i.l.bf16 %v8480_v48  ;;  %v8760_v47 = vld [vmem:[#allocation15 + $0x8] sm:$0xff]   ;;  %v8763_v42 = vld [vmem:[#allocation15 + $0x58] sm:$0xff]  }
 0xc45   :  { %v8764_v48 = vld [vmem:[#allocation15 + $0x18] sm:$0xff]  }
 0xc46   :  { %v3614_v59 = vsel %vm575_vm2, %v8476_v56, %v8461_v3  ;;  %v3616_v0 = vsel %vm575_vm2, %v8477_v5, %v8481_v49  ;;  %v3617_v16 = vsel %vm575_vm2, %v8481_v49, %v8482_v17  ;;  %v8758_v3 = vld [vmem:[#allocation15] sm:$0xff]   ;;  %v8767_v17 = vld [vmem:[#allocation15 + $0x68] sm:$0xff]  }
 0xc47   :  { %v3626_v30 = vmax.f32 %v3590_v54, %v3614_v59  ;;  %v3628_v8 = vmax.f32 %v3592_v29, %v3616_v0  ;;  %v3573_v21 = vpop.permute.xlu0 %3572  ;;  %v8485_v58 = vpop.permute.xlu1 %8484  ;;  %v3629_v11 = vmax.f32 %v3593_v53, %v3617_v16  ;;  %v8765_v5 = vld [vmem:[#allocation15 + $0x60] sm:$0xff]   ;;  %v8768_v49 = vld [vmem:[#allocation15 + $0x28] sm:$0xff]   ;;  %v8769_v53 = vld [vmem:[#allocation15 + $0x70] sm:$0xff]  }
 0xc48   :  { %v8487_v52 = vunpack.i.h.bf16 %v8485_v58  ;;  %v8486_v10 = vunpack.i.l.bf16 %v8485_v58  ;;  %v8766_v56 = vld [vmem:[#allocation15 + $0x20] sm:$0xff]   ;;  %v8770_v29 = vld [vmem:[#allocation15 + $0x30] sm:$0xff]   ;;  %v8771_v54 = vld [vmem:[#allocation15 + $0x78] sm:$0xff]  }
 0xc49   :  { %v3633_v51 = vpack.c.bf16 %v3629_v11, %v3627_v12  ;;  %v3632_v26 = vpack.c.bf16 %v3628_v8, %v3626_v30 }
 0xc4a   :  { %v3582_v43 = vsel %vm1240_vm7, %v3573_v21, %v8486_v10  ;;  %v3583_v44 = vsel %vm1240_vm7, %v8486_v10, %v8487_v52 }
 0xc4b   :  { %v8490_v14 = vpop.permute.xlu1 %8489  ;;  %3796 = vmatprep.mubr.bf16.mxu1 %v3633_v51  ;;  %v3609_v1 = vpop.permute.xlu0 %3608  ;;  %v3595_v50 = vmax.f32 %v10740_v28, %v3583_v44  ;;  %v3594_v36 = vmax.f32 %v10744_v35, %v3582_v43 }
 0xc4c   :  { %v8492_v55 = vunpack.i.h.bf16 %v8490_v14  ;;  %v8491_v18 = vunpack.i.l.bf16 %v8490_v14  ;;  %3797 = vmatmul.mubr.bf16.vlgmr.msra.gmra.mrb[32].mxu1 %v3632_v26 }
 0xc4e   :  { %v3619_v15 = vsel %vm575_vm2, %v8491_v18, %v8492_v55  ;;  %v3618_v60 = vsel %vm575_vm2, %v3609_v1, %v8491_v18  ;;  %v8773_v18 = vld [vmem:[#allocation15 + $0x80] sm:$0xff]  }
 0xc4f   :  { %v3631_v13 = vmax.f32 %v3595_v50, %v3619_v15  ;;  %v3630_v39 = vmax.f32 %v3594_v36, %v3618_v60  ;;  %v8774_v50 = vld [vmem:[#allocation15 + $0x88] sm:$0xff]   ;;  %v8775_v36 = vld [vmem:[#allocation15 + $0x90] sm:$0xff]   ;;  %v8776_v15 = vld [vmem:[#allocation15 + $0x98] sm:$0xff]  }
 0xc50   :  { %v8777_v60 = vld [vmem:[#allocation15 + $0xa0] sm:$0xff]  }
 0xc51   :  { %v3635_v27 = vpack.c.bf16 %v3631_v13, %v3631_v13  ;;  %v3634_v9 = vpack.c.bf16 %v3630_v39, %v3630_v39  ;;  %v8778_v13 = vld [vmem:[#allocation15 + $0xa8] sm:$0xff]   ;;  %v8779_v39 = vld [vmem:[#allocation15 + $0xb0] sm:$0xff]  }
 0xc53   :  { %3804 = vmatprep.mubr.bf16.mxu1 %v3635_v27  ;;  %v8780_v27 = vld [vmem:[#allocation15 + $0xb8] sm:$0xff]  }
 0xc54   :  { %3805 = vmatmul.mubr.bf16.gmra.mrb[36].mxu1 %v3634_v9  ;;  %v8781_v9 = vld [vmem:[#allocation18 + $0x40] sm:$0xff]  }
 0xc55   :  { %8071 = vmatprep.mubr.msk.bf16.mxu1 %vm9634_vm14, %v9633_v20  ;;  %7842 = vmatprep.subr.bf16.mxu0 %v8781_v9 }
 0xd1f   :  { %v7796_v28 = vpop.f32.mrb[32].mxu1 }
 0xd20   :  { %v7797_v7 = vpop.f32.mrb[33].mxu1 }
 0xd21   :  { %v7798_v35 = vadd.f32 %v7797_v7, %v7796_v28  ;;  %v7799_v19 = vpop.f32.mrb[34].mxu1  ;;  %v8782_v28 = vld [vmem:[#allocation18 + $0x80] sm:$0xff]  }
 0xd22   :  { %v7800_v22 = vpop.f32.mrb[35].mxu1  ;;  %v8783_v7 = vld [vmem:[#allocation18] sm:$0xff]  }
 0xd23   :  { %v7801_v46 = vadd.f32 %v7800_v22, %v7799_v19  ;;  %v8785_v19 = vld [vmem:[#allocation18 + $0x88] sm:$0xff]   ;;  %7843 = vmatpush3.bf16.msra.mxu0 %v8783_v7 }
 0xd24   :  { %v8786_v22 = vld [vmem:[#allocation18 + $0x8] sm:$0xff]  }
 0xd25   :  { %v3814_v23 = vpack.c.bf16 %v7801_v46, %v7798_v35  ;;  %v8784_v35 = vld [vmem:[#allocation18 + $0x48] sm:$0xff]   ;;  %v8787_v46 = vld [vmem:[#allocation18 + $0x50] sm:$0xff]  }
 0xd26   :  { %7844 = vmatprep.subr.bf16.mxu0 %v8784_v35  ;;  %v8806_v35 = vld [vmem:[#allocation21 + $0x80] sm:$0xff]  }
 0xd27   :  { %v7802_v25 = vpop.f32.mrb[36].mxu1  ;;  %8068 = vmatpush3.bf16.msra.mxu1 %v3814_v23  ;;  %v8788_v23 = vld [vmem:[#allocation18 + $0x90] sm:$0xff]   ;;  %7845 = vmatpush3.bf16.msra.mxu0 %v8786_v22 }
 0xd28   :  { %v7803_v61 = vpop.f32.mrb[37].mxu1  ;;  %8069 = vmatprep.subr.bf16.mxu1 %v9633_v20  ;;  %7846 = vmatprep.subr.bf16.mxu0 %v8787_v46 }
 0xd29   :  { %v7804_v33 = vadd.f32 %v7803_v61, %v7802_v25  ;;  %v7805_v32 = vpop.f32.mrb[38].mxu1  ;;  %v8789_v25 = vld [vmem:[#allocation18 + $0x10] sm:$0xff]   ;;  %v8790_v61 = vld [vmem:[#allocation18 + $0x58] sm:$0xff]  }
 0xd2a   :  { %v7806_v45 = vpop.f32.mrb[39].mxu1  ;;  %v8792_v32 = vld [vmem:[#allocation18 + $0x18] sm:$0xff]  }
 0xd2b   :  { %v3815_v34 = vpack.c.bf16 %v7804_v33, %v7804_v33  ;;  %v8791_v33 = vld [vmem:[#allocation18 + $0x98] sm:$0xff]   ;;  %7847 = vmatpush3.bf16.msra.mxu0 %v8789_v25  ;;  %v8793_v45 = vld [vmem:[#allocation18 + $0x60] sm:$0xff]   ;;  %v8808_v25 = vld [vmem:[#allocation21 + $0x48] sm:$0xff]  }
 0xd2c   :  { %7848 = vmatprep.subr.bf16.mxu0 %v8790_v61  ;;  %v8809_v61 = vld [vmem:[#allocation21 + $0x88] sm:$0xff]  }
 0xd2d   :  { %v3826_v62 = vsel %vm964_vm4, %v3815_v34, 0  ;;  %v8794_v34 = vld [vmem:[#allocation18 + $0xa0] sm:$0xff]  }
 0xd2e   :  { %8070 = vmatpush3.bf16.msra.mxu1 %v3826_v62  ;;  %v8796_v62 = vld [vmem:[#allocation18 + $0x68] sm:$0xff]  }
 0xd2f   :  { %7811 = vmatprep.subr.bf16.mxu1 %v8757_v37  ;;  %7849 = vmatpush3.bf16.msra.mxu0 %v8792_v32  ;;  %v8795_v37 = vld [vmem:[#allocation18 + $0x20] sm:$0xff]   ;;  %v8812_v32 = vld [vmem:[#allocation21 + $0x90] sm:$0xff]  }
 0xd30   :  { %7850 = vmatprep.subr.bf16.mxu0 %v8793_v45  ;;  %v8813_v45 = vld [vmem:[#allocation21 + $0x10] sm:$0xff]  }
 0xd31   :  { %8072 = vmatmul.mubr.msk.bf16.vlgmr.msra.gmra.mrb[40].mxu1 %vm3821_vm15, %v8756_v63  ;;  %v8797_v63 = vld [vmem:[#allocation18 + $0xa8] sm:$0xff]  }
 0xd32   :  { %7812 = vmatpush3.bf16.msra.mxu1 %v8758_v3  ;;  %v8798_v3 = vld [vmem:[#allocation18 + $0x28] sm:$0xff]  }
 0xd33   :  { %7813 = vmatprep.subr.bf16.mxu1 %v8759_v38  ;;  %7851 = vmatpush3.bf16.msra.mxu0 %v8795_v37  ;;  %v8799_v38 = vld [vmem:[#allocation18 + $0x70] sm:$0xff]   ;;  %v8815_v37 = vld [vmem:[#allocation21 + $0x98] sm:$0xff]  }
 0xd34   :  { %7852 = vmatprep.subr.bf16.mxu0 %v8796_v62  ;;  %v8816_v62 = vld [vmem:[#allocation21 + $0x18] sm:$0xff]  }
 0xd36   :  { %7814 = vmatpush3.bf16.msra.mxu1 %v8760_v47  ;;  %v8800_v47 = vld [vmem:[#allocation18 + $0xb0] sm:$0xff]  }
 0xd37   :  { %7815 = vmatprep.subr.bf16.mxu1 %v8761_v41  ;;  %7853 = vmatpush3.bf16.msra.mxu0 %v8798_v3  ;;  %v8801_v41 = vld [vmem:[#allocation18 + $0x30] sm:$0xff]   ;;  %v8818_v3 = vld [vmem:[#allocation21 + $0xa0] sm:$0xff]  }
 0xd38   :  { %7854 = vmatprep.subr.bf16.mxu0 %v8799_v38  ;;  %v8819_v38 = vld [vmem:[#allocation21 + $0x20] sm:$0xff]  }
 0xd3a   :  { %7816 = vmatpush3.bf16.msra.mxu1 %v8762_v4  ;;  %v8802_v4 = vld [vmem:[#allocation18 + $0x78] sm:$0xff]  }
 0xd3b   :  { %7817 = vmatprep.subr.bf16.mxu1 %v8763_v42  ;;  %v8803_v42 = vld [vmem:[#allocation18 + $0xb8] sm:$0xff]   ;;  %7855 = vmatpush3.bf16.msra.mxu0 %v8801_v41  ;;  %v8821_v41 = vld [vmem:[#allocation21 + $0xa8] sm:$0xff]  }
 0xd3c   :  { %7856 = vmatprep.subr.bf16.mxu0 %v8802_v4  ;;  %v8822_v4 = vld [vmem:[#allocation21 + $0x28] sm:$0xff]  }
 0xd3e   :  { %7818 = vmatpush3.bf16.msra.mxu1 %v8764_v48  ;;  %v8804_v48 = vld [vmem:[#allocation18 + $0x38] sm:$0xff]  }
 0xd3f   :  { %7819 = vmatprep.subr.bf16.mxu1 %v8765_v5  ;;  %7857 = vmatpush3.bf16.msra.mxu0 %v8804_v48  ;;  %v8805_v5 = vld [vmem:[#allocation21 + $0x40] sm:$0xff]   ;;  %v8824_v48 = vld [vmem:[#allocation21 + $0xb0] sm:$0xff]  }
 0xd40   :  { %7873 = vmatprep.subr.bf16.mxu0 %v8805_v5  ;;  %v8825_v5 = vld [vmem:[#allocation21 + $0x30] sm:$0xff]  }
 0xd42   :  { %7820 = vmatpush3.bf16.msra.mxu1 %v8766_v56 }
 0xd43   :  { %7821 = vmatprep.subr.bf16.mxu1 %v8767_v17 }
 0xd46   :  { %7822 = vmatpush3.bf16.msra.mxu1 %v8768_v49 }
 0xd47   :  { %7823 = vmatprep.subr.bf16.mxu1 %v8769_v53 }
 0xd4a   :  { %7824 = vmatpush3.bf16.msra.mxu1 %v8770_v29 }
 0xd4b   :  { %7825 = vmatprep.subr.bf16.mxu1 %v8771_v54 }
 0xd4e   :  { %7826 = vmatpush3.bf16.msra.mxu1 %v8772_v57  ;;  %v7376_v57 = vld [vmem:[#allocation16] ss:$0 sm:$0xff] }
 0xd4f   :  { %8075 = vmatprep.subr.bf16.mxu1 %v9633_v20 }
 0xe04   :  { %v3862_v59 = vpop.f32.mrb[40].mxu1 }
 0xe05   :  { %v3871_v0 = vmax.f32 %v3862_v59, 0.0  ;;  %v8073_v16 = vpop.f32.mrb[41].mxu1  ;;  %v4490_v8 = vrot.slane %v3862_v59, 1 }
 0xe06   :  { %v10781_v30 = vpop.f32.mrb[42].mxu1 }
 0xe07   :  { %v3872_v21 = vmax.f32 %v10781_v30, 0.0  ;;  %v4491_v58 = vrot.slane %v10781_v30, 1  ;;  %v8074_v12 = vpop.f32.mrb[43].mxu1  ;;  %v3875_v11 = vrot.slane %v3871_v0, 1  ;;  %v3880_v52 = vrot.slane %v3871_v0, 2 }
 0xe09   :  { %v3881_v10 = vrot.slane %v3872_v21, 2  ;;  %v3885_v51 = vpack.c.bf16 %v3872_v21, %v3871_v0  ;;  %v10788_v26 = vsel %vm535_vm0, %v4490_v8, %v4491_v58  ;;  %v3876_v43 = vrot.slane %v3872_v21, 1 }
 0xe0b   :  { %v3877_v44 = vsel %vm535_vm0, %v3875_v11, %v3876_v43  ;;  %v3882_v14 = vsel %vm560_vm1, %v3880_v52, %v3881_v10 }
 0xe0c   :  { %v3886_v55 = vpack.c.bf16 %v3876_v43, %v3877_v44  ;;  %v3887_v1 = vpack.c.bf16 %v3881_v10, %v3882_v14  ;;  %v10815_v14 = vpop.permute.xlu0 %4178 }
 0xe0e   :  { %4119 = vmatprep.mubr.bf16.mxu1 %v3886_v55 }
 0xe0f   :  { %4120 = vmatmul.mubr.bf16.vlgmr.msra.gmra.mrb[44].mxu1 %v3885_v51  ;;  %v10812_v51 = vpop.permute.xlu1 %4173 }
 0xe10   :  { %8076 = vmatpush3.bf16.msra.mxu1 %v8773_v18  ;;  %8091 = vmatprep.mubr.msk.bf16.mxu1 %vm9634_vm14, %v9633_v20 }
 0xe11   :  { %8077 = vmatprep.subr.bf16.mxu1 %v9633_v20 }
 0xe14   :  { %8078 = vmatpush3.bf16.msra.mxu1 %v8774_v50 }
 0xe15   :  { %8079 = vmatprep.subr.bf16.mxu1 %v9633_v20 }
 0xe18   :  { %8080 = vmatpush3.bf16.msra.mxu1 %v8775_v36 }
 0xe19   :  { %8081 = vmatprep.subr.bf16.mxu1 %v9633_v20 }
 0xe1c   :  { %8082 = vmatpush3.bf16.msra.mxu1 %v8776_v15 }
 0xe1d   :  { %8083 = vmatprep.subr.bf16.mxu1 %v9633_v20 }
 0xe20   :  { %8084 = vmatpush3.bf16.msra.mxu1 %v8777_v60 }
 0xe21   :  { %8085 = vmatprep.subr.bf16.mxu1 %v9633_v20 }
 0xe24   :  { %8086 = vmatpush3.bf16.msra.mxu1 %v8778_v13 }
 0xe25   :  { %8087 = vmatprep.subr.bf16.mxu1 %v9633_v20 }
 0xe28   :  { %8088 = vmatpush3.bf16.msra.mxu1 %v8779_v39 }
 0xe29   :  { %8089 = vmatprep.subr.bf16.mxu1 %v9633_v20 }
 0xe2c   :  { %8090 = vmatpush3.bf16.msra.mxu1 %v8780_v27 }
 0xe2d   :  { %8095 = vmatprep.subr.bf16.mxu1 %v9633_v20 }
 0xe2f   :  { %8092 = vmatmul.mubr.bf16.vlgmr.msra.gmra.mrb[48].mxu1 %v3887_v1 }
 0xe30   :  { %8111 = vmatprep.mubr.msk.bf16.mxu1 %vm9634_vm14, %v9633_v20  ;;  %8096 = vmatpush3.bf16.msra.mxu1 %v8782_v28 }
 0xe31   :  { %8097 = vmatprep.subr.bf16.mxu1 %v9633_v20 }
 0xe34   :  { %8098 = vmatpush3.bf16.msra.mxu1 %v8785_v19 }
 0xe35   :  { %8099 = vmatprep.subr.bf16.mxu1 %v9633_v20 }
 0xe38   :  { %8100 = vmatpush3.bf16.msra.mxu1 %v8788_v23  ;;  %v8807_v23 = vld [vmem:[#allocation21] sm:$0xff]  }
 0xe39   :  { %8101 = vmatprep.subr.bf16.mxu1 %v9633_v20 }
 0xe3c   :  { %8102 = vmatpush3.bf16.msra.mxu1 %v8791_v33  ;;  %v8811_v33 = vld [vmem:[#allocation21 + $0x50] sm:$0xff]  }
 0xe3d   :  { %8103 = vmatprep.subr.bf16.mxu1 %v9633_v20 }
 0xe40   :  { %8104 = vmatpush3.bf16.msra.mxu1 %v8794_v34  ;;  %v8814_v34 = vld [vmem:[#allocation21 + $0x58] sm:$0xff]  }
 0xe41   :  { %8105 = vmatprep.subr.bf16.mxu1 %v9633_v20 }
 0xe44   :  { %8106 = vmatpush3.bf16.msra.mxu1 %v8797_v63  ;;  %v8817_v63 = vld [vmem:[#allocation21 + $0x60] sm:$0xff]  }
 0xe45   :  { %8107 = vmatprep.subr.bf16.mxu1 %v9633_v20 }
 0xe48   :  { %8108 = vmatpush3.bf16.msra.mxu1 %v8800_v47  ;;  %v8820_v47 = vld [vmem:[#allocation21 + $0x68] sm:$0xff]  }
 0xe49   :  { %8109 = vmatprep.subr.bf16.mxu1 %v9633_v20 }
 0xe4c   :  { %8110 = vmatpush3.bf16.msra.mxu1 %v8803_v42  ;;  %v8823_v42 = vld [vmem:[#allocation21 + $0x70] sm:$0xff]  }
 0xe4d   :  { %8115 = vmatprep.subr.bf16.mxu1 %v9633_v20 }
 0xee2   :  { %v7827_v56 = vpop.f32.mrb[44].mxu1 }
 0xee3   :  { %v7828_v17 = vpop.f32.mrb[45].mxu1 }
 0xee4   :  { %v7829_v49 = vadd.f32 %v7828_v17, %v7827_v56  ;;  %v7830_v53 = vpop.f32.mrb[46].mxu1  ;;  %v8826_v56 = vld [vmem:[#allocation21 + $0x78] sm:$0xff]  }
 0xee5   :  { %v7831_v29 = vpop.f32.mrb[47].mxu1  ;;  %v8827_v17 = vld [vmem:[#allocation21 + $0xb8] sm:$0xff]  }
 0xee6   :  { %v7832_v54 = vadd.f32 %v7831_v29, %v7830_v53  ;;  %v4122_v59 = vadd.f32 %v7829_v49, %v7376_v57  ;;  %v8828_v49 = vld [vmem:[#allocation21 + $0x38] sm:$0xff]   ;;  %v8829_v53 = vld [vmem:[#allocation24 + $0x40] sm:$0xff]  }
 0xee8   :  { %v4125_v21 = vadd.f32 %v7832_v54, %v7376_v57 }
 0xf02   :  { %v4162_v0 = vpop.f32.mrb[48].mxu1 }
 0xf03   :  { %v4163_v16 = vadd.f32 %v4162_v0, %v4122_v59  ;;  %v8093_v8 = vpop.f32.mrb[49].mxu1  ;;  %v7401_v59 = vld [vmem:[#allocation19] ss:$0 sm:$0xff] }
 0xf04   :  { %v4165_v12 = vpop.f32.mrb[50].mxu1 }
 0xf05   :  { %v4169_v11 = vmax.f32 %v4163_v16, 0.0  ;;  %v4166_v52 = vadd.f32 %v4165_v12, %v4125_v21  ;;  %v8094_v10 = vpop.f32.mrb[51].mxu1 }
 0xf07   :  { %v4181_v43 = vmul.f32 %v10812_v51, %v4169_v11  ;;  %v4170_v44 = vmax.f32 %v4166_v52, 0.0 }
 0xf09   :  { %v4185_v55 = vrot.slane %v4181_v43, 7  ;;  %v4182_v18 = vmul.f32 %v10815_v14, %v4170_v44 }
 0xf0b   :  { %v4186_v1 = vrot.slane %v4182_v18, 7  ;;  %v4190_v50 = vsel %vm964_vm4, 0.0, %v4185_v55 }
 0xf0c   :  { %v4194_v13 = vrot.slane %v4190_v50, 1  ;;  %v4199_v39 = vrot.slane %v4190_v50, 2 }
 0xf0d   :  { %v4187_v36 = vsel %vm964_vm4, %v4185_v55, %v4186_v1 }
 0xf0e   :  { %v4191_v15 = vsel %vm1010_vm5, %v4187_v36, 0.0  ;;  %v7428_v60 = vpack.c.bf16 %v4187_v36, %v4185_v55 }
 0xf0f   :  { %v4195_v27 = vrot.slane %v4191_v15, 1  ;;  %v4200_v9 = vrot.slane %v4191_v15, 2 }
 0xf11   :  { %v4196_v28 = vsel %vm535_vm0, %v4194_v13, %v4195_v27  ;;  %v4201_v7 = vsel %vm560_vm1, %v4199_v39, %v4200_v9 }
 0xf12   :  { %v4205_v19 = vpack.c.bf16 %v4195_v27, %v4196_v28  ;;  %v4206_v22 = vpack.c.bf16 %v4200_v9, %v4201_v7 }
 0xf14   :  { %4438 = vmatprep.mubr.bf16.mxu0 %v4205_v19  ;;  %8112 = vmatmul.mubr.bf16.vlgmr.msra.gmra.mrb[52].mxu1 %v4206_v22 }
 0xf15   :  { %7429 = vmatmul.mubr.msk.bf16.vlgmr.msra.gmra.mrb[52].mxu0 %vm10826_vm3, %v7428_v60  ;;  %8116 = vmatpush3.bf16.msra.mxu1 %v8806_v35 }
 0xf16   :  { %7874 = vmatpush3.bf16.msra.mxu0 %v8807_v23  ;;  %8117 = vmatprep.subr.bf16.mxu1 %v9633_v20 }
 0xf17   :  { %7875 = vmatprep.subr.bf16.mxu0 %v8808_v25  ;;  %8131 = vmatprep.mubr.msk.bf16.mxu1 %vm9634_vm14, %v9633_v20 }
 0xf19   :  { %8118 = vmatpush3.bf16.msra.mxu1 %v8809_v61 }
 0xf1a   :  { %8119 = vmatprep.subr.bf16.mxu1 %v9633_v20  ;;  %7876 = vmatpush3.bf16.msra.mxu0 %v8810_v40  ;;  %v8830_v40 = vld [vmem:[#allocation24 + $0x80] sm:$0xff]  }
 0xf1b   :  { %7877 = vmatprep.subr.bf16.mxu0 %v8811_v33 }
 0xf1d   :  { %8120 = vmatpush3.bf16.msra.mxu1 %v8812_v32 }
 0xf1e   :  { %7878 = vmatpush3.bf16.msra.mxu0 %v8813_v45  ;;  %8121 = vmatprep.subr.bf16.mxu1 %v9633_v20  ;;  %v8831_v45 = vld [vmem:[#allocation24] sm:$0xff]  }
 0xf1f   :  { %7879 = vmatprep.subr.bf16.mxu0 %v8814_v34  ;;  %v8832_v34 = vld [vmem:[#allocation24 + $0x48] sm:$0xff]  }
 0xf21   :  { %8122 = vmatpush3.bf16.msra.mxu1 %v8815_v37  ;;  %v8833_v37 = vld [vmem:[#allocation24 + $0x88] sm:$0xff]  }
 0xf22   :  { %7880 = vmatpush3.bf16.msra.mxu0 %v8816_v62  ;;  %8123 = vmatprep.subr.bf16.mxu1 %v9633_v20  ;;  %v8834_v62 = vld [vmem:[#allocation24 + $0x8] sm:$0xff]  }
 0xf23   :  { %7881 = vmatprep.subr.bf16.mxu0 %v8817_v63  ;;  %v8835_v63 = vld [vmem:[#allocation24 + $0x50] sm:$0xff]  }
 0xf25   :  { %8124 = vmatpush3.bf16.msra.mxu1 %v8818_v3  ;;  %v8836_v3 = vld [vmem:[#allocation24 + $0x90] sm:$0xff]  }
 0xf26   :  { %7882 = vmatpush3.bf16.msra.mxu0 %v8819_v38  ;;  %8125 = vmatprep.subr.bf16.mxu1 %v9633_v20  ;;  %v8837_v38 = vld [vmem:[#allocation24 + $0x10] sm:$0xff]  }
 0xf27   :  { %7883 = vmatprep.subr.bf16.mxu0 %v8820_v47  ;;  %v8838_v47 = vld [vmem:[#allocation24 + $0x58] sm:$0xff]  }
 0xf29   :  { %8126 = vmatpush3.bf16.msra.mxu1 %v8821_v41  ;;  %v8839_v41 = vld [vmem:[#allocation24 + $0x98] sm:$0xff]  }
 0xf2a   :  { %7884 = vmatpush3.bf16.msra.mxu0 %v8822_v4  ;;  %8127 = vmatprep.subr.bf16.mxu1 %v9633_v20  ;;  %v8840_v4 = vld [vmem:[#allocation24 + $0x18] sm:$0xff]  }
 0xf2b   :  { %7885 = vmatprep.subr.bf16.mxu0 %v8823_v42  ;;  %v8841_v42 = vld [vmem:[#allocation24 + $0x60] sm:$0xff]  }
 0xf2d   :  { %8128 = vmatpush3.bf16.msra.mxu1 %v8824_v48  ;;  %v8842_v48 = vld [vmem:[#allocation24 + $0xa0] sm:$0xff]  }
 0xf2e   :  { %7886 = vmatpush3.bf16.msra.mxu0 %v8825_v5  ;;  %8129 = vmatprep.subr.bf16.mxu1 %v9633_v20  ;;  %v8843_v5 = vld [vmem:[#allocation24 + $0x20] sm:$0xff]  }
 0xf2f   :  { %7887 = vmatprep.subr.bf16.mxu0 %v8826_v56  ;;  %v8844_v56 = vld [vmem:[#allocation24 + $0x68] sm:$0xff]  }
 0xf31   :  { %8130 = vmatpush3.bf16.msra.mxu1 %v8827_v17  ;;  %v8845_v17 = vld [vmem:[#allocation24 + $0xa8] sm:$0xff]  }
 0xf32   :  { %7888 = vmatpush3.bf16.msra.mxu0 %v8828_v49  ;;  %8135 = vmatprep.subr.bf16.mxu1 %v9633_v20  ;;  %v8846_v49 = vld [vmem:[#allocation24 + $0x28] sm:$0xff]  }
 0xf33   :  { %7904 = vmatprep.subr.bf16.mxu0 %v8829_v53  ;;  %v8847_v53 = vld [vmem:[#allocation24 + $0x70] sm:$0xff]  }
 0xfe7   :  { %v4481_v29 = vpop.f32.mrb[52].mxu1 }
 0xfe8   :  { %v7858_v54 = vpop.f32.mrb[52].mxu0  ;;  %v8113_v57 = vpop.f32.mrb[53].mxu1 }
 0xfe9   :  { %v7859_v0 = vpop.f32.mrb[53].mxu0  ;;  %v4484_v16 = vpop.f32.mrb[54].mxu1  ;;  %v8850_v57 = vld [vmem:[#allocation24 + $0x78] sm:$0xff]  }
 0xfea   :  { %v7860_v8 = vadd.f32 %v7859_v0, %v7858_v54  ;;  %v7861_v21 = vpop.f32.mrb[54].mxu0  ;;  %v8114_v12 = vpop.f32.mrb[55].mxu1  ;;  %v8849_v54 = vld [vmem:[#allocation24 + $0x30] sm:$0xff]   ;;  %v8852_v0 = vld [vmem:[#allocation24 + $0x38] sm:$0xff]  }
 0xfeb   :  { %v7862_v11 = vpop.f32.mrb[55].mxu0 }
 0xfec   :  { %v4441_v52 = vadd.f32 %v7860_v8, %v7401_v59  ;;  %v7863_v10 = vadd.f32 %v7862_v11, %v7861_v21  ;;  %v7430_v11 = vld [vmem:[#allocation22] ss:$0 sm:$0xff] }
 0xfee   :  { %v4482_v43 = vadd.f32 %v4481_v29, %v4441_v52  ;;  %v4444_v44 = vadd.f32 %v7863_v10, %v7401_v59  ;;  %v8848_v29 = vld [vmem:[#allocation24 + $0xb0] sm:$0xff]   ;;  %v8851_v59 = vld [vmem:[#allocation24 + $0xb8] sm:$0xff]  }
 0xff0   :  { %v4495_v55 = vadd.f32 %v10788_v26, %v4482_v43  ;;  %v4485_v18 = vadd.f32 %v4484_v16, %v4444_v44  ;;  %v8853_v16 = vld [vmem:[#allocation30 + $0x40] sm:$0xff]  }
 0xff2   :  { %v4497_v1 = vmul.f32 %v4495_v55, %v10812_v51  ;;  %v4496_v50 = vadd.f32 %v4491_v58, %v4485_v18 }
 0xff4   :  { %v4501_v36 = vrot.slane %v4497_v1, 7  ;;  %v4498_v15 = vmul.f32 %v4496_v50, %v10815_v14 }
 0xff6   :  { %v4506_v60 = vsel %vm964_vm4, 0.0, %v4501_v36  ;;  %v4502_v13 = vrot.slane %v4498_v15, 7 }
 0xff7   :  { %v4508_v39 = vmax.f32 %v4506_v60, 0.0  ;;  %v5117_v28 = vrot.slane %v4506_v60, 1 }
 0xff8   :  { %v4503_v27 = vsel %vm964_vm4, %v4501_v36, %v4502_v13 }
 0xff9   :  { %v10850_v9 = vsel %vm1010_vm5, %v4503_v27, 0.0  ;;  %v4512_v35 = vrot.slane %v4508_v39, 1  ;;  %v4517_v30 = vrot.slane %v4508_v39, 2 }
 0xffa   :  { %v4509_v26 = vmax.f32 %v10850_v9, 0.0  ;;  %v5118_v7 = vrot.slane %v10850_v9, 1 }
 0xffc   :  { %v4513_v58 = vrot.slane %v4509_v26, 1  ;;  %v4518_v19 = vrot.slane %v4509_v26, 2  ;;  %v4522_v22 = vpack.c.bf16 %v4509_v26, %v4508_v39  ;;  %v10857_v23 = vsel %vm535_vm0, %v5117_v28, %v5118_v7 }
 0xffe   :  { %v4514_v25 = vsel %vm535_vm0, %v4512_v35, %v4513_v58  ;;  %v4519_v61 = vsel %vm560_vm1, %v4517_v30, %v4518_v19 }
 0xfff   :  { %v4523_v33 = vpack.c.bf16 %v4513_v58, %v4514_v25  ;;  %v4524_v32 = vpack.c.bf16 %v4518_v19, %v4519_v61 }
0x1001   :  { %4756 = vmatprep.mubr.bf16.mxu0 %v4523_v33  ;;  %8132 = vmatmul.mubr.bf16.vlgmr.msra.gmra.mrb[56].mxu1 %v4524_v32 }
0x1002   :  { %4757 = vmatmul.mubr.bf16.vlgmr.msra.gmra.mrb[56].mxu0 %v4522_v22  ;;  %8136 = vmatpush3.bf16.msra.mxu1 %v8830_v40 }
0x1003   :  { %7905 = vmatpush3.bf16.msra.mxu0 %v8831_v45  ;;  %8137 = vmatprep.subr.bf16.mxu1 %v9633_v20 }
0x1004   :  { %7906 = vmatprep.subr.bf16.mxu0 %v8832_v34  ;;  %8151 = vmatprep.mubr.msk.bf16.mxu1 %vm9634_vm14, %v9633_v20  ;;  %v8854_v34 = vld [vmem:[#allocation30 + $0x80] sm:$0xff]  }
0x1006   :  { %8138 = vmatpush3.bf16.msra.mxu1 %v8833_v37 }
0x1007   :  { %7907 = vmatpush3.bf16.msra.mxu0 %v8834_v62  ;;  %8139 = vmatprep.subr.bf16.mxu1 %v9633_v20 }
0x1008   :  { %7908 = vmatprep.subr.bf16.mxu0 %v8835_v63  ;;  %v8855_v63 = vld [vmem:[#allocation30] sm:$0xff]  }
0x100a   :  { %8140 = vmatpush3.bf16.msra.mxu1 %v8836_v3  ;;  %v8856_v3 = vld [vmem:[#allocation30 + $0x48] sm:$0xff]  }
0x100b   :  { %8141 = vmatprep.subr.bf16.mxu1 %v9633_v20  ;;  %7909 = vmatpush3.bf16.msra.mxu0 %v8837_v38  ;;  %v8857_v38 = vld [vmem:[#allocation30 + $0x88] sm:$0xff]  }
0x100c   :  { %7910 = vmatprep.subr.bf16.mxu0 %v8838_v47  ;;  %v8858_v47 = vld [vmem:[#allocation30 + $0x8] sm:$0xff]  }
0x100e   :  { %8142 = vmatpush3.bf16.msra.mxu1 %v8839_v41  ;;  %v8859_v41 = vld [vmem:[#allocation30 + $0x50] sm:$0xff]  }
0x100f   :  { %7911 = vmatpush3.bf16.msra.mxu0 %v8840_v4  ;;  %8143 = vmatprep.subr.bf16.mxu1 %v9633_v20  ;;  %v8860_v4 = vld [vmem:[#allocation30 + $0x90] sm:$0xff]  }
0x1010   :  { %7912 = vmatprep.subr.bf16.mxu0 %v8841_v42  ;;  %v8861_v42 = vld [vmem:[#allocation30 + $0x10] sm:$0xff]  }
0x1012   :  { %8144 = vmatpush3.bf16.msra.mxu1 %v8842_v48  ;;  %v8862_v48 = vld [vmem:[#allocation30 + $0x58] sm:$0xff]  }
0x1013   :  { %7913 = vmatpush3.bf16.msra.mxu0 %v8843_v5  ;;  %8145 = vmatprep.subr.bf16.mxu1 %v9633_v20  ;;  %v8863_v5 = vld [vmem:[#allocation30 + $0x98] sm:$0xff]  }
0x1014   :  { %7914 = vmatprep.subr.bf16.mxu0 %v8844_v56  ;;  %v8864_v56 = vld [vmem:[#allocation30 + $0x18] sm:$0xff]  }
0x1016   :  { %8146 = vmatpush3.bf16.msra.mxu1 %v8845_v17  ;;  %v8865_v17 = vld [vmem:[#allocation30 + $0x60] sm:$0xff]  }
0x1017   :  { %7915 = vmatpush3.bf16.msra.mxu0 %v8846_v49  ;;  %8147 = vmatprep.subr.bf16.mxu1 %v9633_v20  ;;  %v8866_v49 = vld [vmem:[#allocation30 + $0xa0] sm:$0xff]  }
0x1018   :  { %7916 = vmatprep.subr.bf16.mxu0 %v8847_v53  ;;  %v8867_v53 = vld [vmem:[#allocation30 + $0x20] sm:$0xff]  }
0x101a   :  { %8148 = vmatpush3.bf16.msra.mxu1 %v8848_v29  ;;  %v8868_v29 = vld [vmem:[#allocation30 + $0x68] sm:$0xff]  }
0x101b   :  { %7917 = vmatpush3.bf16.msra.mxu0 %v8849_v54  ;;  %8149 = vmatprep.subr.bf16.mxu1 %v9633_v20  ;;  %v8869_v54 = vld [vmem:[#allocation30 + $0xa8] sm:$0xff]  }
0x101c   :  { %7918 = vmatprep.subr.bf16.mxu0 %v8850_v57  ;;  %v8870_v57 = vld [vmem:[#allocation30 + $0x28] sm:$0xff]  }
0x101e   :  { %8150 = vmatpush3.bf16.msra.mxu1 %v8851_v59  ;;  %v8871_v59 = vld [vmem:[#allocation30 + $0x70] sm:$0xff]  }
0x101f   :  { %7919 = vmatpush3.bf16.msra.mxu0 %v8852_v0  ;;  %8155 = vmatprep.subr.bf16.mxu1 %v9633_v20  ;;  %v8872_v0 = vld [vmem:[#allocation30 + $0xb0] sm:$0xff]  }
0x1020   :  { %7935 = vmatprep.subr.bf16.mxu0 %v8853_v16  ;;  %v8873_v16 = vld [vmem:[#allocation30 + $0x30] sm:$0xff]  }
0x10d4   :  { %v4799_v8 = vpop.f32.mrb[56].mxu1 }
0x10d5   :  { %v7889_v21 = vpop.f32.mrb[56].mxu0  ;;  %v8133_v12 = vpop.f32.mrb[57].mxu1 }
0x10d6   :  { %v7890_v52 = vpop.f32.mrb[57].mxu0  ;;  %v4802_v10 = vpop.f32.mrb[58].mxu1  ;;  %v8876_v12 = vld [vmem:[#allocation30 + $0x38] sm:$0xff]  }
0x10d7   :  { %v7891_v43 = vadd.f32 %v7890_v52, %v7889_v21  ;;  %v7892_v44 = vpop.f32.mrb[58].mxu0  ;;  %v8134_v55 = vpop.f32.mrb[59].mxu1  ;;  %v8875_v21 = vld [vmem:[#allocation30 + $0xb8] sm:$0xff]  }
0x10d8   :  { %v7893_v18 = vpop.f32.mrb[59].mxu0 }
0x10d9   :  { %v4759_v1 = vadd.f32 %v7891_v43, %v7430_v11  ;;  %v7894_v50 = vadd.f32 %v7893_v18, %v7892_v44  ;;  %v7455_v43 = vld [vmem:[#allocation25] ss:$0 sm:$0xff] }
0x10db   :  { %v4800_v36 = vadd.f32 %v4799_v8, %v4759_v1  ;;  %v4762_v15 = vadd.f32 %v7894_v50, %v7430_v11  ;;  %v8874_v8 = vld [vmem:[#allocation30 + $0x78] sm:$0xff]  }
0x10dd   :  { %v4806_v60 = vmax.f32 %v4800_v36, 0.0  ;;  %v4803_v13 = vadd.f32 %v4802_v10, %v4762_v15 }
0x10df   :  { %v4808_v39 = vmul.f32 %v4806_v60, %v10812_v51  ;;  %v4807_v27 = vmax.f32 %v4803_v13, 0.0 }
0x10e1   :  { %v4812_v26 = vrot.slane %v4808_v39, 7  ;;  %v4809_v28 = vmul.f32 %v4807_v27, %v10815_v14 }
0x10e3   :  { %v4813_v35 = vrot.slane %v4809_v28, 7  ;;  %v4817_v30 = vsel %vm964_vm4, 0.0, %v4812_v26 }
0x10e4   :  { %v4821_v25 = vrot.slane %v4817_v30, 1  ;;  %v4826_v40 = vrot.slane %v4817_v30, 2 }
0x10e5   :  { %v4814_v58 = vsel %vm964_vm4, %v4812_v26, %v4813_v35 }
0x10e6   :  { %v4818_v19 = vsel %vm1010_vm5, %v4814_v58, 0.0  ;;  %v7482_v22 = vpack.c.bf16 %v4814_v58, %v4812_v26 }
0x10e7   :  { %v4822_v61 = vrot.slane %v4818_v19, 1  ;;  %v4827_v33 = vrot.slane %v4818_v19, 2 }
0x10e9   :  { %v4823_v32 = vsel %vm535_vm0, %v4821_v25, %v4822_v61  ;;  %v4828_v45 = vsel %vm560_vm1, %v4826_v40, %v4827_v33 }
0x10ea   :  { %v4832_v37 = vpack.c.bf16 %v4822_v61, %v4823_v32  ;;  %v4833_v62 = vpack.c.bf16 %v4827_v33, %v4828_v45 }
0x10ec   :  { %5065 = vmatprep.mubr.bf16.mxu0 %v4832_v37  ;;  %8152 = vmatmul.mubr.bf16.vlgmr.msra.gmra.mrb[60].mxu1 %v4833_v62 }
0x10ed   :  { %7483 = vmatmul.mubr.msk.bf16.vlgmr.msra.gmra.mrb[60].mxu0 %vm10826_vm3, %v7482_v22  ;;  %8156 = vmatpush3.bf16.msra.mxu1 %v8854_v34 }
0x10ee   :  { %7936 = vmatpush3.bf16.msra.mxu0 %v8855_v63  ;;  %8157 = vmatprep.subr.bf16.mxu1 %v9633_v20  ;;  %v7484_v63 = vld [vmem:[#allocation31] ss:$0 sm:$0xff] }
0x10ef   :  { %7937 = vmatprep.subr.bf16.mxu0 %v8856_v3  ;;  %8171 = vmatprep.mubr.msk.bf16.mxu1 %vm9634_vm14, %v9633_v20 }
0x10f1   :  { %8158 = vmatpush3.bf16.msra.mxu1 %v8857_v38 }
0x10f2   :  { %7938 = vmatpush3.bf16.msra.mxu0 %v8858_v47  ;;  %8159 = vmatprep.subr.bf16.mxu1 %v9633_v20 }
0x10f3   :  { %7939 = vmatprep.subr.bf16.mxu0 %v8859_v41 }
0x10f5   :  { %8160 = vmatpush3.bf16.msra.mxu1 %v8860_v4 }
0x10f6   :  { %8161 = vmatprep.subr.bf16.mxu1 %v9633_v20  ;;  %7940 = vmatpush3.bf16.msra.mxu0 %v8861_v42 }
0x10f7   :  { %7941 = vmatprep.subr.bf16.mxu0 %v8862_v48 }
0x10f9   :  { %8162 = vmatpush3.bf16.msra.mxu1 %v8863_v5  ;;  %v5441_v5 = vpop.permute.xlu0 %5440 }
0x10fa   :  { %7942 = vmatpush3.bf16.msra.mxu0 %v8864_v56  ;;  %8163 = vmatprep.subr.bf16.mxu1 %v9633_v20  ;;  %v5436_v56 = vpop.permute.xlu1 %5435 }
0x10fb   :  { %7943 = vmatprep.subr.bf16.mxu0 %v8865_v17 }
0x10fd   :  { %8164 = vmatpush3.bf16.msra.mxu1 %v8866_v49 }
0x10fe   :  { %7944 = vmatpush3.bf16.msra.mxu0 %v8867_v53  ;;  %8165 = vmatprep.subr.bf16.mxu1 %v9633_v20 }
0x10ff   :  { %7945 = vmatprep.subr.bf16.mxu0 %v8868_v29 }
0x1101   :  { %8166 = vmatpush3.bf16.msra.mxu1 %v8869_v54 }
0x1102   :  { %7946 = vmatpush3.bf16.msra.mxu0 %v8870_v57  ;;  %8167 = vmatprep.subr.bf16.mxu1 %v9633_v20  ;;  %v5457_v57 = vpop.permute.xlu0 %5456 }
0x1103   :  { %7947 = vmatprep.subr.bf16.mxu0 %v8871_v59  ;;  %v5452_v59 = vpop.permute.xlu1 %5451 }
0x1105   :  { %8168 = vmatpush3.bf16.msra.mxu1 %v8872_v0 }
0x1106   :  { %7948 = vmatpush3.bf16.msra.mxu0 %v8873_v16  ;;  %8169 = vmatprep.subr.bf16.mxu1 %v9633_v20 }
0x1107   :  { %7949 = vmatprep.subr.bf16.mxu0 %v8874_v8 }
0x1109   :  { %8170 = vmatpush3.bf16.msra.mxu1 %v8875_v21  ;;  %v8877_v21 = vld [vmem:[%s11216_s8] sm:$0xff]  }
0x110a   :  { %7950 = vmatpush3.bf16.msra.mxu0 %v8876_v12  ;;  %8195 = vmatprep.subr.bf16.mxu1 %v9633_v20  ;;  %v8878_v12 = vld [vmem:[%s11216_s8 + $0x8] sm:$0xff]  }
0x110b   :  { %8175 = vmatprep.subr.bf16.mxu0 %v9633_v20 }
0x11bf   :  { %v5108_v11 = vpop.f32.mrb[60].mxu1 }
0x11c0   :  { %v7920_v52 = vpop.f32.mrb[60].mxu0  ;;  %v8153_v10 = vpop.f32.mrb[61].mxu1 }
0x11c1   :  { %v7921_v44 = vpop.f32.mrb[61].mxu0  ;;  %v5111_v55 = vpop.f32.mrb[62].mxu1  ;;  %v8881_v10 = vld [vmem:[%s11216_s8 + $0x20] sm:$0xff]  }
0x11c2   :  { %v7922_v18 = vadd.f32 %v7921_v44, %v7920_v52  ;;  %v7923_v1 = vpop.f32.mrb[62].mxu0  ;;  %v8154_v50 = vpop.f32.mrb[63].mxu1  ;;  %v8880_v52 = vld [vmem:[%s11216_s8 + $0x18] sm:$0xff]  }
0x11c3   :  { %v7924_v36 = vpop.f32.mrb[63].mxu0 }
0x11c4   :  { %v5068_v15 = vadd.f32 %v7922_v18, %v7455_v43  ;;  %v7925_v60 = vadd.f32 %v7924_v36, %v7923_v1 }
0x11c6   :  { %v5109_v13 = vadd.f32 %v5108_v11, %v5068_v15  ;;  %v5071_v39 = vadd.f32 %v7925_v60, %v7455_v43  ;;  %v8879_v11 = vld [vmem:[%s11216_s8 + $0x10] sm:$0xff]  }
0x11c8   :  { %v5122_v27 = vadd.f32 %v10857_v23, %v5109_v13  ;;  %v5112_v26 = vadd.f32 %v5111_v55, %v5071_v39 }
0x11ca   :  { %v5124_v28 = vmul.f32 %v5122_v27, %v10812_v51  ;;  %v5123_v35 = vadd.f32 %v5118_v7, %v5112_v26  ;;  %v8882_v27 = vld [vmem:[%s11216_s8 + $0x28] sm:$0xff]  }
0x11cc   :  { %v5128_v30 = vrot.slane %v5124_v28, 7  ;;  %v5125_v58 = vmul.f32 %v5123_v35, %v10815_v14 }
0x11ce   :  { %v5129_v19 = vrot.slane %v5125_v58, 7  ;;  %v5133_v22 = vsel %vm964_vm4, 0.0, %v5128_v30 }
0x11cf   :  { %v5137_v33 = vrot.slane %v5133_v22, 1  ;;  %v5142_v23 = vrot.slane %v5133_v22, 2 }
0x11d0   :  { %v5130_v25 = vsel %vm964_vm4, %v5128_v30, %v5129_v19 }
0x11d1   :  { %v5134_v61 = vsel %vm1010_vm5, %v5130_v25, 0.0  ;;  %v7511_v40 = vpack.c.bf16 %v5130_v25, %v5128_v30 }
0x11d2   :  { %v5138_v32 = vrot.slane %v5134_v61, 1  ;;  %v5143_v45 = vrot.slane %v5134_v61, 2 }
0x11d4   :  { %v5139_v51 = vsel %vm535_vm0, %v5137_v33, %v5138_v32  ;;  %v5144_v9 = vsel %vm560_vm1, %v5142_v23, %v5143_v45 }
0x11d5   :  { %v5148_v7 = vpack.c.bf16 %v5138_v32, %v5139_v51  ;;  %v5149_v34 = vpack.c.bf16 %v5143_v45, %v5144_v9  ;;  %v8883_v51 = vld [vmem:[%s11216_s8 + $0x30] sm:$0xff]  }
0x11d7   :  { %5381 = vmatprep.mubr.bf16.mxu0 %v5148_v7  ;;  %8172 = vmatmul.mubr.bf16.vlgmr.msra.gmra.mrb[64].mxu1 %v5149_v34 }
0x11d8   :  { %7512 = vmatmul.mubr.msk.bf16.vlgmr.msra.gmra.mrb[64].mxu0 %vm10826_vm3, %v7511_v40  ;;  %8197 = vmatprep.mubr.msk.bf16.mxu1 %vm9634_vm14, %v9633_v20 }
0x11d9   :  { %8191 = vmatprep.mubr.msk.bf16.mxu0 %vm9634_vm14, %v9633_v20  ;;  %8176 = vmatpush3.bf16.msra.mxu0 %v8877_v21 }
0x11da   :  { %8177 = vmatprep.subr.bf16.mxu0 %v9633_v20 }
0x11dd   :  { %8178 = vmatpush3.bf16.msra.mxu0 %v8878_v12 }
0x11de   :  { %8179 = vmatprep.subr.bf16.mxu0 %v9633_v20 }
0x11e1   :  { %8180 = vmatpush3.bf16.msra.mxu0 %v8879_v11 }
0x11e2   :  { %8181 = vmatprep.subr.bf16.mxu0 %v9633_v20 }
0x11e5   :  { %8182 = vmatpush3.bf16.msra.mxu0 %v8880_v52 }
0x11e6   :  { %8183 = vmatprep.subr.bf16.mxu0 %v9633_v20 }
0x11e9   :  { %8184 = vmatpush3.bf16.msra.mxu0 %v8881_v10 }
0x11ea   :  { %8185 = vmatprep.subr.bf16.mxu0 %v9633_v20 }
0x11ed   :  { %8186 = vmatpush3.bf16.msra.mxu0 %v8882_v27  ;;  %v8885_v27 = vld [vmem:[%s11218_s29] sm:$0xff]  }
0x11ee   :  { %8187 = vmatprep.subr.bf16.mxu0 %v9633_v20 }
0x11f1   :  { %8188 = vmatpush3.bf16.msra.mxu0 %v8883_v51 }
0x11f2   :  { %8189 = vmatprep.subr.bf16.mxu0 %v9633_v20  ;;  %v5711_v20 = vld [vmem:[%s11217_s22] sm:$0x3f] }
0x12aa   :  { %v5424_v14 = vpop.f32.mrb[64].mxu1 }
0x12ab   :  { %v7951_v37 = vpop.f32.mrb[64].mxu0  ;;  %v8173_v62 = vpop.f32.mrb[65].mxu1 }
0x12ac   :  { %v7952_v3 = vpop.f32.mrb[65].mxu0  ;;  %v5427_v38 = vpop.f32.mrb[66].mxu1 }
0x12ad   :  { %v7953_v47 = vadd.f32 %v7952_v3, %v7951_v37  ;;  %v7954_v41 = vpop.f32.mrb[66].mxu0  ;;  %v8174_v4 = vpop.f32.mrb[67].mxu1 }
0x12ae   :  { %v7955_v42 = vpop.f32.mrb[67].mxu0 }
0x12af   :  { %v5384_v48 = vadd.f32 %v7953_v47, %v7484_v63  ;;  %v7956_v46 = vadd.f32 %v7955_v42, %v7954_v41 }
0x12b1   :  { %v5425_v17 = vadd.f32 %v5424_v14, %v5384_v48  ;;  %v5387_v49 = vadd.f32 %v7956_v46, %v7484_v63 }
0x12b3   :  { %v5443_v53 = vmul.f32 %v5436_v56, %v5425_v17  ;;  %v5428_v29 = vadd.f32 %v5427_v38, %v5387_v49  ;;  %v8884_v38 = vld [vmem:[%s11216_s8 + $0x38] sm:$0xff]  }
0x12b4   :  { %8190 = vmatpush3.bf16.msra.mxu0 %v8884_v38  ;;  %v8898_v38 = vld [vmem:[%s11219_s23 + $0x8] sm:$0xff]  }
0x12b5   :  { %v5444_v54 = vmul.f32 %v5441_v5, %v5428_v29  ;;  %v5459_v0 = vadd.f32 %v5452_v59, %v5443_v53  ;;  %5829 = vmatprep.subr.bf16.mxu0 %v9627_v31 }
0x12b7   :  { %v5460_v16 = vadd.f32 %v5457_v57, %v5444_v54 }
0x12b9   :  { %v8493_v8 = vpack.i.bf16 %v5460_v16, %v5459_v0 }
0x12bb   :  { %8494 = vrot.lane.b32.xlu1 %v8493_v8, %s9632_s18 }
0x132d   :  { %v8495_v43 = vpop.permute.xlu1 %8494 }
0x132e   :  { %v8497_v44 = vunpack.i.h.bf16 %v8495_v43  ;;  %v8496_v55 = vunpack.i.l.bf16 %v8495_v43 }
0x1330   :  { %v5470_v18 = vsel %vm3427_vm13, -1e+30, %v8497_v44  ;;  %v5472_v1 = vsel %vm3427_vm13, %v8497_v44, -1e+30  ;;  %v5469_v50 = vsel %vm3427_vm13, -1e+30, %v8496_v55 }
0x1331   :  { %v5479_v36 = vrot.slane %v5470_v18, 7  ;;  %v5481_v15 = vrot.slane %v5472_v1, 7  ;;  %v5471_v60 = vsel %vm3427_vm13, %v8496_v55, -1e+30  ;;  %v5477_v13 = vrot.slane %v5469_v50, 7 }
0x1332   :  { %v5478_v39 = vrot.slane %v5471_v60, 7 }
0x1333   :  { %v5480_v26 = vsel %vm964_vm4, %v5477_v13, %v5479_v36  ;;  %v5487_v28 = vsel %vm964_vm4, -1e+30, %v5477_v13 }
0x1334   :  { %v5482_v35 = vsel %vm964_vm4, %v5478_v39, %v5481_v15  ;;  %v5488_v30 = vsel %vm964_vm4, -1e+30, %v5478_v39  ;;  %v5489_v58 = vsel %vm1010_vm5, %v5480_v26, -1e+30  ;;  %v5495_v19 = vrot.slane %v5487_v28, 1  ;;  %v8886_v26 = vld [vmem:[%s11218_s29 + $0x8] sm:$0xff]  }
0x1335   :  { %v5490_v22 = vsel %vm1010_vm5, %v5482_v35, -1e+30  ;;  %v5496_v25 = vrot.slane %v5489_v58, 1  ;;  %v5498_v61 = vrot.slane %v5488_v30, 1  ;;  %v5509_v40 = vrot.slane %v5487_v28, 2  ;;  %v8888_v35 = vld [vmem:[%s11218_s29 + $0x18] sm:$0xff]  }
0x1336   :  { %v5512_v33 = vrot.slane %v5488_v30, 2  ;;  %v5499_v32 = vrot.slane %v5490_v22, 1  ;;  %v5510_v23 = vrot.slane %v5489_v58, 2  ;;  %v5513_v45 = vrot.slane %v5490_v22, 2  ;;  %v5661_v39 = vld [vmem:[#allocation39] sm:$0xf] }
0x1337   :  { %v5497_v9 = vsel %vm535_vm0, %v5495_v19, %v5496_v25  ;;  %v5507_v7 = vmax.f32 %v5489_v58, %v5496_v25  ;;  %vm5663_vm5 = vcmask 80896   ;;  %v8890_v58 = vld [vmem:[%s11218_s29 + $0x28] sm:$0xff]   ;;  %v8891_v19 = vld [vmem:[%s11218_s29 + $0x30] sm:$0xff]   ;;  %v8893_v25 = vld [vmem:[%s11218_s29 + $0x40] sm:$0xff]  }
0x1338   :  { %v5505_v34 = vmax.f32 %v5487_v28, %v5497_v9  ;;  %v5508_v14 = vmax.f32 %v5490_v22, %v5499_v32  ;;  %v5500_v37 = vsel %vm535_vm0, %v5498_v61, %v5499_v32  ;;  %v5511_v3 = vsel %vm560_vm1, %v5509_v40, %v5510_v23  ;;  %v8887_v28 = vld [vmem:[%s11218_s29 + $0x10] sm:$0xff]   ;;  %v8892_v22 = vld [vmem:[%s11218_s29 + $0x38] sm:$0xff]   ;;  %v8894_v61 = vld [vmem:[%s11218_s29 + $0x48] sm:$0xff]  }
0x1339   :  { %v5521_v62 = vmax.f32 %v5507_v7, %v5510_v23  ;;  %v5506_v63 = vmax.f32 %v5488_v30, %v5500_v37  ;;  %v5514_v41 = vsel %vm560_vm1, %v5512_v33, %v5513_v45  ;;  %vm5667_vm1 = vcmask 1044480   ;;  %v8889_v30 = vld [vmem:[%s11218_s29 + $0x20] sm:$0xff]   ;;  %v8895_v40 = vld [vmem:[%s11218_s29 + $0x50] sm:$0xff]   ;;  %v8896_v33 = vld [vmem:[%s11218_s29 + $0x58] sm:$0xff]  }
0x133a   :  { %v5522_v47 = vmax.f32 %v5508_v14, %v5513_v45  ;;  %v5519_v4 = vmax.f32 %v5505_v34, %v5511_v3  ;;  %v8897_v3 = vld [vmem:[%s11219_s23] sm:$0xff]  }
0x133b   :  { %v5520_v42 = vmax.f32 %v5506_v63, %v5514_v41  ;;  %v8900_v41 = vld [vmem:[%s11219_s23 + $0x18] sm:$0xff]  }
0x133c   :  { %v8498_v48 = vpack.i.bf16 %v5522_v47, %v5521_v62  ;;  %v8899_v47 = vld [vmem:[%s11219_s23 + $0x10] sm:$0xff]  }
0x133d   :  { %v8503_v46 = vpack.i.bf16 %v5520_v42, %v5519_v4  ;;  %v8902_v42 = vld [vmem:[%s11219_s23 + $0x28] sm:$0xff]  }
0x133e   :  { %8499 = vrot.lane.b32.xlu1 %v8498_v48, %s9629_s2 }
0x133f   :  { %8504 = vrot.lane.b32.xlu0 %v8503_v46, %s9629_s2 }
0x1342   :  { %8514 = vrot.lane.b32.xlu1 %v8498_v48, %s9602_s10  ;;  %v8903_v48 = vld [vmem:[%s11219_s23 + $0x30] sm:$0xff]  }
0x1343   :  { %8509 = vrot.lane.b32.xlu0 %v8503_v46, %s9602_s10  ;;  %v8904_v46 = vld [vmem:[%s11219_s23 + $0x38] sm:$0xff]  }
0x1346   :  { %5872 = vperm.xlu1 %8341, %v5711_v20   ;;  %v8905_v20 = vld [vmem:[%s11219_s23 + $0x40] sm:$0xff]  }
0x13b0   :  { %v8500_v5 = vpop.permute.xlu1 %8499 }
0x13b1   :  { %v8502_v56 = vunpack.i.h.bf16 %v8500_v5  ;;  %v8501_v17 = vunpack.i.l.bf16 %v8500_v5  ;;  %v8505_v49 = vpop.permute.xlu0 %8504  ;;  %v8906_v5 = vld [vmem:[%s11219_s23 + $0x48] sm:$0xff]  }
0x13b2   :  { %v8507_v53 = vunpack.i.h.bf16 %v8505_v49  ;;  %v8506_v29 = vunpack.i.l.bf16 %v8505_v49 }
0x13b3   :  { %v5536_v54 = vsel %vm1240_vm7, %v8501_v17, %v8502_v56  ;;  %v8907_v56 = vld [vmem:[%s11219_s23 + $0x50] sm:$0xff]   ;;  %v7522_v17 = vld [vmem:[#allocation33] ss:$0 sm:$0xff] }
0x13b4   :  { %v5535_v57 = vsel %vm1240_vm7, %v8506_v29, %v8507_v53  ;;  %v8515_v59 = vpop.permute.xlu1 %8514  ;;  %v5540_v21 = vmax.f32 %v5521_v62, %v5536_v54  ;;  %v8908_v53 = vld [vmem:[%s11219_s23 + $0x58] sm:$0xff]  }
0x13b5   :  { %v8517_v0 = vunpack.i.h.bf16 %v8515_v59  ;;  %v8516_v16 = vunpack.i.l.bf16 %v8515_v59  ;;  %v8510_v8 = vpop.permute.xlu0 %8509  ;;  %v5539_v52 = vmax.f32 %v5519_v4, %v5535_v57  ;;  %v8901_v4 = vld [vmem:[%s11219_s23 + $0x20] sm:$0xff]  }
0x13b6   :  { %v8512_v12 = vunpack.i.h.bf16 %v8510_v8  ;;  %v8511_v11 = vunpack.i.l.bf16 %v8510_v8 }
0x13b7   :  { %v5550_v10 = vsel %vm575_vm2, %v8516_v16, %v8517_v0 }
0x13b8   :  { %v5554_v43 = vmax.f32 %v5540_v21, %v5550_v10  ;;  %v5549_v44 = vsel %vm575_vm2, %v8511_v11, %v8512_v12 }
0x13b9   :  { %v5553_v55 = vmax.f32 %v5539_v52, %v5549_v44 }
0x13bb   :  { %v5555_v18 = vpack.c.bf16 %v5554_v43, %v5553_v55 }
0x13bd   :  { %8192 = vmatmul.mubr.bf16.vlgmr.msra.gmra.mrb[68].mxu0 %v5555_v18 }
0x13be   :  { %5830 = vmatpush1.bf16.msra.mxu0 %v8885_v27  ;;  %v8916_v27 = vld [vmem:[%s11220_s30 + $0x38] sm:$0xff]  }
0x13bf   :  { %5831 = vmatprep.subr.bf16.mxu0 %v9627_v31 }
0x13c2   :  { %5832 = vmatpush1.bf16.msra.mxu0 %v8886_v26  ;;  %v8917_v26 = vld [vmem:[%s11220_s30 + $0x40] sm:$0xff]  }
0x13c3   :  { %5833 = vmatprep.subr.bf16.mxu0 %v9627_v31 }
0x13c5   :  { %v11002_v16 = vpop.permute.xlu1 %5872 }
0x13c6   :  { %5834 = vmatpush1.bf16.msra.mxu0 %v8887_v28  ;;  %v8918_v28 = vld [vmem:[%s11220_s30 + $0x48] sm:$0xff]  }
0x13c7   :  { %5835 = vmatprep.subr.bf16.mxu0 %v9627_v31 }
0x13ca   :  { %5836 = vmatpush1.bf16.msra.mxu0 %v8888_v35  ;;  %v8919_v35 = vld [vmem:[%s11220_s30 + $0x50] sm:$0xff]  }
0x13cb   :  { %5837 = vmatprep.subr.bf16.mxu0 %v9627_v31 }
0x13ce   :  { %5838 = vmatpush1.bf16.msra.mxu0 %v8889_v30  ;;  %v7536_v30 = vld [vmem:[#allocation34] ss:$0 sm:$0xff] }
0x13cf   :  { %5839 = vmatprep.subr.bf16.mxu0 %v9627_v31 }
0x13d2   :  { %5840 = vmatpush1.bf16.msra.mxu0 %v8890_v58 }
0x13d3   :  { %5841 = vmatprep.subr.bf16.mxu0 %v9627_v31 }
0x13d6   :  { %5842 = vmatpush1.bf16.msra.mxu0 %v8891_v19 }
0x13d7   :  { %5843 = vmatprep.subr.bf16.mxu0 %v9627_v31 }
0x13da   :  { %5844 = vmatpush1.bf16.msra.mxu0 %v8892_v22 }
0x13db   :  { %5845 = vmatprep.subr.bf16.mxu0 %v9627_v31 }
0x13de   :  { %5846 = vmatpush1.bf16.msra.mxu0 %v8893_v25 }
0x13df   :  { %5847 = vmatprep.subr.bf16.mxu0 %v9627_v31 }
0x13e2   :  { %5848 = vmatpush1.bf16.msra.mxu0 %v8894_v61 }
0x13e3   :  { %5849 = vmatprep.subr.bf16.mxu0 %v9627_v31 }
0x13e6   :  { %5850 = vmatpush1.bf16.msra.mxu0 %v8895_v40  ;;  %v8920_v40 = vld [vmem:[%s11220_s30 + $0x58] sm:$0xff]  }
0x13e7   :  { %5851 = vmatprep.subr.bf16.mxu0 %v9627_v31 }
0x13ea   :  { %5852 = vmatpush1.bf16.msra.mxu0 %v8896_v33 }
0x13eb   :  { %6164 = vmatprep.subr.bf16.mxu0 %v9627_v31 }
0x1490   :  { %v5654_v1 = vpop.f32.mrb[68].mxu0 }
0x1491   :  { %v8193_v50 = vpop.f32.mrb[69].mxu0 }
0x1492   :  { %v5657_v36 = vpop.f32.mrb[70].mxu0  ;;  %v8910_v50 = vld [vmem:[%s11220_s30 + $0x8] sm:$0xff]  }
0x1493   :  { %v5662_v15 = vpack.c.bf16 %v5657_v36, %v5654_v1  ;;  %v8194_v60 = vpop.f32.mrb[71].mxu0  ;;  %v8909_v1 = vld [vmem:[%s11220_s30] sm:$0xff]   ;;  %v8911_v36 = vld [vmem:[%s11220_s30 + $0x10] sm:$0xff]  }
0x1494   :  { %v8913_v60 = vld [vmem:[%s11220_s30 + $0x20] sm:$0xff]  }
0x1495   :  { %v5669_v13 = vsel %vm5667_vm1, %v5662_v15, 0  ;;  %v8912_v15 = vld [vmem:[%s11220_s30 + $0x18] sm:$0xff]  }
0x1496   :  { %8196 = vmatpush3.bf16.msra.mxu1 %v5669_v13  ;;  %v8914_v13 = vld [vmem:[%s11220_s30 + $0x28] sm:$0xff]  }
0x1497   :  { %5997 = vmatprep.subr.bf16.mxu1 %v9627_v31 }
0x1499   :  { %8198 = vmatmul.mubr.msk.bf16.vlgmr.msra.gmra.mrb[68].mxu1 %vm5663_vm5, %v5661_v39  ;;  %v8915_v39 = vld [vmem:[%s11220_s30 + $0x30] sm:$0xff]  }
0x149a   :  { %5998 = vmatpush1.bf16.msra.mxu1 %v8897_v3 }
0x149b   :  { %5999 = vmatprep.subr.bf16.mxu1 %v9627_v31 }
0x149e   :  { %6000 = vmatpush1.bf16.msra.mxu1 %v8898_v38  ;;  %v8921_v38 = vld [vmem:[%s11221_s3] sm:$0xff]  }
0x149f   :  { %6001 = vmatprep.subr.bf16.mxu1 %v9627_v31 }
0x14a2   :  { %6002 = vmatpush1.bf16.msra.mxu1 %v8899_v47  ;;  %v8922_v47 = vld [vmem:[%s11221_s3 + $0x8] sm:$0xff]  }
0x14a3   :  { %6003 = vmatprep.subr.bf16.mxu1 %v9627_v31 }
0x14a6   :  { %6004 = vmatpush1.bf16.msra.mxu1 %v8900_v41  ;;  %v8923_v41 = vld [vmem:[%s11221_s3 + $0x10] sm:$0xff]  }
0x14a7   :  { %6005 = vmatprep.subr.bf16.mxu1 %v9627_v31 }
0x14aa   :  { %6006 = vmatpush1.bf16.msra.mxu1 %v8901_v4  ;;  %v8924_v4 = vld [vmem:[%s11221_s3 + $0x18] sm:$0xff]  }
0x14ab   :  { %6007 = vmatprep.subr.bf16.mxu1 %v9627_v31 }
0x14ae   :  { %6008 = vmatpush1.bf16.msra.mxu1 %v8902_v42  ;;  %v8925_v42 = vld [vmem:[%s11221_s3 + $0x20] sm:$0xff]  }
0x14af   :  { %6009 = vmatprep.subr.bf16.mxu1 %v9627_v31 }
0x14b2   :  { %6010 = vmatpush1.bf16.msra.mxu1 %v8903_v48  ;;  %v8926_v48 = vld [vmem:[%s11221_s3 + $0x28] sm:$0xff]  }
0x14b3   :  { %6011 = vmatprep.subr.bf16.mxu1 %v9627_v31 }
0x14b6   :  { %6012 = vmatpush1.bf16.msra.mxu1 %v8904_v46  ;;  %v8927_v46 = vld [vmem:[%s11221_s3 + $0x30] sm:$0xff]  }
0x14b7   :  { %6013 = vmatprep.subr.bf16.mxu1 %v9627_v31 }
0x14ba   :  { %6014 = vmatpush1.bf16.msra.mxu1 %v8905_v20  ;;  %v8928_v20 = vld [vmem:[%s11221_s3 + $0x38] sm:$0xff]  }
0x14bb   :  { %6015 = vmatprep.subr.bf16.mxu1 %v9627_v31 }
0x14be   :  { %6016 = vmatpush1.bf16.msra.mxu1 %v8906_v5  ;;  %v8929_v5 = vld [vmem:[%s11221_s3 + $0x40] sm:$0xff]  }
0x14bf   :  { %6017 = vmatprep.subr.bf16.mxu1 %v9627_v31 }
0x14c2   :  { %6018 = vmatpush1.bf16.msra.mxu1 %v8907_v56  ;;  %v8930_v56 = vld [vmem:[%s11221_s3 + $0x48] sm:$0xff]  }
0x14c3   :  { %6019 = vmatprep.subr.bf16.mxu1 %v9627_v31 }
0x14c6   :  { %6020 = vmatpush1.bf16.msra.mxu1 %v8908_v53 }
0x14c7   :  { %6327 = vmatprep.subr.bf16.mxu1 %v9627_v31 }
0x156c   :  { %v10972_v32 = vpop.f32.mrb[68].mxu1 }
0x156d   :  { %v5712_v23 = vmax.f32 %v10972_v32, 0.0  ;;  %v8199_v45 = vpop.f32.mrb[69].mxu1  ;;  %v6038_v19 = vrot.slane %v10972_v32, 1 }
0x156e   :  { %v5708_v51 = vpop.f32.mrb[70].mxu1 }
0x156f   :  { %v5718_v9 = vrot.slane %v5712_v23, 2  ;;  %v5714_v7 = vrot.slane %v5712_v23, 1  ;;  %v8200_v34 = vpop.f32.mrb[71].mxu1 }
0x1571   :  { %v5722_v14 = vpack.c.bf16 %v5718_v9, %v5718_v9  ;;  %5715 = vrot.lane.b32.xlu0 %v5714_v7, %s9602_s10 }
0x1573   :  { %7535 = vmatprep.mubr.msk.bf16.mxu0 %vm575_vm2, %v5722_v14 }
0x15e3   :  { %v5716_v37 = vpop.permute.xlu0 %5715 }
0x15e4   :  { %v5720_v62 = vsel %vm575_vm2, %v5712_v23, %v5716_v37 }
0x15e5   :  { %v5721_v63 = vpack.c.bf16 %v5720_v62, %v5720_v62 }
0x15e7   :  { %5862 = vmatmul.mubr.bf16.vlgmr.msra.gmra.mrb[72].mxu0 %v5721_v63 }
0x15e8   :  { %6165 = vmatpush1.bf16.msra.mxu0 %v8909_v1 }
0x15e9   :  { %6166 = vmatprep.subr.bf16.mxu0 %v9627_v31 }
0x15ec   :  { %6167 = vmatpush1.bf16.msra.mxu0 %v8910_v50  ;;  %v7564_v50 = vld [vmem:[#allocation37] ss:$0 sm:$0xff] }
0x15ed   :  { %6168 = vmatprep.subr.bf16.mxu0 %v9627_v31 }
0x15f0   :  { %6169 = vmatpush1.bf16.msra.mxu0 %v8911_v36 }
0x15f1   :  { %6170 = vmatprep.subr.bf16.mxu0 %v9627_v31 }
0x15f4   :  { %6171 = vmatpush1.bf16.msra.mxu0 %v8912_v15 }
0x15f5   :  { %6172 = vmatprep.subr.bf16.mxu0 %v9627_v31 }
0x15f8   :  { %6173 = vmatpush1.bf16.msra.mxu0 %v8913_v60 }
0x15f9   :  { %6174 = vmatprep.subr.bf16.mxu0 %v9627_v31 }
0x15fc   :  { %6175 = vmatpush1.bf16.msra.mxu0 %v8914_v13 }
0x15fd   :  { %6176 = vmatprep.subr.bf16.mxu0 %v9627_v31 }
0x1600   :  { %6177 = vmatpush1.bf16.msra.mxu0 %v8915_v39 }
0x1601   :  { %6178 = vmatprep.subr.bf16.mxu0 %v9627_v31 }
0x1604   :  { %6179 = vmatpush1.bf16.msra.mxu0 %v8916_v27 }
0x1605   :  { %6180 = vmatprep.subr.bf16.mxu0 %v9627_v31 }
0x1608   :  { %6181 = vmatpush1.bf16.msra.mxu0 %v8917_v26 }
0x1609   :  { %6182 = vmatprep.subr.bf16.mxu0 %v9627_v31 }
0x160c   :  { %6183 = vmatpush1.bf16.msra.mxu0 %v8918_v28 }
0x160d   :  { %6184 = vmatprep.subr.bf16.mxu0 %v9627_v31 }
0x1610   :  { %6185 = vmatpush1.bf16.msra.mxu0 %v8919_v35 }
0x1611   :  { %6186 = vmatprep.subr.bf16.mxu0 %v9627_v31 }
0x1614   :  { %6187 = vmatpush1.bf16.msra.mxu0 %v8920_v40 }
0x16ba   :  { %v5863_v49 = vpop.f32.mrb[72].mxu0 }
0x16bb   :  { %v5864_v29 = vadd.f32 %v7522_v17, %v5863_v49  ;;  %v5865_v54 = vpop.f32.mrb[73].mxu0  ;;  %v8931_v17 = vld [vmem:[%s11221_s3 + $0x50] sm:$0xff]   ;;  %v7550_v49 = vld [vmem:[#allocation36] ss:$0 sm:$0xff] }
0x16bc   :  { %v5866_v57 = vpop.f32.mrb[74].mxu0 }
0x16bd   :  { %v5869_v59 = vmax.f32 %v5864_v29, 0.0  ;;  %v5867_v0 = vpop.f32.mrb[75].mxu0  ;;  %v8932_v29 = vld [vmem:[%s11221_s3 + $0x58] sm:$0xff]  }
0x16bf   :  { %v5875_v8 = vmul.f32 %v11002_v16, %v5869_v59 }
0x16c1   :  { %v5877_v21 = vrot.slane %v5875_v8, 7 }
0x16c3   :  { %v5879_v12 = vsel %vm964_vm4, 0.0, %v5877_v21 }
0x16c4   :  { %v5880_v11 = vsel %vm535_vm0, %v5879_v12, 0.0 }
0x16c5   :  { %v5882_v52 = vrot.slane %v5880_v11, 1  ;;  %v5886_v10 = vrot.slane %v5880_v11, 2 }
0x16c7   :  { %v5890_v43 = vpack.c.bf16 %v5886_v10, %v5886_v10  ;;  %5883 = vrot.lane.b32.xlu0 %v5882_v52, %s9602_s10 }
0x16c9   :  { %7549 = vmatprep.mubr.msk.bf16.mxu1 %vm575_vm2, %v5890_v43 }
0x1739   :  { %v5884_v44 = vpop.permute.xlu0 %5883 }
0x173a   :  { %v5888_v55 = vsel %vm575_vm2, %v5880_v11, %v5884_v44 }
0x173b   :  { %v5889_v18 = vpack.c.bf16 %v5888_v55, %v5888_v55 }
0x173d   :  { %6030 = vmatmul.mubr.bf16.vlgmr.msra.gmra.mrb[72].mxu1 %v5889_v18 }
0x173e   :  { %6328 = vmatpush1.bf16.msra.mxu1 %v8921_v38 }
0x173f   :  { %6329 = vmatprep.subr.bf16.mxu1 %v9627_v31 }
0x1742   :  { %6330 = vmatpush1.bf16.msra.mxu1 %v8922_v47 }
0x1743   :  { %6331 = vmatprep.subr.bf16.mxu1 %v9627_v31 }
0x1746   :  { %6332 = vmatpush1.bf16.msra.mxu1 %v8923_v41 }
0x1747   :  { %6333 = vmatprep.subr.bf16.mxu1 %v9627_v31 }
0x174a   :  { %6334 = vmatpush1.bf16.msra.mxu1 %v8924_v4 }
0x174b   :  { %6335 = vmatprep.subr.bf16.mxu1 %v9627_v31 }
0x174e   :  { %6336 = vmatpush1.bf16.msra.mxu1 %v8925_v42 }
0x174f   :  { %6337 = vmatprep.subr.bf16.mxu1 %v9627_v31 }
0x1752   :  { %6338 = vmatpush1.bf16.msra.mxu1 %v8926_v48 }
0x1753   :  { %6339 = vmatprep.subr.bf16.mxu1 %v9627_v31 }
0x1756   :  { %6340 = vmatpush1.bf16.msra.mxu1 %v8927_v46 }
0x1757   :  { %6341 = vmatprep.subr.bf16.mxu1 %v9627_v31 }
0x175a   :  { %6342 = vmatpush1.bf16.msra.mxu1 %v8928_v20 }
0x175b   :  { %6343 = vmatprep.subr.bf16.mxu1 %v9627_v31 }
0x175e   :  { %6344 = vmatpush1.bf16.msra.mxu1 %v8929_v5 }
0x175f   :  { %6345 = vmatprep.subr.bf16.mxu1 %v9627_v31 }
0x1762   :  { %6346 = vmatpush1.bf16.msra.mxu1 %v8930_v56 }
0x1763   :  { %6347 = vmatprep.subr.bf16.mxu1 %v9627_v31 }
0x1766   :  { %6348 = vmatpush1.bf16.msra.mxu1 %v8931_v17 }
0x1767   :  { %6349 = vmatprep.subr.bf16.mxu1 %v9627_v31 }
0x176a   :  { %6350 = vmatpush1.bf16.msra.mxu1 %v8932_v29 }
0x1810   :  { %v6031_v58 = vpop.f32.mrb[72].mxu1 }
0x1811   :  { %v6032_v22 = vadd.f32 %v7536_v30, %v6031_v58  ;;  %v6033_v25 = vpop.f32.mrb[73].mxu1 }
0x1812   :  { %v6034_v61 = vpop.f32.mrb[74].mxu1 }
0x1813   :  { %v6040_v33 = vadd.f32 %v6038_v19, %v6032_v22  ;;  %v6035_v23 = vpop.f32.mrb[75].mxu1 }
0x1815   :  { %v6041_v45 = vmul.f32 %v6040_v33, %v11002_v16 }
0x1817   :  { %v6043_v51 = vrot.slane %v6041_v45, 7 }
0x1819   :  { %v6045_v9 = vsel %vm964_vm4, 0.0, %v6043_v51 }
0x181a   :  { %v11037_v7 = vsel %vm535_vm0, %v6045_v9, 0.0 }
0x181b   :  { %v6047_v32 = vmax.f32 %v11037_v7, 0.0  ;;  %v6368_v60 = vrot.slane %v11037_v7, 1 }
0x181d   :  { %v6049_v34 = vrot.slane %v6047_v32, 1  ;;  %v6053_v14 = vrot.slane %v6047_v32, 2 }
0x181f   :  { %6050 = vrot.lane.b32.xlu1 %v6049_v34, %s9602_s10  ;;  %v6057_v37 = vpack.c.bf16 %v6053_v14, %v6053_v14 }
0x1821   :  { %7563 = vmatprep.mubr.msk.bf16.mxu0 %vm575_vm2, %v6057_v37 }
0x1891   :  { %v6051_v62 = vpop.permute.xlu1 %6050 }
0x1892   :  { %v6055_v63 = vsel %vm575_vm2, %v6047_v32, %v6051_v62 }
0x1893   :  { %v6056_v3 = vpack.c.bf16 %v6055_v63, %v6055_v63 }
0x1895   :  { %6197 = vmatmul.mubr.bf16.vlgmr.msra.gmra.mrb[76].mxu0 %v6056_v3 }
0x1968   :  { %v6198_v53 = vpop.f32.mrb[76].mxu0 }
0x1969   :  { %v6199_v54 = vadd.f32 %v7550_v49, %v6198_v53  ;;  %v6200_v57 = vpop.f32.mrb[77].mxu0 }
0x196a   :  { %v6201_v59 = vpop.f32.mrb[78].mxu0 }
0x196b   :  { %v6204_v0 = vmax.f32 %v6199_v54, 0.0  ;;  %v6202_v8 = vpop.f32.mrb[79].mxu0 }
0x196d   :  { %v6205_v21 = vmul.f32 %v6204_v0, %v11002_v16 }
0x196f   :  { %v6207_v12 = vrot.slane %v6205_v21, 7 }
0x1971   :  { %v6209_v11 = vsel %vm964_vm4, 0.0, %v6207_v12 }
0x1972   :  { %v6210_v52 = vsel %vm535_vm0, %v6209_v11, 0.0 }
0x1973   :  { %v6212_v10 = vrot.slane %v6210_v52, 1  ;;  %v6216_v43 = vrot.slane %v6210_v52, 2 }
0x1975   :  { %v6220_v44 = vpack.c.bf16 %v6216_v43, %v6216_v43  ;;  %6213 = vrot.lane.b32.xlu0 %v6212_v10, %s9602_s10 }
0x1977   :  { %7577 = vmatprep.mubr.msk.bf16.mxu1 %vm575_vm2, %v6220_v44 }
0x19e7   :  { %v6214_v55 = vpop.permute.xlu0 %6213 }
0x19e8   :  { %v6218_v18 = vsel %vm575_vm2, %v6210_v52, %v6214_v55 }
0x19e9   :  { %v6219_v1 = vpack.c.bf16 %v6218_v18, %v6218_v18 }
0x19eb   :  { %6360 = vmatmul.mubr.bf16.vlgmr.msra.gmra.mrb[76].mxu1 %v6219_v1 }
0x1abe   :  { %v6361_v36 = vpop.f32.mrb[76].mxu1 }
0x1abf   :  { %v6362_v15 = vadd.f32 %v7564_v50, %v6361_v36  ;;  %v6363_v13 = vpop.f32.mrb[77].mxu1 }
0x1ac0   :  { %v6364_v39 = vpop.f32.mrb[78].mxu1 }
0x1ac1   :  { %v6370_v27 = vadd.f32 %v6368_v60, %v6362_v15  ;;  %v6365_v26 = vpop.f32.mrb[79].mxu1 }
0x1ac3   :  { %v6371_v28 = vmul.f32 %v6370_v27, %v11002_v16 }
0x1ac5   :  { %v6373_v35 = vrot.slane %v6371_v28, 7 }
0x1ac7   :  { %v6375_v30 = vsel %vm964_vm4, 0.0, %v6373_v35 }
0x1ac8   :  { %v6376_v58 = vsel %vm535_vm0, %v6375_v30, 0.0 }
0x1ac9   :  { %v6377_v19 = vmax.f32 %v6376_v58, 0.0 }
0x1acb   :  { %v6379_v22 = vrot.slane %v6377_v19, 1 }
0x1acd   :  { %6380 = vrot.lane.b32.xlu1 %v6379_v22, %s9602_s10 }
0x1b3f   :  { %v6381_v25 = vpop.permute.xlu1 %6380 }
0x1b40   :  { %v6383_v61 = vsel %vm575_vm2, %v6377_v19, %v6381_v25 }
0x1b41   :  { %v6385_v40 = vrot.slane %v6383_v61, 1  ;;  %v6387_v33 = vrot.slane %v6383_v61, 4 }
0x1b43   :  { %v11079_v23 = vsel %vm964_vm4, %v6385_v40, %v6387_v33 }
0x1b44   :  { %9541 = dma.done.wait [#allocation3], 24576 }
0x1b45   :  { %9542 = vsyncadd [#allocation3], 4294942720  ;;  %v6410_v16 = vld [vmem:[#allocation2 + $0x8] sm:$0xff]  ;;  %v6412_v45 = vld [vmem:[#allocation2 + $0x18] sm:$0xff]  ;;  %s11222_s10 = sld [smem:[#allocation89_spill]]  ;;  %s11223_s12 = sld [smem:[#allocation90_spill]] }
0x1b46   :  { %v6409_v51 = vld [vmem:[#allocation2] sm:$0xff]  ;;  %6643 = vmatprep.subr.bf16.mxu0 %v6410_v16  ;;  %6725 = vmatprep.subr.bf16.mxu1 %v6412_v45  ;;  %v6411_v9 = vld [vmem:[#allocation2 + $0x10] sm:$0xff]  ;;  %v6418_v7 = vld [vmem:[#allocation2 + $0x48] sm:$0xff]  ;;  %s9635_s26 = smov [#allocation42]  }
0x1b47   :  { %v6420_v32 = vld [vmem:[#allocation2 + $0x58] sm:$0xff]  ;;  %6644 = vmatpush1.bf16.msra.mxu0 %v6409_v51  ;;  %6726 = vmatpush1.bf16.msra.mxu1 %v6411_v9  ;;  %v6417_v34 = vld [vmem:[#allocation2 + $0x40] sm:$0xff]  ;;  %v6419_v14 = vld [vmem:[#allocation2 + $0x50] sm:$0xff]  ;;  %s7063_s28 = sshll.u32 %s9635_s26, 4  ;;  %s7064_s28 = int_to_ptr.vmem [resolvable:$true] %s7063_s28 }
0x1b48   :  { %6645 = vmatprep.subr.bf16.mxu0 %v6418_v7  ;;  %6727 = vmatprep.subr.bf16.mxu1 %v6420_v32  ;;  %v6426_v37 = vld [vmem:[#allocation2 + $0x88] sm:$0xff]  ;;  %v6428_v62 = vld [vmem:[#allocation2 + $0x98] sm:$0xff]  ;;  %v6425_v63 = vld [vmem:[#allocation2 + $0x80] sm:$0xff]  ;;  %s9493_s25 = scalar_lea.vmem %s7064_s28, 64  ;;  %p9498_p11 = scmp.lt.s32.totalorder %s7064_s28, %s7064_s28 }
0x1b49   :  { %v6427_v3 = vld [vmem:[#allocation2 + $0x90] sm:$0xff]  ;;  %v6434_v38 = vld [vmem:[#allocation2 + $0xc8] sm:$0xff]  ;;  %v6436_v47 = vld [vmem:[#allocation2 + $0xd8] sm:$0xff]  ;;  %p9494_p10 = scmp.ne.s32.totalorder %s7064_s28, %s9493_s25  ;;  %p9499_p12 = scmp.lt.s32.totalorder %s9493_s25, %s9493_s25 }
0x1b4a   :  { %v6433_v41 = vld [vmem:[#allocation2 + $0xc0] sm:$0xff]  ;;  %v6435_v4 = vld [vmem:[#allocation2 + $0xd0] sm:$0xff]  ;;  %v6442_v42 = vld [vmem:[#allocation2 + $0x108] sm:$0xff] }
0x1b4b   :  { %6646 = vmatpush1.bf16.msra.mxu0 %v6417_v34  ;;  %6728 = vmatpush1.bf16.msra.mxu1 %v6419_v14  ;;  %v6444_v48 = vld [vmem:[#allocation2 + $0x118] sm:$0xff]  ;;  %v6441_v46 = vld [vmem:[#allocation2 + $0x100] sm:$0xff]  ;;  %v6443_v20 = vld [vmem:[#allocation2 + $0x110] sm:$0xff]  ;;  %p9500_p13 = por %p9499_p12, %p9498_p11 }
0x1b4c   :  { %6647 = vmatprep.subr.bf16.mxu0 %v6426_v37  ;;  %6729 = vmatprep.subr.bf16.mxu1 %v6428_v62  ;;  %v6450_v5 = vld [vmem:[#allocation2 + $0x148] sm:$0xff]  ;;  %v6452_v56 = vld [vmem:[#allocation2 + $0x158] sm:$0xff]  ;;  %v6449_v17 = vld [vmem:[#allocation2 + $0x140] sm:$0xff]  ;;  %v11092_v62 = vpack.c.bf16 %v11079_v23, %v11079_v23 }
0x1b4d   :  { %v6451_v49 = vld [vmem:[#allocation2 + $0x150] sm:$0xff]  ;;  %v6458_v53 = vld [vmem:[#allocation2 + $0x188] sm:$0xff]  ;;  %v6460_v29 = vld [vmem:[#allocation2 + $0x198] sm:$0xff]  ;;  %p9501_p0 = pnand %p9500_p13, %p9494_p10 }
0x1b4e   :  { %v11082_v54 = vld.sshfl [vmem:[%s11222_s10] sm:$0x33 pattern:$0x76325410]  ;;  %v6459_v0 = vld [vmem:[#allocation2 + $0x190] sm:$0xff]  ;;  %v6466_v8 = vld [vmem:[#allocation2 + $0x1c8] sm:$0xff] }
0x1b4f   :  { %6648 = vmatpush1.bf16.msra.mxu0 %v6425_v63  ;;  %6730 = vmatpush1.bf16.msra.mxu1 %v6427_v3  ;;  %v11086_v57 = vpack.c.bf16 %v11082_v54, %v11082_v54  ;;  %v6457_v59 = vld [vmem:[#allocation2 + $0x180] sm:$0xff]  ;;  %v6468_v21 = vld [vmem:[#allocation2 + $0x1d8] sm:$0xff]  ;;  %v6467_v11 = vld [vmem:[#allocation2 + $0x1d0] sm:$0xff] }
0x1b50   :  { %6649 = vmatprep.subr.bf16.mxu0 %v6434_v38  ;;  %6731 = vmatprep.subr.bf16.mxu1 %v6436_v47  ;;  %v6465_v12 = vld [vmem:[#allocation2 + $0x1c0] sm:$0xff]  ;;  %v6474_v52 = vld [vmem:[#allocation2 + $0x208] sm:$0xff]  ;;  %v6476_v10 = vld [vmem:[#allocation2 + $0x218] sm:$0xff] }
0x1b51   :  { %6675 = vmatprep.mubr.bf16.mxu0 %v11086_v57  ;;  %6757 = vmatprep.mubr.bf16.mxu1 %v11086_v57  ;;  %v6473_v43 = vld [vmem:[#allocation2 + $0x200] sm:$0xff]  ;;  %v6475_v44 = vld [vmem:[#allocation2 + $0x210] sm:$0xff]  ;;  %v6482_v55 = vld [vmem:[#allocation2 + $0x248] sm:$0xff] }
0x1b52   :  { %v6484_v18 = vld [vmem:[#allocation2 + $0x258] sm:$0xff]  ;;  %v6481_v1 = vld [vmem:[#allocation2 + $0x240] sm:$0xff]  ;;  %v6483_v50 = vld [vmem:[#allocation2 + $0x250] sm:$0xff] }
0x1b53   :  { %6650 = vmatpush1.bf16.msra.mxu0 %v6433_v41  ;;  %6732 = vmatpush1.bf16.msra.mxu1 %v6435_v4  ;;  %v6490_v36 = vld [vmem:[#allocation2 + $0x288] sm:$0xff]  ;;  %v6492_v15 = vld [vmem:[#allocation2 + $0x298] sm:$0xff]  ;;  %v6489_v60 = vld [vmem:[#allocation2 + $0x280] sm:$0xff] }
0x1b54   :  { %6651 = vmatprep.subr.bf16.mxu0 %v6442_v42  ;;  %6733 = vmatprep.subr.bf16.mxu1 %v6444_v48  ;;  %v6491_v13 = vld [vmem:[#allocation2 + $0x290] sm:$0xff]  ;;  %v6498_v39 = vld [vmem:[#allocation2 + $0x2c8] sm:$0xff]  ;;  %v6500_v27 = vld [vmem:[#allocation2 + $0x2d8] sm:$0xff] }
0x1b55   :  { %v6497_v26 = vld [vmem:[#allocation2 + $0x2c0] sm:$0xff]  ;;  %v6499_v28 = vld [vmem:[#allocation2 + $0x2d0] sm:$0xff]  ;;  %v6506_v35 = vld [vmem:[#allocation2 + $0x308] sm:$0xff] }
0x1b56   :  { %v6508_v30 = vld [vmem:[#allocation2 + $0x318] sm:$0xff]  ;;  %v6505_v58 = vld [vmem:[#allocation2 + $0x300] sm:$0xff]  ;;  %v6507_v19 = vld [vmem:[#allocation2 + $0x310] sm:$0xff] }
0x1b57   :  { %6652 = vmatpush1.bf16.msra.mxu0 %v6441_v46  ;;  %6734 = vmatpush1.bf16.msra.mxu1 %v6443_v20  ;;  %v6514_v22 = vld [vmem:[#allocation2 + $0x348] sm:$0xff]  ;;  %v6516_v25 = vld [vmem:[#allocation2 + $0x358] sm:$0xff]  ;;  %v6513_v61 = vld [vmem:[#allocation2 + $0x340] sm:$0xff] }
0x1b58   :  { %6653 = vmatprep.subr.bf16.mxu0 %v6450_v5  ;;  %6735 = vmatprep.subr.bf16.mxu1 %v6452_v56  ;;  %v6515_v40 = vld [vmem:[#allocation2 + $0x350] sm:$0xff]  ;;  %v6522_v33 = vld [vmem:[#allocation2 + $0x388] sm:$0xff]  ;;  %v6524_v16 = vld [vmem:[#allocation2 + $0x398] sm:$0xff] }
0x1b59   :  { %v6521_v45 = vld [vmem:[#allocation2 + $0x380] sm:$0xff]  ;;  %v6523_v51 = vld [vmem:[#allocation2 + $0x390] sm:$0xff]  ;;  %v6530_v9 = vld [vmem:[#allocation2 + $0x3c8] sm:$0xff] }
0x1b5a   :  { %v6532_v7 = vld [vmem:[#allocation2 + $0x3d8] sm:$0xff]  ;;  %v6529_v32 = vld [vmem:[#allocation2 + $0x3c0] sm:$0xff]  ;;  %v6531_v34 = vld [vmem:[#allocation2 + $0x3d0] sm:$0xff] }
0x1b5b   :  { %6654 = vmatpush1.bf16.msra.mxu0 %v6449_v17  ;;  %6736 = vmatpush1.bf16.msra.mxu1 %v6451_v49  ;;  %v6538_v14 = vld [vmem:[#allocation2 + $0x408] sm:$0xff]  ;;  %v6540_v37 = vld [vmem:[#allocation2 + $0x418] sm:$0xff]  ;;  %v6537_v63 = vld [vmem:[#allocation2 + $0x400] sm:$0xff] }
0x1b5c   :  { %6655 = vmatprep.subr.bf16.mxu0 %v6458_v53  ;;  %6737 = vmatprep.subr.bf16.mxu1 %v6460_v29  ;;  %v6539_v3 = vld [vmem:[#allocation2 + $0x410] sm:$0xff]  ;;  %v6546_v38 = vld [vmem:[#allocation2 + $0x448] sm:$0xff]  ;;  %v6548_v47 = vld [vmem:[#allocation2 + $0x458] sm:$0xff] }
0x1b5d   :  { %v6545_v41 = vld [vmem:[#allocation2 + $0x440] sm:$0xff]  ;;  %v6547_v4 = vld [vmem:[#allocation2 + $0x450] sm:$0xff]  ;;  %v6554_v23 = vld [vmem:[#allocation2 + $0x488] sm:$0xff] }
0x1b5e   :  { %v6556_v42 = vld [vmem:[#allocation2 + $0x498] sm:$0xff]  ;;  %v6553_v48 = vld [vmem:[#allocation2 + $0x480] sm:$0xff]  ;;  %v6555_v46 = vld [vmem:[#allocation2 + $0x490] sm:$0xff] }
0x1b5f   :  { %6656 = vmatpush1.bf16.msra.mxu0 %v6457_v59  ;;  %6738 = vmatpush1.bf16.msra.mxu1 %v6459_v0  ;;  %v6562_v20 = vld [vmem:[#allocation2 + $0x4c8] sm:$0xff]  ;;  %v6564_v5 = vld [vmem:[#allocation2 + $0x4d8] sm:$0xff]  ;;  %v6561_v56 = vld [vmem:[#allocation2 + $0x4c0] sm:$0xff] }
0x1b60   :  { %6657 = vmatprep.subr.bf16.mxu0 %v6466_v8  ;;  %6739 = vmatprep.subr.bf16.mxu1 %v6468_v21  ;;  %v6563_v17 = vld [vmem:[#allocation2 + $0x4d0] sm:$0xff]  ;;  %v6570_v49 = vld [vmem:[#allocation2 + $0x508] sm:$0xff]  ;;  %v6572_v53 = vld [vmem:[#allocation2 + $0x518] sm:$0xff] }
0x1b61   :  { %v6569_v29 = vld [vmem:[#allocation2 + $0x500] sm:$0xff]  ;;  %v6571_v59 = vld [vmem:[#allocation2 + $0x510] sm:$0xff]  ;;  %v6578_v0 = vld [vmem:[#allocation2 + $0x548] sm:$0xff] }
0x1b62   :  { %v6580_v8 = vld [vmem:[#allocation2 + $0x558] sm:$0xff]  ;;  %v6577_v21 = vld [vmem:[#allocation2 + $0x540] sm:$0xff] }
0x1b63   :  { %6658 = vmatpush1.bf16.msra.mxu0 %v6465_v12  ;;  %6740 = vmatpush1.bf16.msra.mxu1 %v6467_v11  ;;  %v6579_v12 = vld [vmem:[#allocation2 + $0x550] sm:$0xff]  ;;  %v6586_v11 = vld [vmem:[#allocation2 + $0x588] sm:$0xff] }
0x1b64   :  { %6659 = vmatprep.subr.bf16.mxu0 %v6474_v52  ;;  %6741 = vmatprep.subr.bf16.mxu1 %v6476_v10  ;;  %v6588_v52 = vld [vmem:[#allocation2 + $0x598] sm:$0xff]  ;;  %v6585_v10 = vld [vmem:[#allocation2 + $0x580] sm:$0xff] }
0x1b67   :  { %6660 = vmatpush1.bf16.msra.mxu0 %v6473_v43  ;;  %6742 = vmatpush1.bf16.msra.mxu1 %v6475_v44  ;;  %v6587_v43 = vld [vmem:[#allocation2 + $0x590] sm:$0xff]  ;;  %v6594_v44 = vld [vmem:[#allocation2 + $0x5c8] sm:$0xff] }
0x1b68   :  { %6661 = vmatprep.subr.bf16.mxu0 %v6482_v55  ;;  %6743 = vmatprep.subr.bf16.mxu1 %v6484_v18  ;;  %v6596_v55 = vld [vmem:[#allocation2 + $0x5d8] sm:$0xff]  ;;  %v6403_v18 = vcombine.high %v11082_v54, %v11082_v54  ;;  %v6421_v54 = vld [vmem:[#allocation2 + $0x60] sm:$0xff] }
0x1b6b   :  { %6662 = vmatpush1.bf16.msra.mxu0 %v6481_v1  ;;  %6744 = vmatpush1.bf16.msra.mxu1 %v6483_v50  ;;  %v6593_v1 = vld [vmem:[#allocation2 + $0x5c0] sm:$0xff]  ;;  %v6595_v50 = vld [vmem:[#allocation2 + $0x5d0] sm:$0xff] }
0x1b6c   :  { %6663 = vmatprep.subr.bf16.mxu0 %v6490_v36  ;;  %6745 = vmatprep.subr.bf16.mxu1 %v6492_v15  ;;  %v6414_v36 = vld [vmem:[#allocation2 + $0x28] sm:$0xff]  ;;  %v6416_v15 = vld [vmem:[#allocation2 + $0x38] sm:$0xff] }
0x1b6f   :  { %6664 = vmatpush1.bf16.msra.mxu0 %v6489_v60  ;;  %6746 = vmatpush1.bf16.msra.mxu1 %v6491_v13  ;;  %v11100_v60 = vpack.c.bf16 %v6403_v18, %v6403_v18  ;;  %v6413_v13 = vld [vmem:[#allocation2 + $0x20] sm:$0xff]  ;;  %v6519_v18 = vld [vmem:[#allocation2 + $0x370] sm:$0xff] }
0x1b70   :  { %6665 = vmatprep.subr.bf16.mxu0 %v6498_v39  ;;  %6747 = vmatprep.subr.bf16.mxu1 %v6500_v27  ;;  %v6415_v39 = vld [vmem:[#allocation2 + $0x30] sm:$0xff]  ;;  %v6422_v27 = vld [vmem:[#allocation2 + $0x68] sm:$0xff] }
0x1b73   :  { %6666 = vmatpush1.bf16.msra.mxu0 %v6497_v26  ;;  %6748 = vmatpush1.bf16.msra.mxu1 %v6499_v28  ;;  %v6424_v26 = vld [vmem:[#allocation2 + $0x78] sm:$0xff]  ;;  %v6423_v28 = vld [vmem:[#allocation2 + $0x70] sm:$0xff] }
0x1b74   :  { %6667 = vmatprep.subr.bf16.mxu0 %v6506_v35  ;;  %6749 = vmatprep.subr.bf16.mxu1 %v6508_v30  ;;  %v6430_v35 = vld [vmem:[#allocation2 + $0xa8] sm:$0xff]  ;;  %v6432_v30 = vld [vmem:[#allocation2 + $0xb8] sm:$0xff] }
0x1b77   :  { %6668 = vmatpush1.bf16.msra.mxu0 %v6505_v58  ;;  %6750 = vmatpush1.bf16.msra.mxu1 %v6507_v19  ;;  %v6429_v58 = vld [vmem:[#allocation2 + $0xa0] sm:$0xff]  ;;  %v6431_v19 = vld [vmem:[#allocation2 + $0xb0] sm:$0xff] }
0x1b78   :  { %6669 = vmatprep.subr.bf16.mxu0 %v6514_v22  ;;  %6751 = vmatprep.subr.bf16.mxu1 %v6516_v25  ;;  %v6438_v22 = vld [vmem:[#allocation2 + $0xe8] sm:$0xff]  ;;  %v6440_v25 = vld [vmem:[#allocation2 + $0xf8] sm:$0xff] }
0x1b7b   :  { %6670 = vmatpush1.bf16.msra.mxu0 %v6513_v61  ;;  %6752 = vmatpush1.bf16.msra.mxu1 %v6515_v40  ;;  %v6437_v61 = vld [vmem:[#allocation2 + $0xe0] sm:$0xff]  ;;  %v6439_v40 = vld [vmem:[#allocation2 + $0xf0] sm:$0xff] }
0x1b7c   :  { %6671 = vmatprep.subr.bf16.mxu0 %v6522_v33  ;;  %6753 = vmatprep.subr.bf16.mxu1 %v6524_v16  ;;  %v6446_v33 = vld [vmem:[#allocation2 + $0x128] sm:$0xff]  ;;  %v6448_v16 = vld [vmem:[#allocation2 + $0x138] sm:$0xff] }
0x1b7f   :  { %6672 = vmatpush1.bf16.msra.mxu0 %v6521_v45  ;;  %6754 = vmatpush1.bf16.msra.mxu1 %v6523_v51  ;;  %v6447_v45 = vld [vmem:[#allocation2 + $0x130] sm:$0xff]  ;;  %v6454_v51 = vld [vmem:[#allocation2 + $0x168] sm:$0xff] }
0x1b80   :  { %6673 = vmatprep.subr.bf16.mxu0 %v6530_v9  ;;  %6755 = vmatprep.subr.bf16.mxu1 %v6532_v7  ;;  %v6456_v9 = vld [vmem:[#allocation2 + $0x178] sm:$0xff]  ;;  %v6453_v7 = vld [vmem:[#allocation2 + $0x160] sm:$0xff] }
0x1b83   :  { %6674 = vmatpush1.bf16.msra.mxu0 %v6529_v32  ;;  %6756 = vmatpush1.bf16.msra.mxu1 %v6531_v34  ;;  %v6455_v32 = vld [vmem:[#allocation2 + $0x170] sm:$0xff]  ;;  %v6462_v34 = vld [vmem:[#allocation2 + $0x1a8] sm:$0xff] }
0x1b84   :  { %6684 = vmatprep.subr.bf16.mxu0 %v6538_v14  ;;  %6766 = vmatprep.subr.bf16.mxu1 %v6540_v37  ;;  %v6464_v14 = vld [vmem:[#allocation2 + $0x1b8] sm:$0xff]  ;;  %v6461_v37 = vld [vmem:[#allocation2 + $0x1a0] sm:$0xff] }
0x1b86   :  { %6676 = vmatmul.mubr.bf16.vlgmr.msra.gmra.mrb[80].mxu0 %v11092_v62  ;;  %6758 = vmatmul.mubr.bf16.vlgmr.msra.gmra.mrb[80].mxu1 %v11092_v62 }
0x1b87   :  { %6685 = vmatpush1.bf16.msra.mxu0 %v6537_v63  ;;  %6767 = vmatpush1.bf16.msra.mxu1 %v6539_v3  ;;  %v6463_v63 = vld [vmem:[#allocation2 + $0x1b0] sm:$0xff]  ;;  %v6470_v3 = vld [vmem:[#allocation2 + $0x1e8] sm:$0xff] }
0x1b88   :  { %6686 = vmatprep.subr.bf16.mxu0 %v6546_v38  ;;  %6768 = vmatprep.subr.bf16.mxu1 %v6548_v47  ;;  %v6472_v38 = vld [vmem:[#allocation2 + $0x1f8] sm:$0xff]  ;;  %v6469_v47 = vld [vmem:[#allocation2 + $0x1e0] sm:$0xff] }
0x1b89   :  { %6716 = vmatprep.mubr.bf16.mxu0 %v9627_v31  ;;  %6798 = vmatprep.mubr.bf16.mxu1 %v9627_v31 }
0x1b8b   :  { %6687 = vmatpush1.bf16.msra.mxu0 %v6545_v41  ;;  %6769 = vmatpush1.bf16.msra.mxu1 %v6547_v4  ;;  %v6471_v41 = vld [vmem:[#allocation2 + $0x1f0] sm:$0xff]  ;;  %v6478_v4 = vld [vmem:[#allocation2 + $0x228] sm:$0xff] }
0x1b8c   :  { %6688 = vmatprep.subr.bf16.mxu0 %v6554_v23  ;;  %6770 = vmatprep.subr.bf16.mxu1 %v6556_v42  ;;  %v6480_v23 = vld [vmem:[#allocation2 + $0x238] sm:$0xff]  ;;  %v6477_v42 = vld [vmem:[#allocation2 + $0x220] sm:$0xff] }
0x1b8f   :  { %6689 = vmatpush1.bf16.msra.mxu0 %v6553_v48  ;;  %6771 = vmatpush1.bf16.msra.mxu1 %v6555_v46  ;;  %v6479_v48 = vld [vmem:[#allocation2 + $0x230] sm:$0xff]  ;;  %v6486_v46 = vld [vmem:[#allocation2 + $0x268] sm:$0xff] }
0x1b90   :  { %6690 = vmatprep.subr.bf16.mxu0 %v6562_v20  ;;  %6772 = vmatprep.subr.bf16.mxu1 %v6564_v5  ;;  %v6488_v20 = vld [vmem:[#allocation2 + $0x278] sm:$0xff]  ;;  %v6485_v5 = vld [vmem:[#allocation2 + $0x260] sm:$0xff] }
0x1b93   :  { %6691 = vmatpush1.bf16.msra.mxu0 %v6561_v56  ;;  %6773 = vmatpush1.bf16.msra.mxu1 %v6563_v17  ;;  %v6487_v56 = vld [vmem:[#allocation2 + $0x270] sm:$0xff]  ;;  %v6494_v17 = vld [vmem:[#allocation2 + $0x2a8] sm:$0xff] }
0x1b94   :  { %6692 = vmatprep.subr.bf16.mxu0 %v6570_v49  ;;  %6774 = vmatprep.subr.bf16.mxu1 %v6572_v53  ;;  %v6496_v49 = vld [vmem:[#allocation2 + $0x2b8] sm:$0xff]  ;;  %v6493_v53 = vld [vmem:[#allocation2 + $0x2a0] sm:$0xff] }
0x1b97   :  { %6693 = vmatpush1.bf16.msra.mxu0 %v6569_v29  ;;  %6775 = vmatpush1.bf16.msra.mxu1 %v6571_v59  ;;  %v6495_v29 = vld [vmem:[#allocation2 + $0x2b0] sm:$0xff]  ;;  %v6502_v59 = vld [vmem:[#allocation2 + $0x2e8] sm:$0xff] }
0x1b98   :  { %6694 = vmatprep.subr.bf16.mxu0 %v6578_v0  ;;  %6776 = vmatprep.subr.bf16.mxu1 %v6580_v8  ;;  %v6504_v0 = vld [vmem:[#allocation2 + $0x2f8] sm:$0xff]  ;;  %v6501_v8 = vld [vmem:[#allocation2 + $0x2e0] sm:$0xff] }
0x1b9b   :  { %6695 = vmatpush1.bf16.msra.mxu0 %v6577_v21  ;;  %6777 = vmatpush1.bf16.msra.mxu1 %v6579_v12  ;;  %v6503_v21 = vld [vmem:[#allocation2 + $0x2f0] sm:$0xff]  ;;  %v6510_v12 = vld [vmem:[#allocation2 + $0x328] sm:$0xff] }
0x1b9c   :  { %6696 = vmatprep.subr.bf16.mxu0 %v6586_v11  ;;  %6778 = vmatprep.subr.bf16.mxu1 %v6588_v52  ;;  %v6512_v11 = vld [vmem:[#allocation2 + $0x338] sm:$0xff]  ;;  %v6509_v52 = vld [vmem:[#allocation2 + $0x320] sm:$0xff] }
0x1b9f   :  { %6697 = vmatpush1.bf16.msra.mxu0 %v6585_v10  ;;  %6779 = vmatpush1.bf16.msra.mxu1 %v6587_v43  ;;  %v6511_v10 = vld [vmem:[#allocation2 + $0x330] sm:$0xff]  ;;  %v6518_v43 = vld [vmem:[#allocation2 + $0x368] sm:$0xff] }
0x1ba0   :  { %6698 = vmatprep.subr.bf16.mxu0 %v6594_v44  ;;  %6780 = vmatprep.subr.bf16.mxu1 %v6596_v55  ;;  %v6520_v44 = vld [vmem:[#allocation2 + $0x378] sm:$0xff]  ;;  %v6517_v55 = vld [vmem:[#allocation2 + $0x360] sm:$0xff] }
0x1ba3   :  { %6699 = vmatpush1.bf16.msra.mxu0 %v6593_v1  ;;  %6781 = vmatpush1.bf16.msra.mxu1 %v6595_v50  ;;  %v6526_v1 = vld [vmem:[#allocation2 + $0x3a8] sm:$0xff]  ;;  %v6528_v50 = vld [vmem:[#allocation2 + $0x3b8] sm:$0xff] }
0x1ba4   :  { %6807 = vmatprep.subr.bf16.mxu0 %v6414_v36  ;;  %6889 = vmatprep.subr.bf16.mxu1 %v6416_v15  ;;  %v6525_v36 = vld [vmem:[#allocation2 + $0x3a0] sm:$0xff]  ;;  %v6527_v15 = vld [vmem:[#allocation2 + $0x3b0] sm:$0xff] }
0x1ba6   :  { %6717 = vmatmul.mubr.bf16.vlgmr.msra.gmra.mrb[80].mxu0 %v11100_v60  ;;  %6799 = vmatmul.mubr.bf16.vlgmr.msra.gmra.mrb[80].mxu1 %v11100_v60 }
0x1ba7   :  { %6808 = vmatpush1.bf16.msra.mxu0 %v6413_v13  ;;  %6890 = vmatpush1.bf16.msra.mxu1 %v6415_v39  ;;  %v6534_v13 = vld [vmem:[#allocation2 + $0x3e8] sm:$0xff]  ;;  %v6536_v39 = vld [vmem:[#allocation2 + $0x3f8] sm:$0xff] }
0x1ba8   :  { %6809 = vmatprep.subr.bf16.mxu0 %v6422_v27  ;;  %6891 = vmatprep.subr.bf16.mxu1 %v6424_v26  ;;  %v6533_v27 = vld [vmem:[#allocation2 + $0x3e0] sm:$0xff]  ;;  %v6535_v26 = vld [vmem:[#allocation2 + $0x3f0] sm:$0xff] }
0x1ba9   :  { %6839 = vmatprep.mubr.bf16.mxu0 %v11086_v57  ;;  %6921 = vmatprep.mubr.bf16.mxu1 %v11086_v57  ;;  %v6445_v57 = vld [vmem:[#allocation2 + $0x120] sm:$0xff] }
0x1bab   :  { %6810 = vmatpush1.bf16.msra.mxu0 %v6421_v54  ;;  %6892 = vmatpush1.bf16.msra.mxu1 %v6423_v28  ;;  %v6542_v54 = vld [vmem:[#allocation2 + $0x428] sm:$0xff]  ;;  %v6544_v28 = vld [vmem:[#allocation2 + $0x438] sm:$0xff] }
0x1bac   :  { %6811 = vmatprep.subr.bf16.mxu0 %v6430_v35  ;;  %6893 = vmatprep.subr.bf16.mxu1 %v6432_v30  ;;  %v6541_v35 = vld [vmem:[#allocation2 + $0x420] sm:$0xff]  ;;  %v6543_v30 = vld [vmem:[#allocation2 + $0x430] sm:$0xff] }
0x1baf   :  { %6812 = vmatpush1.bf16.msra.mxu0 %v6429_v58  ;;  %6894 = vmatpush1.bf16.msra.mxu1 %v6431_v19  ;;  %v6550_v58 = vld [vmem:[#allocation2 + $0x468] sm:$0xff]  ;;  %v6552_v19 = vld [vmem:[#allocation2 + $0x478] sm:$0xff] }
0x1bb0   :  { %6813 = vmatprep.subr.bf16.mxu0 %v6438_v22  ;;  %6895 = vmatprep.subr.bf16.mxu1 %v6440_v25  ;;  %v6549_v22 = vld [vmem:[#allocation2 + $0x460] sm:$0xff]  ;;  %v6551_v25 = vld [vmem:[#allocation2 + $0x470] sm:$0xff] }
0x1bb3   :  { %6814 = vmatpush1.bf16.msra.mxu0 %v6437_v61  ;;  %6896 = vmatpush1.bf16.msra.mxu1 %v6439_v40  ;;  %v6558_v61 = vld [vmem:[#allocation2 + $0x4a8] sm:$0xff]  ;;  %v6560_v40 = vld [vmem:[#allocation2 + $0x4b8] sm:$0xff] }
0x1bb4   :  { %6815 = vmatprep.subr.bf16.mxu0 %v6446_v33  ;;  %6897 = vmatprep.subr.bf16.mxu1 %v6448_v16  ;;  %v6557_v33 = vld [vmem:[#allocation2 + $0x4a0] sm:$0xff]  ;;  %v6559_v16 = vld [vmem:[#allocation2 + $0x4b0] sm:$0xff] }
0x1bb7   :  { %6816 = vmatpush1.bf16.msra.mxu0 %v6445_v57  ;;  %6898 = vmatpush1.bf16.msra.mxu1 %v6447_v45  ;;  %v6566_v57 = vld [vmem:[#allocation2 + $0x4e8] sm:$0xff]  ;;  %v6565_v45 = vld [vmem:[#allocation2 + $0x4e0] sm:$0xff] }
0x1bb8   :  { %6817 = vmatprep.subr.bf16.mxu0 %v6454_v51  ;;  %6899 = vmatprep.subr.bf16.mxu1 %v6456_v9  ;;  %v6567_v51 = vld [vmem:[#allocation2 + $0x4f0] sm:$0xff]  ;;  %v6574_v9 = vld [vmem:[#allocation2 + $0x528] sm:$0xff] }
0x1bbb   :  { %6818 = vmatpush1.bf16.msra.mxu0 %v6453_v7  ;;  %6900 = vmatpush1.bf16.msra.mxu1 %v6455_v32  ;;  %v6576_v7 = vld [vmem:[#allocation2 + $0x538] sm:$0xff]  ;;  %v6575_v32 = vld [vmem:[#allocation2 + $0x530] sm:$0xff] }
0x1bbc   :  { %6819 = vmatprep.subr.bf16.mxu0 %v6462_v34  ;;  %6901 = vmatprep.subr.bf16.mxu1 %v6464_v14  ;;  %v6582_v34 = vld [vmem:[#allocation2 + $0x568] sm:$0xff]  ;;  %v6584_v14 = vld [vmem:[#allocation2 + $0x578] sm:$0xff] }
0x1bbf   :  { %6820 = vmatpush1.bf16.msra.mxu0 %v6461_v37  ;;  %6902 = vmatpush1.bf16.msra.mxu1 %v6463_v63  ;;  %v6581_v37 = vld [vmem:[#allocation2 + $0x560] sm:$0xff]  ;;  %v6583_v63 = vld [vmem:[#allocation2 + $0x570] sm:$0xff] }
0x1bc0   :  { %6821 = vmatprep.subr.bf16.mxu0 %v6470_v3  ;;  %6903 = vmatprep.subr.bf16.mxu1 %v6472_v38  ;;  %v6590_v3 = vld [vmem:[#allocation2 + $0x5a8] sm:$0xff]  ;;  %v6592_v38 = vld [vmem:[#allocation2 + $0x5b8] sm:$0xff] }
0x1bc3   :  { %6822 = vmatpush1.bf16.msra.mxu0 %v6469_v47  ;;  %6904 = vmatpush1.bf16.msra.mxu1 %v6471_v41  ;;  %v6589_v47 = vld [vmem:[#allocation2 + $0x5a0] sm:$0xff]  ;;  %v6591_v41 = vld [vmem:[#allocation2 + $0x5b0] sm:$0xff] }
0x1bc4   :  { %6823 = vmatprep.subr.bf16.mxu0 %v6478_v4  ;;  %6905 = vmatprep.subr.bf16.mxu1 %v6480_v23  ;;  %v6598_v4 = vld [vmem:[#allocation2 + $0x5e8] sm:$0xff]  ;;  %v6600_v23 = vld [vmem:[#allocation2 + $0x5f8] sm:$0xff] }
0x1bc7   :  { %6824 = vmatpush1.bf16.msra.mxu0 %v6477_v42  ;;  %6906 = vmatpush1.bf16.msra.mxu1 %v6479_v48  ;;  %v6597_v42 = vld [vmem:[#allocation2 + $0x5e0] sm:$0xff]  ;;  %v6599_v48 = vld [vmem:[#allocation2 + $0x5f0] sm:$0xff] }
0x1bc8   :  { %6825 = vmatprep.subr.bf16.mxu0 %v6486_v46  ;;  %6907 = vmatprep.subr.bf16.mxu1 %v6488_v20 }
0x1bcb   :  { %6826 = vmatpush1.bf16.msra.mxu0 %v6485_v5  ;;  %6908 = vmatpush1.bf16.msra.mxu1 %v6487_v56 }
0x1bcc   :  { %6827 = vmatprep.subr.bf16.mxu0 %v6494_v17  ;;  %6909 = vmatprep.subr.bf16.mxu1 %v6496_v49 }
0x1bcf   :  { %6828 = vmatpush1.bf16.msra.mxu0 %v6493_v53  ;;  %6910 = vmatpush1.bf16.msra.mxu1 %v6495_v29 }
0x1bd0   :  { %6829 = vmatprep.subr.bf16.mxu0 %v6502_v59  ;;  %6911 = vmatprep.subr.bf16.mxu1 %v6504_v0  ;;  %v6601_v59 = vld [vmem:[#allocation40] sm:$0xff]  ;;  %v6613_v0 = vsub.s32 2, %v10094_v24 }
0x1bd3   :  { %6830 = vmatpush1.bf16.msra.mxu0 %v6501_v8  ;;  %6912 = vmatpush1.bf16.msra.mxu1 %v6503_v21  ;;  %v6617_v8 = vsub.s32 3, %v10094_v24  ;;  %v6606_v21 = vrot.slane %v6601_v59, %v10097_v2  ;;  %v6621_v2 = vsub.s32 4, %v10094_v24 }
0x1bd4   :  { %6831 = vmatprep.subr.bf16.mxu0 %v6510_v12  ;;  %6913 = vmatprep.subr.bf16.mxu1 %v6512_v11  ;;  %v6614_v12 = vrot.slane %v6601_v59, %v6613_v0  ;;  %v6610_v11 = vrot.slane %v6601_v59, %v10101_v6 }
0x1bd7   :  { %6832 = vmatpush1.bf16.msra.mxu0 %v6509_v52  ;;  %6914 = vmatpush1.bf16.msra.mxu1 %v6511_v10  ;;  %v6618_v52 = vrot.slane %v6601_v59, %v6617_v8 }
0x1bd8   :  { %6833 = vmatprep.subr.bf16.mxu0 %v6518_v43  ;;  %6915 = vmatprep.subr.bf16.mxu1 %v6520_v44 }
0x1bdb   :  { %6834 = vmatpush1.bf16.msra.mxu0 %v6517_v55  ;;  %6916 = vmatpush1.bf16.msra.mxu1 %v6519_v18 }
0x1bdc   :  { %6835 = vmatprep.subr.bf16.mxu0 %v6526_v1  ;;  %6917 = vmatprep.subr.bf16.mxu1 %v6528_v50 }
0x1bdf   :  { %6836 = vmatpush1.bf16.msra.mxu0 %v6525_v36  ;;  %6918 = vmatpush1.bf16.msra.mxu1 %v6527_v15 }
0x1be0   :  { %6837 = vmatprep.subr.bf16.mxu0 %v6534_v13  ;;  %6919 = vmatprep.subr.bf16.mxu1 %v6536_v39  ;;  %v6629_v13 = vsub.s32 6, %v10094_v24  ;;  %v6625_v39 = vsub.s32 5, %v10094_v24 }
0x1be3   :  { %6838 = vmatpush1.bf16.msra.mxu0 %v6533_v27  ;;  %6920 = vmatpush1.bf16.msra.mxu1 %v6535_v26  ;;  %v6633_v27 = vsub.s32 7, %v10094_v24 }
0x1be4   :  { %6848 = vmatprep.subr.bf16.mxu0 %v6542_v54  ;;  %6930 = vmatprep.subr.bf16.mxu1 %v6544_v28 }
0x1be6   :  { %6840 = vmatmul.mubr.bf16.vlgmr.msra.gmra.mrb[84].mxu0 %v11092_v62  ;;  %6922 = vmatmul.mubr.bf16.vlgmr.msra.gmra.mrb[84].mxu1 %v11092_v62  ;;  %v6568_v62 = vld [vmem:[#allocation2 + $0x4f8] sm:$0xff] }
0x1be7   :  { %6849 = vmatpush1.bf16.msra.mxu0 %v6541_v35  ;;  %6931 = vmatpush1.bf16.msra.mxu1 %v6543_v30  ;;  %v6622_v30 = vrot.slane %v6601_v59, %v6621_v2 }
0x1be8   :  { %6850 = vmatprep.subr.bf16.mxu0 %v6550_v58  ;;  %6932 = vmatprep.subr.bf16.mxu1 %v6552_v19  ;;  %v6630_v58 = vrot.slane %v6601_v59, %v6629_v13 }
0x1be9   :  { %6880 = vmatprep.mubr.bf16.mxu0 %v9627_v31  ;;  %6962 = vmatprep.mubr.bf16.mxu1 %v9627_v31  ;;  %v6573_v31 = vld [vmem:[#allocation2 + $0x520] sm:$0xff] }
0x1beb   :  { %6851 = vmatpush1.bf16.msra.mxu0 %v6549_v22  ;;  %6933 = vmatpush1.bf16.msra.mxu1 %v6551_v25  ;;  %v6626_v22 = vrot.slane %v6601_v59, %v6625_v39  ;;  %v6634_v25 = vrot.slane %v6601_v59, %v6633_v27 }
0x1bec   :  { %6852 = vmatprep.subr.bf16.mxu0 %v6558_v61  ;;  %6934 = vmatprep.subr.bf16.mxu1 %v6560_v40 }
0x1bef   :  { %6853 = vmatpush1.bf16.msra.mxu0 %v6557_v33  ;;  %6935 = vmatpush1.bf16.msra.mxu1 %v6559_v16 }
0x1bf0   :  { %6854 = vmatprep.subr.bf16.mxu0 %v6566_v57  ;;  %6936 = vmatprep.subr.bf16.mxu1 %v6568_v62 }
0x1bf3   :  { %6855 = vmatpush1.bf16.msra.mxu0 %v6565_v45  ;;  %6937 = vmatpush1.bf16.msra.mxu1 %v6567_v51 }
0x1bf4   :  { %6856 = vmatprep.subr.bf16.mxu0 %v6574_v9  ;;  %6938 = vmatprep.subr.bf16.mxu1 %v6576_v7 }
0x1bf7   :  { %6857 = vmatpush1.bf16.msra.mxu0 %v6573_v31  ;;  %6939 = vmatpush1.bf16.msra.mxu1 %v6575_v32 }
0x1bf8   :  { %6858 = vmatprep.subr.bf16.mxu0 %v6582_v34  ;;  %6940 = vmatprep.subr.bf16.mxu1 %v6584_v14  ;;  %v7585_v14 = vld.sshfl [vmem:[%s11223_s12] sm:$0x33 pattern:$0x76325410] }
0x1bfb   :  { %6859 = vmatpush1.bf16.msra.mxu0 %v6581_v37  ;;  %6941 = vmatpush1.bf16.msra.mxu1 %v6583_v63 }
0x1bfc   :  { %6860 = vmatprep.subr.bf16.mxu0 %v6590_v3  ;;  %6942 = vmatprep.subr.bf16.mxu1 %v6592_v38  ;;  %v7018_v38 = vcombine.high %v7585_v14, %v7585_v14 }
0x1bff   :  { %6861 = vmatpush1.bf16.msra.mxu0 %v6589_v47  ;;  %6943 = vmatpush1.bf16.msra.mxu1 %v6591_v41 }
0x1c00   :  { %6862 = vmatprep.subr.bf16.mxu0 %v6598_v4  ;;  %6944 = vmatprep.subr.bf16.mxu1 %v6600_v23 }
0x1c03   :  { %6863 = vmatpush1.bf16.msra.mxu0 %v6597_v42  ;;  %6945 = vmatpush1.bf16.msra.mxu1 %v6599_v48 }
0x1c06   :  { %6881 = vmatmul.mubr.bf16.vlgmr.msra.gmra.mrb[84].mxu0 %v11100_v60  ;;  %6963 = vmatmul.mubr.bf16.vlgmr.msra.gmra.mrb[84].mxu1 %v11100_v60 }
0x1c79   :  { %v6718_v46 = vpop.f32.mrb[80].mxu0  ;;  %v6800_v20 = vpop.f32.mrb[80].mxu1 }
0x1c7a   :  { %v6720_v5 = vpop.f32.mrb[81].mxu0  ;;  %v6802_v56 = vpop.f32.mrb[81].mxu1  ;;  %v8207_v60 = vadd.f32 %v6718_v46, %v6606_v21  ;;  %v8209_v10 = vadd.f32 %v6800_v20, %v6614_v12 }
0x1c7b   :  { %v6722_v17 = vpop.f32.mrb[82].mxu0  ;;  %v6804_v49 = vpop.f32.mrb[82].mxu1  ;;  %v8208_v43 = vadd.f32 %v6720_v5, %v6610_v11  ;;  %v8210_v44 = vadd.f32 %v6802_v56, %v6618_v52 }
0x1c7c   :  { %v6723_v53 = vpop.f32.mrb[83].mxu0  ;;  %v6805_v29 = vpop.f32.mrb[83].mxu1  ;;  %v7579_v55 = vmul.f32 -1.442695, %v8207_v60  ;;  %v7581_v18 = vmul.f32 -1.442695, %v8209_v10 }
0x1c7d   :  { %v7580_v1 = vmul.f32 -1.442695, %v8208_v43  ;;  %v7582_v50 = vmul.f32 -1.442695, %v8210_v44 }
0x1c7e   :  { %8933 = vpow2.f32 %v7579_v55 }
0x1c7f   :  { %8935 = vpow2.f32 %v7581_v18 }
0x1c80   :  { %8937 = vpow2.f32 %v7580_v1 }
0x1c81   :  { %8939 = vpow2.f32 %v7582_v50 }
0x1c88   :  { %v8934_v36 = vpop.eup %8933 }
0x1c89   :  { %v8936_v15 = vpop.eup %8935  ;;  %v6977_v54 = vadd.f32 1.0, %v8934_v36 }
0x1c8a   :  { %v8938_v6 = vpop.eup %8937  ;;  %v6989_v28 = vadd.f32 1.0, %v8936_v15 }
0x1c8b   :  { %v8940_v26 = vpop.eup %8939  ;;  %v6978_v35 = vadd.f32 1.0, %v8938_v6  ;;  %8941 = vrcp.f32 %v6977_v54 }
0x1c8c   :  { %v6990_v19 = vadd.f32 1.0, %v8940_v26  ;;  %8943 = vrcp.f32 %v6989_v28 }
0x1c8d   :  { %8945 = vrcp.f32 %v6978_v35 }
0x1c8e   :  { %8947 = vrcp.f32 %v6990_v19 }
0x1c95   :  { %v8942_v37 = vpop.eup %8941 }
0x1c96   :  { %v8944_v63 = vpop.eup %8943 }
0x1c97   :  { %v8946_v3 = vpop.eup %8945  ;;  %v7021_v23 = vmul.f32 %v8944_v63, %v7585_v14 }
0x1c98   :  { %v8948_v47 = vpop.eup %8947 }
0x1c99   :  { %v7022_v46 = vmul.f32 %v8948_v47, %v7018_v38 }
0x1cd9   :  { %v6882_v61 = vpop.f32.mrb[84].mxu0  ;;  %v6964_v40 = vpop.f32.mrb[84].mxu1 }
0x1cda   :  { %v8211_v33 = vadd.f32 %v6882_v61, %v6622_v30  ;;  %v8213_v16 = vadd.f32 %v6964_v40, %v6630_v58  ;;  %v6884_v57 = vpop.f32.mrb[85].mxu0  ;;  %v6966_v62 = vpop.f32.mrb[85].mxu1 }
0x1cdb   :  { %v8212_v24 = vadd.f32 %v6884_v57, %v6626_v22  ;;  %v8214_v45 = vadd.f32 %v6966_v62, %v6634_v25  ;;  %v6886_v51 = vpop.f32.mrb[86].mxu0  ;;  %v6968_v9 = vpop.f32.mrb[86].mxu1 }
0x1cdc   :  { %8949 = vtanh.f32 %v8211_v33  ;;  %v7583_v7 = vmul.f32 -1.442695, %v8213_v16  ;;  %v6887_v31 = vpop.f32.mrb[87].mxu0  ;;  %v6969_v32 = vpop.f32.mrb[87].mxu1 }
0x1cdd   :  { %8951 = vtanh.f32 %v8212_v24  ;;  %v7584_v34 = vmul.f32 -1.442695, %v8214_v45 }
0x1cde   :  { %8953 = vpow2.f32 %v7583_v7 }
0x1cdf   :  { %8955 = vpow2.f32 %v7584_v34 }
0x1ce6   :  { %v8950_v41 = vpop.eup %8949 }
0x1ce7   :  { %v8952_v4 = vpop.eup %8951  ;;  %v7023_v42 = vmul.f32 %v8950_v41, %v8942_v37 }
0x1ce8   :  { %v8954_v48 = vpop.eup %8953  ;;  %v7024_v20 = vmul.f32 %v8952_v4, %v8946_v3 }
0x1ce9   :  { %v8956_v5 = vpop.eup %8955  ;;  %v7003_v56 = vadd.f32 1.0, %v8954_v48  ;;  %v7025_v17 = vadd.f32 %v7023_v42, %v7021_v23 }
0x1cea   :  { %v7004_v49 = vadd.f32 1.0, %v8956_v5  ;;  %v7026_v53 = vadd.f32 %v7024_v20, %v7022_v46 }
0x1ceb   :  { %8957 = vrcp.f32 %v7003_v56 }
0x1cec   :  { %8959 = vrcp.f32 %v7004_v49  ;;  %v7045_v29 = vcombine.low %v7025_v17, %v7026_v53 }
0x1ced   :  { %8961 = vtanh.f32 %v7025_v17 }
0x1cee   :  { %8963 = vtanh.f32 %v7026_v53  ;;  %7587 = vst.sshfl [vmem:[#allocation42] sm:$0x33 pattern:$0x76325410] %v7045_v29 }
0x1cef   :  { %9504 = shalt.err (!%p9501_p0)
}
0x1cf0   :  { %s9505_s0 = scalar_lea.hbm %s9884_s5, 64 }
0x1cf1   :  { %p9506_p1 = scmp.ne.s32.totalorder %s9884_s5, %s9505_s0  ;;  %p9509_p2 = scmp.lt.u32.totalorder %s9505_s0, %s9884_s5 }
0x1cf3   :  { %p9511_p3 = pnand %p9509_p2, %p9506_p1 }
0x1cf5   :  { %9514 = shalt.err (!%p9511_p3)
}
0x1cf6   :  { %7066 = dma.vmem_to_hbm [thread:$0]  %s7064_s28, 64, %s9884_s5, [#allocation6]   ;;  %v8958_v59 = vpop.eup %8957 }
0x1cf7   :  { %v8960_v0 = vpop.eup %8959 }
0x1cf8   :  { %v8962_v8 = vpop.eup %8961 }
0x1cf9   :  { %v8964_v21 = vpop.eup %8963  ;;  %v7029_v12 = vmul.f32 %v8962_v8, %v8958_v59 }
0x1cfa   :  { %v7030_v11 = vmul.f32 %v8964_v21, %v8960_v0 }
0x1cfc   :  { %v7033_v52 = vcombine.low %v7029_v12, %v7030_v11 }
0x1cfe   :  { %7586 = vst.sshfl [vmem:[%s9879_s9] sm:$0x33 pattern:$0x76325410] %v7033_v52 }
0x1cff   :  { %9543 = dma.done.wait [#allocation6], 64  }
0x1d00   :  { %9544 = vsyncadd [#allocation6], 4294967232 }
0x1d01   :  { %7072 = vsyncpa [#allocation5], 1 }
0x1d02   :  { %7073 = vsyncpa [#allocation8], 1 }
0x1d03   :  { %7074 = vsyncpa [#allocation11], 1 }
0x1d04   :  { %7075 = vsyncpa [#allocation14], 1 }
0x1d05   :  { %7076 = vsyncpa [#allocation17], 1 }
0x1d06   :  { %7077 = vsyncpa [#allocation20], 1 }
0x1d07   :  { %7078 = vsyncpa [#allocation23], 1 }
0x1d08   :  { %7079 = vsyncpa [#allocation26], 1 }
0x1d09   :  { %7080 = vsyncpa [#allocation29], 1 }
0x1d0a   :  { %7081 = vsyncpa [#allocation32], 1 }
0x1d0b   :  { %7082 = vsyncpa [#allocation35], 1 }
0x1d0c   :  { %7083 = vsyncpa [#allocation38], 1 }
0x1d0d   :  { %7084 = vsyncpa [#allocation41], 1 }
0x1d0e   :  { %7085 = vsyncpa [#allocation6], 1 }
0x1d0f   :  { %7086 = vsyncmov [#allocation3] }
0x1d12   :  { %s7087_s5 = vpop.sfrf %7086 }
0x1d13   :  { %p7588_p4 = scmp.ne.s32.totalorder %s7087_s5, 0 }
0x1d15   :  { %7091 = shalt.err (%p7588_p4)  }

</bundles_post_ra>
